<compile_context>
chip_gen: v7x
topology: tpu7x:2x2x1
jax: 0.10.0
libtpu: 0.0.40
codegen_flags: <defaults>
</compile_context>

<pallas_src>
import jax
import jax.numpy as jnp
import numpy as np
from jax import lax
from jax.experimental import pallas as pl
from jax.experimental.pallas import tpu as pltpu


def _make_kernel(b_tile: int, seq_len: int, vocab: int, dim: int):
    inv_s = 1.0 / float(seq_len)
    # Short fixed inner loops are fully unrolled for LLO scheduler visibility.
    unroll_inner = seq_len <= 64

    def kernel(ids_ref, emb_ref, w_ref, b_ref, out_ref, acc_ref):
        # ids_ref : (B_pad*S,)    int32 SMEM (scalar prefetch)
        # emb_ref : (V, D)        table dtype, resident in VMEM
        # w_ref   : (D, C_pad)    f32, resident
        # b_ref   : (1, C_pad)    f32, resident
        # out_ref : (B_TILE, C_pad) f32 -- logits for this batch tile
        # acc_ref : (B_TILE, D)   f32 VMEM scratch (pooled sums)
        base = pl.program_id(0) * (b_tile * seq_len)

        for r in range(b_tile):                       # small static unroll over tile rows
            def body(s, acc):
                tok = ids_ref[base + r * seq_len + s]
                tok = jnp.clip(tok, 0, vocab - 1)     # guard: no silent VMEM OOB reads
                row = emb_ref[pl.ds(tok, 1), :].astype(jnp.float32)   # (1, D) gather
                return acc + row                      # dropout == identity (eval mode)

            init = jnp.zeros((1, dim), jnp.float32)
            if unroll_inner:
                row_sum = lax.fori_loop(0, seq_len, body, init, unroll=True)
            else:
                row_sum = lax.fori_loop(0, seq_len, body, init)
            acc_ref[pl.ds(r, 1), :] = row_sum

        pooled = acc_ref[...] * inv_s                 # mean pool, (B_TILE, D)
        logits = jnp.dot(pooled, w_ref[...],
                         preferred_element_type=jnp.float32) + b_ref[...]
        out_ref[...] = logits.astype(out_ref.dtype)   # lane/sublane-dense (8, 128) store

    return kernel


def sentiment_classifier_forward(ids, embedding, w_cls, b_cls, *, b_tile=8):
    """ids: (B, S) int; embedding: (V, D) f32/bf16; w_cls: (D, C); b_cls: (C,)."""
    B, S = ids.shape
    V, D = embedding.shape
    C = w_cls.shape[1]
    C_pad = ((C + 127) // 128) * 128                  # lane-dense head / output width

    # --- resident-table VMEM budget (conservative across gens; v7x VMEM = 64 MiB) ---
    table_bytes = V * D * jnp.dtype(embedding.dtype).itemsize
    head_bytes = (D * C_pad + C_pad) * 4
    scratch_bytes = b_tile * D * 4
    out_block_bytes = 2 * b_tile * C_pad * 4          # double-buffered output block
    need = table_bytes + head_bytes + scratch_bytes + out_block_bytes + (1 << 20)
    VMEM_BUDGET = 48 * 1024 * 1024
    if need > VMEM_BUDGET:
        # TODO(synk): chunked manual-DMA gather path for tables too large for VMEM.
        raise ValueError("embedding table too large for resident-VMEM fast path")
    vmem_limit = int(min(VMEM_BUDGET, max(16 * 1024 * 1024, 2 * need)))

    # --- wrapper-side layout prep (one-time, outside the kernel) ---
    B_pad = ((B + b_tile - 1) // b_tile) * b_tile
    ids_p = jnp.full((B_pad, S), 1, jnp.int32)        # pad rows with padding_idx=1
    ids_p = ids_p.at[:B, :].set(ids.astype(jnp.int32))
    ids_flat = ids_p.reshape(B_pad * S)               # -> SMEM scalar prefetch

    w_pad = jnp.zeros((D, C_pad), jnp.float32).at[:, :C].set(w_cls.astype(jnp.float32))
    b_pad = jnp.zeros((1, C_pad), jnp.float32).at[:, :C].set(
        b_cls.astype(jnp.float32).reshape(1, C))

    num_tiles = B_pad // b_tile
    kernel = _make_kernel(b_tile, S, V, D)

    out = pl.pallas_call(
        kernel,
        out_shape=jax.ShapeDtypeStruct((B_pad, C_pad), jnp.float32),
        grid_spec=pltpu.PrefetchScalarGridSpec(
            num_scalar_prefetch=1,
            grid=(num_tiles,),
            in_specs=[
                pl.BlockSpec((V, D), lambda i, ids: (0, 0)),        # table (resident)
                pl.BlockSpec((D, C_pad), lambda i, ids: (0, 0)),    # head W (resident)
                pl.BlockSpec((1, C_pad), lambda i, ids: (0, 0)),    # bias (resident)
            ],
            out_specs=pl.BlockSpec((b_tile, C_pad), lambda i, ids: (i, 0)),
            scratch_shapes=[pltpu.VMEM((b_tile, D), jnp.float32)],
        ),
        compiler_params=pltpu.CompilerParams(
            dimension_semantics=("parallel",),        # batch-tile axis -> megacore on v7x
            vmem_limit_bytes=vmem_limit,
        ),
    )(ids_flat, embedding, w_pad, b_pad)

    return out[:B, :C]


if __name__ == "__main__":
    # Small shapes consistent with the module's forward contract.
    vocab_size = 512
    embed_dim = 128
    num_classes = 5
    batch = 16
    seq = 16

    key = jax.random.PRNGKey(0)
    k_ids, k_emb, k_w, k_b = jax.random.split(key, 4)

    # Deterministic synthetic parameters (table stays in its native dtype; no f32 copy).
    embedding = jax.random.normal(k_emb, (vocab_size, embed_dim), jnp.float32) * 0.1
    embedding = embedding.at[1].set(0.0)   # padding_idx=1 -> zero row (as nn.Embedding)
    w_cls = jax.random.normal(k_w, (embed_dim, num_classes), jnp.float32) * 0.1
    b_cls = jax.random.normal(k_b, (num_classes,), jnp.float32) * 0.1

    # Input token ids, (batch, seq), with trailing padding tokens (id=1).
    ids = jax.random.randint(k_ids, (batch, seq), 0, vocab_size, jnp.int32)
    ids = ids.at[:, -3:].set(1)

    out = sentiment_classifier_forward(ids, embedding, w_cls, b_cls)
    out = jax.block_until_ready(out)

    # Pure-JAX reference: embedding gather -> mean pool over full S -> linear head.
    ref = jnp.mean(embedding[ids], axis=1) @ w_cls + b_cls
    assert out.shape == (batch, num_classes)
    np.testing.assert_allclose(np.asarray(out), np.asarray(ref), rtol=1e-5, atol=1e-5)

    print("KERNEL_OK")
</pallas_src>

<mosaic_0001>
module attributes {stable_mosaic.version = 11 : i64} {
  func.func @kernel(%arg0: i32, %arg1: memref<256xi32, #tpu.memory_space<smem>>, %arg2: memref<512x128xf32, #tpu.memory_space<vmem>>, %arg3: memref<128x128xf32, #tpu.memory_space<vmem>>, %arg4: memref<1x128xf32, #tpu.memory_space<vmem>>, %arg5: memref<8x128xf32, #tpu.memory_space<vmem>>, %arg6: memref<8x128xf32, #tpu.memory_space<vmem>>) attributes {dimension_semantics = [#tpu.dimension_semantics<parallel>], iteration_bounds = array<i64: 2>, scalar_prefetch = 1 : i64, scratch_operands = 1 : i64, tpu.core_type = #tpu.core_type<tc>, window_params = [{pipeline_mode = #tpu.pipeline_mode<synchronous>, transform_indices = @transform_0, window_bounds = array<i64: 512, 128>}, {pipeline_mode = #tpu.pipeline_mode<synchronous>, transform_indices = @transform_1, window_bounds = array<i64: 128, 128>}, {pipeline_mode = #tpu.pipeline_mode<synchronous>, transform_indices = @transform_2, window_bounds = array<i64: 1, 128>}, {transform_indices = @transform_3, window_bounds = array<i64: 8, 128>}]} {
    %c128_i32 = arith.constant 128 : i32
    %0 = arith.muli %arg0, %c128_i32 : i32
    %cst = arith.constant 0.000000e+00 : f32
    %1 = vector.broadcast %cst : f32 to vector<1x128xf32>
    %c0_i32 = arith.constant 0 : i32
    %c0_i32_0 = arith.constant 0 : i32
    %2 = arith.addi %0, %c0_i32_0 : i32
    %3 = arith.addi %2, %c0_i32 : i32
    %4 = arith.index_cast %3 : i32 to index
    %5 = memref.load %arg1[%4] : memref<256xi32, #tpu.memory_space<smem>>
    %c0_i32_1 = arith.constant 0 : i32
    %c511_i32 = arith.constant 511 : i32
    %6 = arith.maxsi %c0_i32_1, %5 : i32
    %7 = arith.minsi %c511_i32, %6 : i32
    %8 = arith.index_cast %7 : i32 to index
    %c0 = arith.constant 0 : index
    %9 = vector.load %arg2[%8, %c0] : memref<512x128xf32, #tpu.memory_space<vmem>>, vector<1x128xf32>
    %10 = arith.addf %1, %9 : vector<1x128xf32>
    %c1_i32 = arith.constant 1 : i32
    %c0_i32_2 = arith.constant 0 : i32
    %11 = arith.addi %0, %c0_i32_2 : i32
    %12 = arith.addi %11, %c1_i32 : i32
    %13 = arith.index_cast %12 : i32 to index
    %14 = memref.load %arg1[%13] : memref<256xi32, #tpu.memory_space<smem>>
    %c0_i32_3 = arith.constant 0 : i32
    %c511_i32_4 = arith.constant 511 : i32
    %15 = arith.maxsi %c0_i32_3, %14 : i32
    %16 = arith.minsi %c511_i32_4, %15 : i32
    %17 = arith.index_cast %16 : i32 to index
    %c0_5 = arith.constant 0 : index
    %18 = vector.load %arg2[%17, %c0_5] : memref<512x128xf32, #tpu.memory_space<vmem>>, vector<1x128xf32>
    %19 = arith.addf %10, %18 : vector<1x128xf32>
    %c2_i32 = arith.constant 2 : i32
    %c0_i32_6 = arith.constant 0 : i32
    %20 = arith.addi %0, %c0_i32_6 : i32
    %21 = arith.addi %20, %c2_i32 : i32
    %22 = arith.index_cast %21 : i32 to index
    %23 = memref.load %arg1[%22] : memref<256xi32, #tpu.memory_space<smem>>
    %c0_i32_7 = arith.constant 0 : i32
    %c511_i32_8 = arith.constant 511 : i32
    %24 = arith.maxsi %c0_i32_7, %23 : i32
    %25 = arith.minsi %c511_i32_8, %24 : i32
    %26 = arith.index_cast %25 : i32 to index
    %c0_9 = arith.constant 0 : index
    %27 = vector.load %arg2[%26, %c0_9] : memref<512x128xf32, #tpu.memory_space<vmem>>, vector<1x128xf32>
    %28 = arith.addf %19, %27 : vector<1x128xf32>
    %c3_i32 = arith.constant 3 : i32
    %c0_i32_10 = arith.constant 0 : i32
    %29 = arith.addi %0, %c0_i32_10 : i32
    %30 = arith.addi %29, %c3_i32 : i32
    %31 = arith.index_cast %30 : i32 to index
    %32 = memref.load %arg1[%31] : memref<256xi32, #tpu.memory_space<smem>>
    %c0_i32_11 = arith.constant 0 : i32
    %c511_i32_12 = arith.constant 511 : i32
    %33 = arith.maxsi %c0_i32_11, %32 : i32
    %34 = arith.minsi %c511_i32_12, %33 : i32
    %35 = arith.index_cast %34 : i32 to index
    %c0_13 = arith.constant 0 : index
    %36 = vector.load %arg2[%35, %c0_13] : memref<512x128xf32, #tpu.memory_space<vmem>>, vector<1x128xf32>
    %37 = arith.addf %28, %36 : vector<1x128xf32>
    %c4_i32 = arith.constant 4 : i32
    %c0_i32_14 = arith.constant 0 : i32
    %38 = arith.addi %0, %c0_i32_14 : i32
    %39 = arith.addi %38, %c4_i32 : i32
    %40 = arith.index_cast %39 : i32 to index
    %41 = memref.load %arg1[%40] : memref<256xi32, #tpu.memory_space<smem>>
    %c0_i32_15 = arith.constant 0 : i32
    %c511_i32_16 = arith.constant 511 : i32
    %42 = arith.maxsi %c0_i32_15, %41 : i32
    %43 = arith.minsi %c511_i32_16, %42 : i32
    %44 = arith.index_cast %43 : i32 to index
    %c0_17 = arith.constant 0 : index
    %45 = vector.load %arg2[%44, %c0_17] : memref<512x128xf32, #tpu.memory_space<vmem>>, vector<1x128xf32>
    %46 = arith.addf %37, %45 : vector<1x128xf32>
    %c5_i32 = arith.constant 5 : i32
    %c0_i32_18 = arith.constant 0 : i32
    %47 = arith.addi %0, %c0_i32_18 : i32
    %48 = arith.addi %47, %c5_i32 : i32
    %49 = arith.index_cast %48 : i32 to index
    %50 = memref.load %arg1[%49] : memref<256xi32, #tpu.memory_space<smem>>
    %c0_i32_19 = arith.constant 0 : i32
    %c511_i32_20 = arith.constant 511 : i32
    %51 = arith.maxsi %c0_i32_19, %50 : i32
    %52 = arith.minsi %c511_i32_20, %51 : i32
    %53 = arith.index_cast %52 : i32 to index
    %c0_21 = arith.constant 0 : index
    %54 = vector.load %arg2[%53, %c0_21] : memref<512x128xf32, #tpu.memory_space<vmem>>, vector<1x128xf32>
    %55 = arith.addf %46, %54 : vector<1x128xf32>
    %c6_i32 = arith.constant 6 : i32
    %c0_i32_22 = arith.constant 0 : i32
    %56 = arith.addi %0, %c0_i32_22 : i32
    %57 = arith.addi %56, %c6_i32 : i32
    %58 = arith.index_cast %57 : i32 to index
    %59 = memref.load %arg1[%58] : memref<256xi32, #tpu.memory_space<smem>>
    %c0_i32_23 = arith.constant 0 : i32
    %c511_i32_24 = arith.constant 511 : i32
    %60 = arith.maxsi %c0_i32_23, %59 : i32
    %61 = arith.minsi %c511_i32_24, %60 : i32
    %62 = arith.index_cast %61 : i32 to index
    %c0_25 = arith.constant 0 : index
    %63 = vector.load %arg2[%62, %c0_25] : memref<512x128xf32, #tpu.memory_space<vmem>>, vector<1x128xf32>
    %64 = arith.addf %55, %63 : vector<1x128xf32>
    %c7_i32 = arith.constant 7 : i32
    %c0_i32_26 = arith.constant 0 : i32
    %65 = arith.addi %0, %c0_i32_26 : i32
    %66 = arith.addi %65, %c7_i32 : i32
    %67 = arith.index_cast %66 : i32 to index
    %68 = memref.load %arg1[%67] : memref<256xi32, #tpu.memory_space<smem>>
    %c0_i32_27 = arith.constant 0 : i32
    %c511_i32_28 = arith.constant 511 : i32
    %69 = arith.maxsi %c0_i32_27, %68 : i32
    %70 = arith.minsi %c511_i32_28, %69 : i32
    %71 = arith.index_cast %70 : i32 to index
    %c0_29 = arith.constant 0 : index
    %72 = vector.load %arg2[%71, %c0_29] : memref<512x128xf32, #tpu.memory_space<vmem>>, vector<1x128xf32>
    %73 = arith.addf %64, %72 : vector<1x128xf32>
    %c8_i32 = arith.constant 8 : i32
    %c0_i32_30 = arith.constant 0 : i32
    %74 = arith.addi %0, %c0_i32_30 : i32
    %75 = arith.addi %74, %c8_i32 : i32
    %76 = arith.index_cast %75 : i32 to index
    %77 = memref.load %arg1[%76] : memref<256xi32, #tpu.memory_space<smem>>
    %c0_i32_31 = arith.constant 0 : i32
    %c511_i32_32 = arith.constant 511 : i32
    %78 = arith.maxsi %c0_i32_31, %77 : i32
    %79 = arith.minsi %c511_i32_32, %78 : i32
    %80 = arith.index_cast %79 : i32 to index
    %c0_33 = arith.constant 0 : index
    %81 = vector.load %arg2[%80, %c0_33] : memref<512x128xf32, #tpu.memory_space<vmem>>, vector<1x128xf32>
    %82 = arith.addf %73, %81 : vector<1x128xf32>
    %c9_i32 = arith.constant 9 : i32
    %c0_i32_34 = arith.constant 0 : i32
    %83 = arith.addi %0, %c0_i32_34 : i32
    %84 = arith.addi %83, %c9_i32 : i32
    %85 = arith.index_cast %84 : i32 to index
    %86 = memref.load %arg1[%85] : memref<256xi32, #tpu.memory_space<smem>>
    %c0_i32_35 = arith.constant 0 : i32
    %c511_i32_36 = arith.constant 511 : i32
    %87 = arith.maxsi %c0_i32_35, %86 : i32
    %88 = arith.minsi %c511_i32_36, %87 : i32
    %89 = arith.index_cast %88 : i32 to index
    %c0_37 = arith.constant 0 : index
    %90 = vector.load %arg2[%89, %c0_37] : memref<512x128xf32, #tpu.memory_space<vmem>>, vector<1x128xf32>
    %91 = arith.addf %82, %90 : vector<1x128xf32>
    %c10_i32 = arith.constant 10 : i32
    %c0_i32_38 = arith.constant 0 : i32
    %92 = arith.addi %0, %c0_i32_38 : i32
    %93 = arith.addi %92, %c10_i32 : i32
    %94 = arith.index_cast %93 : i32 to index
    %95 = memref.load %arg1[%94] : memref<256xi32, #tpu.memory_space<smem>>
    %c0_i32_39 = arith.constant 0 : i32
    %c511_i32_40 = arith.constant 511 : i32
    %96 = arith.maxsi %c0_i32_39, %95 : i32
    %97 = arith.minsi %c511_i32_40, %96 : i32
    %98 = arith.index_cast %97 : i32 to index
    %c0_41 = arith.constant 0 : index
    %99 = vector.load %arg2[%98, %c0_41] : memref<512x128xf32, #tpu.memory_space<vmem>>, vector<1x128xf32>
    %100 = arith.addf %91, %99 : vector<1x128xf32>
    %c11_i32 = arith.constant 11 : i32
    %c0_i32_42 = arith.constant 0 : i32
    %101 = arith.addi %0, %c0_i32_42 : i32
    %102 = arith.addi %101, %c11_i32 : i32
    %103 = arith.index_cast %102 : i32 to index
    %104 = memref.load %arg1[%103] : memref<256xi32, #tpu.memory_space<smem>>
    %c0_i32_43 = arith.constant 0 : i32
    %c511_i32_44 = arith.constant 511 : i32
    %105 = arith.maxsi %c0_i32_43, %104 : i32
    %106 = arith.minsi %c511_i32_44, %105 : i32
    %107 = arith.index_cast %106 : i32 to index
    %c0_45 = arith.constant 0 : index
    %108 = vector.load %arg2[%107, %c0_45] : memref<512x128xf32, #tpu.memory_space<vmem>>, vector<1x128xf32>
    %109 = arith.addf %100, %108 : vector<1x128xf32>
    %c12_i32 = arith.constant 12 : i32
    %c0_i32_46 = arith.constant 0 : i32
    %110 = arith.addi %0, %c0_i32_46 : i32
    %111 = arith.addi %110, %c12_i32 : i32
    %112 = arith.index_cast %111 : i32 to index
    %113 = memref.load %arg1[%112] : memref<256xi32, #tpu.memory_space<smem>>
    %c0_i32_47 = arith.constant 0 : i32
    %c511_i32_48 = arith.constant 511 : i32
    %114 = arith.maxsi %c0_i32_47, %113 : i32
    %115 = arith.minsi %c511_i32_48, %114 : i32
    %116 = arith.index_cast %115 : i32 to index
    %c0_49 = arith.constant 0 : index
    %117 = vector.load %arg2[%116, %c0_49] : memref<512x128xf32, #tpu.memory_space<vmem>>, vector<1x128xf32>
    %118 = arith.addf %109, %117 : vector<1x128xf32>
    %c13_i32 = arith.constant 13 : i32
    %c0_i32_50 = arith.constant 0 : i32
    %119 = arith.addi %0, %c0_i32_50 : i32
    %120 = arith.addi %119, %c13_i32 : i32
    %121 = arith.index_cast %120 : i32 to index
    %122 = memref.load %arg1[%121] : memref<256xi32, #tpu.memory_space<smem>>
    %c0_i32_51 = arith.constant 0 : i32
    %c511_i32_52 = arith.constant 511 : i32
    %123 = arith.maxsi %c0_i32_51, %122 : i32
    %124 = arith.minsi %c511_i32_52, %123 : i32
    %125 = arith.index_cast %124 : i32 to index
    %c0_53 = arith.constant 0 : index
    %126 = vector.load %arg2[%125, %c0_53] : memref<512x128xf32, #tpu.memory_space<vmem>>, vector<1x128xf32>
    %127 = arith.addf %118, %126 : vector<1x128xf32>
    %c14_i32 = arith.constant 14 : i32
    %c0_i32_54 = arith.constant 0 : i32
    %128 = arith.addi %0, %c0_i32_54 : i32
    %129 = arith.addi %128, %c14_i32 : i32
    %130 = arith.index_cast %129 : i32 to index
    %131 = memref.load %arg1[%130] : memref<256xi32, #tpu.memory_space<smem>>
    %c0_i32_55 = arith.constant 0 : i32
    %c511_i32_56 = arith.constant 511 : i32
    %132 = arith.maxsi %c0_i32_55, %131 : i32
    %133 = arith.minsi %c511_i32_56, %132 : i32
    %134 = arith.index_cast %133 : i32 to index
    %c0_57 = arith.constant 0 : index
    %135 = vector.load %arg2[%134, %c0_57] : memref<512x128xf32, #tpu.memory_space<vmem>>, vector<1x128xf32>
    %136 = arith.addf %127, %135 : vector<1x128xf32>
    %c15_i32 = arith.constant 15 : i32
    %c0_i32_58 = arith.constant 0 : i32
    %137 = arith.addi %0, %c0_i32_58 : i32
    %138 = arith.addi %137, %c15_i32 : i32
    %139 = arith.index_cast %138 : i32 to index
    %140 = memref.load %arg1[%139] : memref<256xi32, #tpu.memory_space<smem>>
    %c0_i32_59 = arith.constant 0 : i32
    %c511_i32_60 = arith.constant 511 : i32
    %141 = arith.maxsi %c0_i32_59, %140 : i32
    %142 = arith.minsi %c511_i32_60, %141 : i32
    %143 = arith.index_cast %142 : i32 to index
    %c0_61 = arith.constant 0 : index
    %144 = vector.load %arg2[%143, %c0_61] : memref<512x128xf32, #tpu.memory_space<vmem>>, vector<1x128xf32>
    %145 = arith.addf %136, %144 : vector<1x128xf32>
    %c16_i32 = arith.constant 16 : i32
    %c0_62 = arith.constant 0 : index
    %c0_63 = arith.constant 0 : index
    %146 = vector.load %arg6[%c0_62, %c0_63] : memref<8x128xf32, #tpu.memory_space<vmem>>, vector<1x128xf32>
    tpu.vector_store %arg6[%c0_62, %c0_63], %145 {strides = array<i32>} : memref<8x128xf32, #tpu.memory_space<vmem>>, vector<1x128xf32>,
    %cst_64 = arith.constant 0.000000e+00 : f32
    %147 = vector.broadcast %cst_64 : f32 to vector<1x128xf32>
    %c0_i32_65 = arith.constant 0 : i32
    %c16_i32_66 = arith.constant 16 : i32
    %148 = arith.addi %0, %c16_i32_66 : i32
    %149 = arith.addi %148, %c0_i32_65 : i32
    %150 = arith.index_cast %149 : i32 to index
    %151 = memref.load %arg1[%150] : memref<256xi32, #tpu.memory_space<smem>>
    %c0_i32_67 = arith.constant 0 : i32
    %c511_i32_68 = arith.constant 511 : i32
    %152 = arith.maxsi %c0_i32_67, %151 : i32
    %153 = arith.minsi %c511_i32_68, %152 : i32
    %154 = arith.index_cast %153 : i32 to index
    %c0_69 = arith.constant 0 : index
    %155 = vector.load %arg2[%154, %c0_69] : memref<512x128xf32, #tpu.memory_space<vmem>>, vector<1x128xf32>
    %156 = arith.addf %147, %155 : vector<1x128xf32>
    %c1_i32_70 = arith.constant 1 : i32
    %c16_i32_71 = arith.constant 16 : i32
    %157 = arith.addi %0, %c16_i32_71 : i32
    %158 = arith.addi %157, %c1_i32_70 : i32
    %159 = arith.index_cast %158 : i32 to index
    %160 = memref.load %arg1[%159] : memref<256xi32, #tpu.memory_space<smem>>
    %c0_i32_72 = arith.constant 0 : i32
    %c511_i32_73 = arith.constant 511 : i32
    %161 = arith.maxsi %c0_i32_72, %160 : i32
    %162 = arith.minsi %c511_i32_73, %161 : i32
    %163 = arith.index_cast %162 : i32 to index
    %c0_74 = arith.constant 0 : index
    %164 = vector.load %arg2[%163, %c0_74] : memref<512x128xf32, #tpu.memory_space<vmem>>, vector<1x128xf32>
    %165 = arith.addf %156, %164 : vector<1x128xf32>
    %c2_i32_75 = arith.constant 2 : i32
    %c16_i32_76 = arith.constant 16 : i32
    %166 = arith.addi %0, %c16_i32_76 : i32
    %167 = arith.addi %166, %c2_i32_75 : i32
    %168 = arith.index_cast %167 : i32 to index
    %169 = memref.load %arg1[%168] : memref<256xi32, #tpu.memory_space<smem>>
    %c0_i32_77 = arith.constant 0 : i32
    %c511_i32_78 = arith.constant 511 : i32
    %170 = arith.maxsi %c0_i32_77, %169 : i32
    %171 = arith.minsi %c511_i32_78, %170 : i32
    %172 = arith.index_cast %171 : i32 to index
    %c0_79 = arith.constant 0 : index
    %173 = vector.load %arg2[%172, %c0_79] : memref<512x128xf32, #tpu.memory_space<vmem>>, vector<1x128xf32>
    %174 = arith.addf %165, %173 : vector<1x128xf32>
    %c3_i32_80 = arith.constant 3 : i32
    %c16_i32_81 = arith.constant 16 : i32
    %175 = arith.addi %0, %c16_i32_81 : i32
    %176 = arith.addi %175, %c3_i32_80 : i32
    %177 = arith.index_cast %176 : i32 to index
    %178 = memref.load %arg1[%177] : memref<256xi32, #tpu.memory_space<smem>>
    %c0_i32_82 = arith.constant 0 : i32
    %c511_i32_83 = arith.constant 511 : i32
    %179 = arith.maxsi %c0_i32_82, %178 : i32
    %180 = arith.minsi %c511_i32_83, %179 : i32
    %181 = arith.index_cast %180 : i32 to index
    %c0_84 = arith.constant 0 : index
    %182 = vector.load %arg2[%181, %c0_84] : memref<512x128xf32, #tpu.memory_space<vmem>>, vector<1x128xf32>
    %183 = arith.addf %174, %182 : vector<1x128xf32>
    %c4_i32_85 = arith.constant 4 : i32
    %c16_i32_86 = arith.constant 16 : i32
    %184 = arith.addi %0, %c16_i32_86 : i32
    %185 = arith.addi %184, %c4_i32_85 : i32
    %186 = arith.index_cast %185 : i32 to index
    %187 = memref.load %arg1[%186] : memref<256xi32, #tpu.memory_space<smem>>
    %c0_i32_87 = arith.constant 0 : i32
    %c511_i32_88 = arith.constant 511 : i32
    %188 = arith.maxsi %c0_i32_87, %187 : i32
    %189 = arith.minsi %c511_i32_88, %188 : i32
    %190 = arith.index_cast %189 : i32 to index
    %c0_89 = arith.constant 0 : index
    %191 = vector.load %arg2[%190, %c0_89] : memref<512x128xf32, #tpu.memory_space<vmem>>, vector<1x128xf32>
    %192 = arith.addf %183, %191 : vector<1x128xf32>
    %c5_i32_90 = arith.constant 5 : i32
    %c16_i32_91 = arith.constant 16 : i32
    %193 = arith.addi %0, %c16_i32_91 : i32
    %194 = arith.addi %193, %c5_i32_90 : i32
    %195 = arith.index_cast %194 : i32 to index
    %196 = memref.load %arg1[%195] : memref<256xi32, #tpu.memory_space<smem>>
    %c0_i32_92 = arith.constant 0 : i32
    %c511_i32_93 = arith.constant 511 : i32
    %197 = arith.maxsi %c0_i32_92, %196 : i32
    %198 = arith.minsi %c511_i32_93, %197 : i32
    %199 = arith.index_cast %198 : i32 to index
    %c0_94 = arith.constant 0 : index
    %200 = vector.load %arg2[%199, %c0_94] : memref<512x128xf32, #tpu.memory_space<vmem>>, vector<1x128xf32>
    %201 = arith.addf %192, %200 : vector<1x128xf32>
    %c6_i32_95 = arith.constant 6 : i32
    %c16_i32_96 = arith.constant 16 : i32
    %202 = arith.addi %0, %c16_i32_96 : i32
    %203 = arith.addi %202, %c6_i32_95 : i32
    %204 = arith.index_cast %203 : i32 to index
    %205 = memref.load %arg1[%204] : memref<256xi32, #tpu.memory_space<smem>>
    %c0_i32_97 = arith.constant 0 : i32
    %c511_i32_98 = arith.constant 511 : i32
    %206 = arith.maxsi %c0_i32_97, %205 : i32
    %207 = arith.minsi %c511_i32_98, %206 : i32
    %208 = arith.index_cast %207 : i32 to index
    %c0_99 = arith.constant 0 : index
    %209 = vector.load %arg2[%208, %c0_99] : memref<512x128xf32, #tpu.memory_space<vmem>>, vector<1x128xf32>
    %210 = arith.addf %201, %209 : vector<1x128xf32>
    %c7_i32_100 = arith.constant 7 : i32
    %c16_i32_101 = arith.constant 16 : i32
    %211 = arith.addi %0, %c16_i32_101 : i32
    %212 = arith.addi %211, %c7_i32_100 : i32
    %213 = arith.index_cast %212 : i32 to index
    %214 = memref.load %arg1[%213] : memref<256xi32, #tpu.memory_space<smem>>
    %c0_i32_102 = arith.constant 0 : i32
    %c511_i32_103 = arith.constant 511 : i32
    %215 = arith.maxsi %c0_i32_102, %214 : i32
    %216 = arith.minsi %c511_i32_103, %215 : i32
    %217 = arith.index_cast %216 : i32 to index
    %c0_104 = arith.constant 0 : index
    %218 = vector.load %arg2[%217, %c0_104] : memref<512x128xf32, #tpu.memory_space<vmem>>, vector<1x128xf32>
    %219 = arith.addf %210, %218 : vector<1x128xf32>
    %c8_i32_105 = arith.constant 8 : i32
    %c16_i32_106 = arith.constant 16 : i32
    %220 = arith.addi %0, %c16_i32_106 : i32
    %221 = arith.addi %220, %c8_i32_105 : i32
    %222 = arith.index_cast %221 : i32 to index
    %223 = memref.load %arg1[%222] : memref<256xi32, #tpu.memory_space<smem>>
    %c0_i32_107 = arith.constant 0 : i32
    %c511_i32_108 = arith.constant 511 : i32
    %224 = arith.maxsi %c0_i32_107, %223 : i32
    %225 = arith.minsi %c511_i32_108, %224 : i32
    %226 = arith.index_cast %225 : i32 to index
    %c0_109 = arith.constant 0 : index
    %227 = vector.load %arg2[%226, %c0_109] : memref<512x128xf32, #tpu.memory_space<vmem>>, vector<1x128xf32>
    %228 = arith.addf %219, %227 : vector<1x128xf32>
    %c9_i32_110 = arith.constant 9 : i32
    %c16_i32_111 = arith.constant 16 : i32
    %229 = arith.addi %0, %c16_i32_111 : i32
    %230 = arith.addi %229, %c9_i32_110 : i32
    %231 = arith.index_cast %230 : i32 to index
    %232 = memref.load %arg1[%231] : memref<256xi32, #tpu.memory_space<smem>>
    %c0_i32_112 = arith.constant 0 : i32
    %c511_i32_113 = arith.constant 511 : i32
    %233 = arith.maxsi %c0_i32_112, %232 : i32
    %234 = arith.minsi %c511_i32_113, %233 : i32
    %235 = arith.index_cast %234 : i32 to index
    %c0_114 = arith.constant 0 : index
    %236 = vector.load %arg2[%235, %c0_114] : memref<512x128xf32, #tpu.memory_space<vmem>>, vector<1x128xf32>
    %237 = arith.addf %228, %236 : vector<1x128xf32>
    %c10_i32_115 = arith.constant 10 : i32
    %c16_i32_116 = arith.constant 16 : i32
    %238 = arith.addi %0, %c16_i32_116 : i32
    %239 = arith.addi %238, %c10_i32_115 : i32
    %240 = arith.index_cast %239 : i32 to index
    %241 = memref.load %arg1[%240] : memref<256xi32, #tpu.memory_space<smem>>
    %c0_i32_117 = arith.constant 0 : i32
    %c511_i32_118 = arith.constant 511 : i32
    %242 = arith.maxsi %c0_i32_117, %241 : i32
    %243 = arith.minsi %c511_i32_118, %242 : i32
    %244 = arith.index_cast %243 : i32 to index
    %c0_119 = arith.constant 0 : index
    %245 = vector.load %arg2[%244, %c0_119] : memref<512x128xf32, #tpu.memory_space<vmem>>, vector<1x128xf32>
    %246 = arith.addf %237, %245 : vector<1x128xf32>
    %c11_i32_120 = arith.constant 11 : i32
    %c16_i32_121 = arith.constant 16 : i32
    %247 = arith.addi %0, %c16_i32_121 : i32
    %248 = arith.addi %247, %c11_i32_120 : i32
    %249 = arith.index_cast %248 : i32 to index
    %250 = memref.load %arg1[%249] : memref<256xi32, #tpu.memory_space<smem>>
    %c0_i32_122 = arith.constant 0 : i32
    %c511_i32_123 = arith.constant 511 : i32
    %251 = arith.maxsi %c0_i32_122, %250 : i32
    %252 = arith.minsi %c511_i32_123, %251 : i32
    %253 = arith.index_cast %252 : i32 to index
    %c0_124 = arith.constant 0 : index
    %254 = vector.load %arg2[%253, %c0_124] : memref<512x128xf32, #tpu.memory_space<vmem>>, vector<1x128xf32>
    %255 = arith.addf %246, %254 : vector<1x128xf32>
    %c12_i32_125 = arith.constant 12 : i32
    %c16_i32_126 = arith.constant 16 : i32
    %256 = arith.addi %0, %c16_i32_126 : i32
    %257 = arith.addi %256, %c12_i32_125 : i32
    %258 = arith.index_cast %257 : i32 to index
    %259 = memref.load %arg1[%258] : memref<256xi32, #tpu.memory_space<smem>>
    %c0_i32_127 = arith.constant 0 : i32
    %c511_i32_128 = arith.constant 511 : i32
    %260 = arith.maxsi %c0_i32_127, %259 : i32
    %261 = arith.minsi %c511_i32_128, %260 : i32
    %262 = arith.index_cast %261 : i32 to index
    %c0_129 = arith.constant 0 : index
    %263 = vector.load %arg2[%262, %c0_129] : memref<512x128xf32, #tpu.memory_space<vmem>>, vector<1x128xf32>
    %264 = arith.addf %255, %263 : vector<1x128xf32>
    %c13_i32_130 = arith.constant 13 : i32
    %c16_i32_131 = arith.constant 16 : i32
    %265 = arith.addi %0, %c16_i32_131 : i32
    %266 = arith.addi %265, %c13_i32_130 : i32
    %267 = arith.index_cast %266 : i32 to index
    %268 = memref.load %arg1[%267] : memref<256xi32, #tpu.memory_space<smem>>
    %c0_i32_132 = arith.constant 0 : i32
    %c511_i32_133 = arith.constant 511 : i32
    %269 = arith.maxsi %c0_i32_132, %268 : i32
    %270 = arith.minsi %c511_i32_133, %269 : i32
    %271 = arith.index_cast %270 : i32 to index
    %c0_134 = arith.constant 0 : index
    %272 = vector.load %arg2[%271, %c0_134] : memref<512x128xf32, #tpu.memory_space<vmem>>, vector<1x128xf32>
    %273 = arith.addf %264, %272 : vector<1x128xf32>
    %c14_i32_135 = arith.constant 14 : i32
    %c16_i32_136 = arith.constant 16 : i32
    %274 = arith.addi %0, %c16_i32_136 : i32
    %275 = arith.addi %274, %c14_i32_135 : i32
    %276 = arith.index_cast %275 : i32 to index
    %277 = memref.load %arg1[%276] : memref<256xi32, #tpu.memory_space<smem>>
    %c0_i32_137 = arith.constant 0 : i32
    %c511_i32_138 = arith.constant 511 : i32
    %278 = arith.maxsi %c0_i32_137, %277 : i32
    %279 = arith.minsi %c511_i32_138, %278 : i32
    %280 = arith.index_cast %279 : i32 to index
    %c0_139 = arith.constant 0 : index
    %281 = vector.load %arg2[%280, %c0_139] : memref<512x128xf32, #tpu.memory_space<vmem>>, vector<1x128xf32>
    %282 = arith.addf %273, %281 : vector<1x128xf32>
    %c15_i32_140 = arith.constant 15 : i32
    %c16_i32_141 = arith.constant 16 : i32
    %283 = arith.addi %0, %c16_i32_141 : i32
    %284 = arith.addi %283, %c15_i32_140 : i32
    %285 = arith.index_cast %284 : i32 to index
    %286 = memref.load %arg1[%285] : memref<256xi32, #tpu.memory_space<smem>>
    %c0_i32_142 = arith.constant 0 : i32
    %c511_i32_143 = arith.constant 511 : i32
    %287 = arith.maxsi %c0_i32_142, %286 : i32
    %288 = arith.minsi %c511_i32_143, %287 : i32
    %289 = arith.index_cast %288 : i32 to index
    %c0_144 = arith.constant 0 : index
    %290 = vector.load %arg2[%289, %c0_144] : memref<512x128xf32, #tpu.memory_space<vmem>>, vector<1x128xf32>
    %291 = arith.addf %282, %290 : vector<1x128xf32>
    %c16_i32_145 = arith.constant 16 : i32
    %c1 = arith.constant 1 : index
    %c0_146 = arith.constant 0 : index
    %292 = vector.load %arg6[%c1, %c0_146] : memref<8x128xf32, #tpu.memory_space<vmem>>, vector<1x128xf32>
    tpu.vector_store %arg6[%c1, %c0_146], %291 {strides = array<i32>} : memref<8x128xf32, #tpu.memory_space<vmem>>, vector<1x128xf32>,
    %cst_147 = arith.constant 0.000000e+00 : f32
    %293 = vector.broadcast %cst_147 : f32 to vector<1x128xf32>
    %c0_i32_148 = arith.constant 0 : i32
    %c32_i32 = arith.constant 32 : i32
    %294 = arith.addi %0, %c32_i32 : i32
    %295 = arith.addi %294, %c0_i32_148 : i32
    %296 = arith.index_cast %295 : i32 to index
    %297 = memref.load %arg1[%296] : memref<256xi32, #tpu.memory_space<smem>>
    %c0_i32_149 = arith.constant 0 : i32
    %c511_i32_150 = arith.constant 511 : i32
    %298 = arith.maxsi %c0_i32_149, %297 : i32
    %299 = arith.minsi %c511_i32_150, %298 : i32
    %300 = arith.index_cast %299 : i32 to index
    %c0_151 = arith.constant 0 : index
    %301 = vector.load %arg2[%300, %c0_151] : memref<512x128xf32, #tpu.memory_space<vmem>>, vector<1x128xf32>
    %302 = arith.addf %293, %301 : vector<1x128xf32>
    %c1_i32_152 = arith.constant 1 : i32
    %c32_i32_153 = arith.constant 32 : i32
    %303 = arith.addi %0, %c32_i32_153 : i32
    %304 = arith.addi %303, %c1_i32_152 : i32
    %305 = arith.index_cast %304 : i32 to index
    %306 = memref.load %arg1[%305] : memref<256xi32, #tpu.memory_space<smem>>
    %c0_i32_154 = arith.constant 0 : i32
    %c511_i32_155 = arith.constant 511 : i32
    %307 = arith.maxsi %c0_i32_154, %306 : i32
    %308 = arith.minsi %c511_i32_155, %307 : i32
    %309 = arith.index_cast %308 : i32 to index
    %c0_156 = arith.constant 0 : index
    %310 = vector.load %arg2[%309, %c0_156] : memref<512x128xf32, #tpu.memory_space<vmem>>, vector<1x128xf32>
    %311 = arith.addf %302, %310 : vector<1x128xf32>
    %c2_i32_157 = arith.constant 2 : i32
    %c32_i32_158 = arith.constant 32 : i32
    %312 = arith.addi %0, %c32_i32_158 : i32
    %313 = arith.addi %312, %c2_i32_157 : i32
    %314 = arith.index_cast %313 : i32 to index
    %315 = memref.load %arg1[%314] : memref<256xi32, #tpu.memory_space<smem>>
    %c0_i32_159 = arith.constant 0 : i32
    %c511_i32_160 = arith.constant 511 : i32
    %316 = arith.maxsi %c0_i32_159, %315 : i32
    %317 = arith.minsi %c511_i32_160, %316 : i32
    %318 = arith.index_cast %317 : i32 to index
    %c0_161 = arith.constant 0 : index
    %319 = vector.load %arg2[%318, %c0_161] : memref<512x128xf32, #tpu.memory_space<vmem>>, vector<1x128xf32>
    %320 = arith.addf %311, %319 : vector<1x128xf32>
    %c3_i32_162 = arith.constant 3 : i32
    %c32_i32_163 = arith.constant 32 : i32
    %321 = arith.addi %0, %c32_i32_163 : i32
    %322 = arith.addi %321, %c3_i32_162 : i32
    %323 = arith.index_cast %322 : i32 to index
    %324 = memref.load %arg1[%323] : memref<256xi32, #tpu.memory_space<smem>>
    %c0_i32_164 = arith.constant 0 : i32
    %c511_i32_165 = arith.constant 511 : i32
    %325 = arith.maxsi %c0_i32_164, %324 : i32
    %326 = arith.minsi %c511_i32_165, %325 : i32
    %327 = arith.index_cast %326 : i32 to index
    %c0_166 = arith.constant 0 : index
    %328 = vector.load %arg2[%327, %c0_166] : memref<512x128xf32, #tpu.memory_space<vmem>>, vector<1x128xf32>
    %329 = arith.addf %320, %328 : vector<1x128xf32>
    %c4_i32_167 = arith.constant 4 : i32
    %c32_i32_168 = arith.constant 32 : i32
    %330 = arith.addi %0, %c32_i32_168 : i32
    %331 = arith.addi %330, %c4_i32_167 : i32
    %332 = arith.index_cast %331 : i32 to index
    %333 = memref.load %arg1[%332] : memref<256xi32, #tpu.memory_space<smem>>
    %c0_i32_169 = arith.constant 0 : i32
    %c511_i32_170 = arith.constant 511 : i32
    %334 = arith.maxsi %c0_i32_169, %333 : i32
    %335 = arith.minsi %c511_i32_170, %334 : i32
    %336 = arith.index_cast %335 : i32 to index
    %c0_171 = arith.constant 0 : index
    %337 = vector.load %arg2[%336, %c0_171] : memref<512x128xf32, #tpu.memory_space<vmem>>, vector<1x128xf32>
    %338 = arith.addf %329, %337 : vector<1x128xf32>
    %c5_i32_172 = arith.constant 5 : i32
    %c32_i32_173 = arith.constant 32 : i32
    %339 = arith.addi %0, %c32_i32_173 : i32
    %340 = arith.addi %339, %c5_i32_172 : i32
    %341 = arith.index_cast %340 : i32 to index
    %342 = memref.load %arg1[%341] : memref<256xi32, #tpu.memory_space<smem>>
    %c0_i32_174 = arith.constant 0 : i32
    %c511_i32_175 = arith.constant 511 : i32
    %343 = arith.maxsi %c0_i32_174, %342 : i32
    %344 = arith.minsi %c511_i32_175, %343 : i32
    %345 = arith.index_cast %344 : i32 to index
    %c0_176 = arith.constant 0 : index
    %346 = vector.load %arg2[%345, %c0_176] : memref<512x128xf32, #tpu.memory_space<vmem>>, vector<1x128xf32>
    %347 = arith.addf %338, %346 : vector<1x128xf32>
    %c6_i32_177 = arith.constant 6 : i32
    %c32_i32_178 = arith.constant 32 : i32
    %348 = arith.addi %0, %c32_i32_178 : i32
    %349 = arith.addi %348, %c6_i32_177 : i32
    %350 = arith.index_cast %349 : i32 to index
    %351 = memref.load %arg1[%350] : memref<256xi32, #tpu.memory_space<smem>>
    %c0_i32_179 = arith.constant 0 : i32
    %c511_i32_180 = arith.constant 511 : i32
    %352 = arith.maxsi %c0_i32_179, %351 : i32
    %353 = arith.minsi %c511_i32_180, %352 : i32
    %354 = arith.index_cast %353 : i32 to index
    %c0_181 = arith.constant 0 : index
    %355 = vector.load %arg2[%354, %c0_181] : memref<512x128xf32, #tpu.memory_space<vmem>>, vector<1x128xf32>
    %356 = arith.addf %347, %355 : vector<1x128xf32>
    %c7_i32_182 = arith.constant 7 : i32
    %c32_i32_183 = arith.constant 32 : i32
    %357 = arith.addi %0, %c32_i32_183 : i32
    %358 = arith.addi %357, %c7_i32_182 : i32
    %359 = arith.index_cast %358 : i32 to index
    %360 = memref.load %arg1[%359] : memref<256xi32, #tpu.memory_space<smem>>
    %c0_i32_184 = arith.constant 0 : i32
    %c511_i32_185 = arith.constant 511 : i32
    %361 = arith.maxsi %c0_i32_184, %360 : i32
    %362 = arith.minsi %c511_i32_185, %361 : i32
    %363 = arith.index_cast %362 : i32 to index
    %c0_186 = arith.constant 0 : index
    %364 = vector.load %arg2[%363, %c0_186] : memref<512x128xf32, #tpu.memory_space<vmem>>, vector<1x128xf32>
    %365 = arith.addf %356, %364 : vector<1x128xf32>
    %c8_i32_187 = arith.constant 8 : i32
    %c32_i32_188 = arith.constant 32 : i32
    %366 = arith.addi %0, %c32_i32_188 : i32
    %367 = arith.addi %366, %c8_i32_187 : i32
    %368 = arith.index_cast %367 : i32 to index
    %369 = memref.load %arg1[%368] : memref<256xi32, #tpu.memory_space<smem>>
    %c0_i32_189 = arith.constant 0 : i32
    %c511_i32_190 = arith.constant 511 : i32
    %370 = arith.maxsi %c0_i32_189, %369 : i32
    %371 = arith.minsi %c511_i32_190, %370 : i32
    %372 = arith.index_cast %371 : i32 to index
    %c0_191 = arith.constant 0 : index
    %373 = vector.load %arg2[%372, %c0_191] : memref<512x128xf32, #tpu.memory_space<vmem>>, vector<1x128xf32>
    %374 = arith.addf %365, %373 : vector<1x128xf32>
    %c9_i32_192 = arith.constant 9 : i32
    %c32_i32_193 = arith.constant 32 : i32
    %375 = arith.addi %0, %c32_i32_193 : i32
    %376 = arith.addi %375, %c9_i32_192 : i32
    %377 = arith.index_cast %376 : i32 to index
    %378 = memref.load %arg1[%377] : memref<256xi32, #tpu.memory_space<smem>>
    %c0_i32_194 = arith.constant 0 : i32
    %c511_i32_195 = arith.constant 511 : i32
    %379 = arith.maxsi %c0_i32_194, %378 : i32
    %380 = arith.minsi %c511_i32_195, %379 : i32
    %381 = arith.index_cast %380 : i32 to index
    %c0_196 = arith.constant 0 : index
    %382 = vector.load %arg2[%381, %c0_196] : memref<512x128xf32, #tpu.memory_space<vmem>>, vector<1x128xf32>
    %383 = arith.addf %374, %382 : vector<1x128xf32>
    %c10_i32_197 = arith.constant 10 : i32
    %c32_i32_198 = arith.constant 32 : i32
    %384 = arith.addi %0, %c32_i32_198 : i32
    %385 = arith.addi %384, %c10_i32_197 : i32
    %386 = arith.index_cast %385 : i32 to index
    %387 = memref.load %arg1[%386] : memref<256xi32, #tpu.memory_space<smem>>
    %c0_i32_199 = arith.constant 0 : i32
    %c511_i32_200 = arith.constant 511 : i32
    %388 = arith.maxsi %c0_i32_199, %387 : i32
    %389 = arith.minsi %c511_i32_200, %388 : i32
    %390 = arith.index_cast %389 : i32 to index
    %c0_201 = arith.constant 0 : index
    %391 = vector.load %arg2[%390, %c0_201] : memref<512x128xf32, #tpu.memory_space<vmem>>, vector<1x128xf32>
    %392 = arith.addf %383, %391 : vector<1x128xf32>
    %c11_i32_202 = arith.constant 11 : i32
    %c32_i32_203 = arith.constant 32 : i32
    %393 = arith.addi %0, %c32_i32_203 : i32
    %394 = arith.addi %393, %c11_i32_202 : i32
    %395 = arith.index_cast %394 : i32 to index
    %396 = memref.load %arg1[%395] : memref<256xi32, #tpu.memory_space<smem>>
    %c0_i32_204 = arith.constant 0 : i32
    %c511_i32_205 = arith.constant 511 : i32
    %397 = arith.maxsi %c0_i32_204, %396 : i32
    %398 = arith.minsi %c511_i32_205, %397 : i32
    %399 = arith.index_cast %398 : i32 to index
    %c0_206 = arith.constant 0 : index
    %400 = vector.load %arg2[%399, %c0_206] : memref<512x128xf32, #tpu.memory_space<vmem>>, vector<1x128xf32>
    %401 = arith.addf %392, %400 : vector<1x128xf32>
    %c12_i32_207 = arith.constant 12 : i32
    %c32_i32_208 = arith.constant 32 : i32
    %402 = arith.addi %0, %c32_i32_208 : i32
    %403 = arith.addi %402, %c12_i32_207 : i32
    %404 = arith.index_cast %403 : i32 to index
    %405 = memref.load %arg1[%404] : memref<256xi32, #tpu.memory_space<smem>>
    %c0_i32_209 = arith.constant 0 : i32
    %c511_i32_210 = arith.constant 511 : i32
    %406 = arith.maxsi %c0_i32_209, %405 : i32
    %407 = arith.minsi %c511_i32_210, %406 : i32
    %408 = arith.index_cast %407 : i32 to index
    %c0_211 = arith.constant 0 : index
    %409 = vector.load %arg2[%408, %c0_211] : memref<512x128xf32, #tpu.memory_space<vmem>>, vector<1x128xf32>
    %410 = arith.addf %401, %409 : vector<1x128xf32>
    %c13_i32_212 = arith.constant 13 : i32
    %c32_i32_213 = arith.constant 32 : i32
    %411 = arith.addi %0, %c32_i32_213 : i32
    %412 = arith.addi %411, %c13_i32_212 : i32
    %413 = arith.index_cast %412 : i32 to index
    %414 = memref.load %arg1[%413] : memref<256xi32, #tpu.memory_space<smem>>
    %c0_i32_214 = arith.constant 0 : i32
    %c511_i32_215 = arith.constant 511 : i32
    %415 = arith.maxsi %c0_i32_214, %414 : i32
    %416 = arith.minsi %c511_i32_215, %415 : i32
    %417 = arith.index_cast %416 : i32 to index
    %c0_216 = arith.constant 0 : index
    %418 = vector.load %arg2[%417, %c0_216] : memref<512x128xf32, #tpu.memory_space<vmem>>, vector<1x128xf32>
    %419 = arith.addf %410, %418 : vector<1x128xf32>
    %c14_i32_217 = arith.constant 14 : i32
    %c32_i32_218 = arith.constant 32 : i32
    %420 = arith.addi %0, %c32_i32_218 : i32
    %421 = arith.addi %420, %c14_i32_217 : i32
    %422 = arith.index_cast %421 : i32 to index
    %423 = memref.load %arg1[%422] : memref<256xi32, #tpu.memory_space<smem>>
    %c0_i32_219 = arith.constant 0 : i32
    %c511_i32_220 = arith.constant 511 : i32
    %424 = arith.maxsi %c0_i32_219, %423 : i32
    %425 = arith.minsi %c511_i32_220, %424 : i32
    %426 = arith.index_cast %425 : i32 to index
    %c0_221 = arith.constant 0 : index
    %427 = vector.load %arg2[%426, %c0_221] : memref<512x128xf32, #tpu.memory_space<vmem>>, vector<1x128xf32>
    %428 = arith.addf %419, %427 : vector<1x128xf32>
    %c15_i32_222 = arith.constant 15 : i32
    %c32_i32_223 = arith.constant 32 : i32
    %429 = arith.addi %0, %c32_i32_223 : i32
    %430 = arith.addi %429, %c15_i32_222 : i32
    %431 = arith.index_cast %430 : i32 to index
    %432 = memref.load %arg1[%431] : memref<256xi32, #tpu.memory_space<smem>>
    %c0_i32_224 = arith.constant 0 : i32
    %c511_i32_225 = arith.constant 511 : i32
    %433 = arith.maxsi %c0_i32_224, %432 : i32
    %434 = arith.minsi %c511_i32_225, %433 : i32
    %435 = arith.index_cast %434 : i32 to index
    %c0_226 = arith.constant 0 : index
    %436 = vector.load %arg2[%435, %c0_226] : memref<512x128xf32, #tpu.memory_space<vmem>>, vector<1x128xf32>
    %437 = arith.addf %428, %436 : vector<1x128xf32>
    %c16_i32_227 = arith.constant 16 : i32
    %c2 = arith.constant 2 : index
    %c0_228 = arith.constant 0 : index
    %438 = vector.load %arg6[%c2, %c0_228] : memref<8x128xf32, #tpu.memory_space<vmem>>, vector<1x128xf32>
    tpu.vector_store %arg6[%c2, %c0_228], %437 {strides = array<i32>} : memref<8x128xf32, #tpu.memory_space<vmem>>, vector<1x128xf32>,
    %cst_229 = arith.constant 0.000000e+00 : f32
    %439 = vector.broadcast %cst_229 : f32 to vector<1x128xf32>
    %c0_i32_230 = arith.constant 0 : i32
    %c48_i32 = arith.constant 48 : i32
    %440 = arith.addi %0, %c48_i32 : i32
    %441 = arith.addi %440, %c0_i32_230 : i32
    %442 = arith.index_cast %441 : i32 to index
    %443 = memref.load %arg1[%442] : memref<256xi32, #tpu.memory_space<smem>>
    %c0_i32_231 = arith.constant 0 : i32
    %c511_i32_232 = arith.constant 511 : i32
    %444 = arith.maxsi %c0_i32_231, %443 : i32
    %445 = arith.minsi %c511_i32_232, %444 : i32
    %446 = arith.index_cast %445 : i32 to index
    %c0_233 = arith.constant 0 : index
    %447 = vector.load %arg2[%446, %c0_233] : memref<512x128xf32, #tpu.memory_space<vmem>>, vector<1x128xf32>
    %448 = arith.addf %439, %447 : vector<1x128xf32>
    %c1_i32_234 = arith.constant 1 : i32
    %c48_i32_235 = arith.constant 48 : i32
    %449 = arith.addi %0, %c48_i32_235 : i32
    %450 = arith.addi %449, %c1_i32_234 : i32
    %451 = arith.index_cast %450 : i32 to index
    %452 = memref.load %arg1[%451] : memref<256xi32, #tpu.memory_space<smem>>
    %c0_i32_236 = arith.constant 0 : i32
    %c511_i32_237 = arith.constant 511 : i32
    %453 = arith.maxsi %c0_i32_236, %452 : i32
    %454 = arith.minsi %c511_i32_237, %453 : i32
    %455 = arith.index_cast %454 : i32 to index
    %c0_238 = arith.constant 0 : index
    %456 = vector.load %arg2[%455, %c0_238] : memref<512x128xf32, #tpu.memory_space<vmem>>, vector<1x128xf32>
    %457 = arith.addf %448, %456 : vector<1x128xf32>
    %c2_i32_239 = arith.constant 2 : i32
    %c48_i32_240 = arith.constant 48 : i32
    %458 = arith.addi %0, %c48_i32_240 : i32
    %459 = arith.addi %458, %c2_i32_239 : i32
    %460 = arith.index_cast %459 : i32 to index
    %461 = memref.load %arg1[%460] : memref<256xi32, #tpu.memory_space<smem>>
    %c0_i32_241 = arith.constant 0 : i32
    %c511_i32_242 = arith.constant 511 : i32
    %462 = arith.maxsi %c0_i32_241, %461 : i32
    %463 = arith.minsi %c511_i32_242, %462 : i32
    %464 = arith.index_cast %463 : i32 to index
    %c0_243 = arith.constant 0 : index
    %465 = vector.load %arg2[%464, %c0_243] : memref<512x128xf32, #tpu.memory_space<vmem>>, vector<1x128xf32>
    %466 = arith.addf %457, %465 : vector<1x128xf32>
    %c3_i32_244 = arith.constant 3 : i32
    %c48_i32_245 = arith.constant 48 : i32
    %467 = arith.addi %0, %c48_i32_245 : i32
    %468 = arith.addi %467, %c3_i32_244 : i32
    %469 = arith.index_cast %468 : i32 to index
    %470 = memref.load %arg1[%469] : memref<256xi32, #tpu.memory_space<smem>>
    %c0_i32_246 = arith.constant 0 : i32
    %c511_i32_247 = arith.constant 511 : i32
    %471 = arith.maxsi %c0_i32_246, %470 : i32
    %472 = arith.minsi %c511_i32_247, %471 : i32
    %473 = arith.index_cast %472 : i32 to index
    %c0_248 = arith.constant 0 : index
    %474 = vector.load %arg2[%473, %c0_248] : memref<512x128xf32, #tpu.memory_space<vmem>>, vector<1x128xf32>
    %475 = arith.addf %466, %474 : vector<1x128xf32>
    %c4_i32_249 = arith.constant 4 : i32
    %c48_i32_250 = arith.constant 48 : i32
    %476 = arith.addi %0, %c48_i32_250 : i32
    %477 = arith.addi %476, %c4_i32_249 : i32
    %478 = arith.index_cast %477 : i32 to index
    %479 = memref.load %arg1[%478] : memref<256xi32, #tpu.memory_space<smem>>
    %c0_i32_251 = arith.constant 0 : i32
    %c511_i32_252 = arith.constant 511 : i32
    %480 = arith.maxsi %c0_i32_251, %479 : i32
    %481 = arith.minsi %c511_i32_252, %480 : i32
    %482 = arith.index_cast %481 : i32 to index
    %c0_253 = arith.constant 0 : index
    %483 = vector.load %arg2[%482, %c0_253] : memref<512x128xf32, #tpu.memory_space<vmem>>, vector<1x128xf32>
    %484 = arith.addf %475, %483 : vector<1x128xf32>
    %c5_i32_254 = arith.constant 5 : i32
    %c48_i32_255 = arith.constant 48 : i32
    %485 = arith.addi %0, %c48_i32_255 : i32
    %486 = arith.addi %485, %c5_i32_254 : i32
    %487 = arith.index_cast %486 : i32 to index
    %488 = memref.load %arg1[%487] : memref<256xi32, #tpu.memory_space<smem>>
    %c0_i32_256 = arith.constant 0 : i32
    %c511_i32_257 = arith.constant 511 : i32
    %489 = arith.maxsi %c0_i32_256, %488 : i32
    %490 = arith.minsi %c511_i32_257, %489 : i32
    %491 = arith.index_cast %490 : i32 to index
    %c0_258 = arith.constant 0 : index
    %492 = vector.load %arg2[%491, %c0_258] : memref<512x128xf32, #tpu.memory_space<vmem>>, vector<1x128xf32>
    %493 = arith.addf %484, %492 : vector<1x128xf32>
    %c6_i32_259 = arith.constant 6 : i32
    %c48_i32_260 = arith.constant 48 : i32
    %494 = arith.addi %0, %c48_i32_260 : i32
    %495 = arith.addi %494, %c6_i32_259 : i32
    %496 = arith.index_cast %495 : i32 to index
    %497 = memref.load %arg1[%496] : memref<256xi32, #tpu.memory_space<smem>>
    %c0_i32_261 = arith.constant 0 : i32
    %c511_i32_262 = arith.constant 511 : i32
    %498 = arith.maxsi %c0_i32_261, %497 : i32
    %499 = arith.minsi %c511_i32_262, %498 : i32
    %500 = arith.index_cast %499 : i32 to index
    %c0_263 = arith.constant 0 : index
    %501 = vector.load %arg2[%500, %c0_263] : memref<512x128xf32, #tpu.memory_space<vmem>>, vector<1x128xf32>
    %502 = arith.addf %493, %501 : vector<1x128xf32>
    %c7_i32_264 = arith.constant 7 : i32
    %c48_i32_265 = arith.constant 48 : i32
    %503 = arith.addi %0, %c48_i32_265 : i32
    %504 = arith.addi %503, %c7_i32_264 : i32
    %505 = arith.index_cast %504 : i32 to index
    %506 = memref.load %arg1[%505] : memref<256xi32, #tpu.memory_space<smem>>
    %c0_i32_266 = arith.constant 0 : i32
    %c511_i32_267 = arith.constant 511 : i32
    %507 = arith.maxsi %c0_i32_266, %506 : i32
    %508 = arith.minsi %c511_i32_267, %507 : i32
    %509 = arith.index_cast %508 : i32 to index
    %c0_268 = arith.constant 0 : index
    %510 = vector.load %arg2[%509, %c0_268] : memref<512x128xf32, #tpu.memory_space<vmem>>, vector<1x128xf32>
    %511 = arith.addf %502, %510 : vector<1x128xf32>
    %c8_i32_269 = arith.constant 8 : i32
    %c48_i32_270 = arith.constant 48 : i32
    %512 = arith.addi %0, %c48_i32_270 : i32
    %513 = arith.addi %512, %c8_i32_269 : i32
    %514 = arith.index_cast %513 : i32 to index
    %515 = memref.load %arg1[%514] : memref<256xi32, #tpu.memory_space<smem>>
    %c0_i32_271 = arith.constant 0 : i32
    %c511_i32_272 = arith.constant 511 : i32
    %516 = arith.maxsi %c0_i32_271, %515 : i32
    %517 = arith.minsi %c511_i32_272, %516 : i32
    %518 = arith.index_cast %517 : i32 to index
    %c0_273 = arith.constant 0 : index
    %519 = vector.load %arg2[%518, %c0_273] : memref<512x128xf32, #tpu.memory_space<vmem>>, vector<1x128xf32>
    %520 = arith.addf %511, %519 : vector<1x128xf32>
    %c9_i32_274 = arith.constant 9 : i32
    %c48_i32_275 = arith.constant 48 : i32
    %521 = arith.addi %0, %c48_i32_275 : i32
    %522 = arith.addi %521, %c9_i32_274 : i32
    %523 = arith.index_cast %522 : i32 to index
    %524 = memref.load %arg1[%523] : memref<256xi32, #tpu.memory_space<smem>>
    %c0_i32_276 = arith.constant 0 : i32
    %c511_i32_277 = arith.constant 511 : i32
    %525 = arith.maxsi %c0_i32_276, %524 : i32
    %526 = arith.minsi %c511_i32_277, %525 : i32
    %527 = arith.index_cast %526 : i32 to index
    %c0_278 = arith.constant 0 : index
    %528 = vector.load %arg2[%527, %c0_278] : memref<512x128xf32, #tpu.memory_space<vmem>>, vector<1x128xf32>
    %529 = arith.addf %520, %528 : vector<1x128xf32>
    %c10_i32_279 = arith.constant 10 : i32
    %c48_i32_280 = arith.constant 48 : i32
    %530 = arith.addi %0, %c48_i32_280 : i32
    %531 = arith.addi %530, %c10_i32_279 : i32
    %532 = arith.index_cast %531 : i32 to index
    %533 = memref.load %arg1[%532] : memref<256xi32, #tpu.memory_space<smem>>
    %c0_i32_281 = arith.constant 0 : i32
    %c511_i32_282 = arith.constant 511 : i32
    %534 = arith.maxsi %c0_i32_281, %533 : i32
    %535 = arith.minsi %c511_i32_282, %534 : i32
    %536 = arith.index_cast %535 : i32 to index
    %c0_283 = arith.constant 0 : index
    %537 = vector.load %arg2[%536, %c0_283] : memref<512x128xf32, #tpu.memory_space<vmem>>, vector<1x128xf32>
    %538 = arith.addf %529, %537 : vector<1x128xf32>
    %c11_i32_284 = arith.constant 11 : i32
    %c48_i32_285 = arith.constant 48 : i32
    %539 = arith.addi %0, %c48_i32_285 : i32
    %540 = arith.addi %539, %c11_i32_284 : i32
    %541 = arith.index_cast %540 : i32 to index
    %542 = memref.load %arg1[%541] : memref<256xi32, #tpu.memory_space<smem>>
    %c0_i32_286 = arith.constant 0 : i32
    %c511_i32_287 = arith.constant 511 : i32
    %543 = arith.maxsi %c0_i32_286, %542 : i32
    %544 = arith.minsi %c511_i32_287, %543 : i32
    %545 = arith.index_cast %544 : i32 to index
    %c0_288 = arith.constant 0 : index
    %546 = vector.load %arg2[%545, %c0_288] : memref<512x128xf32, #tpu.memory_space<vmem>>, vector<1x128xf32>
    %547 = arith.addf %538, %546 : vector<1x128xf32>
    %c12_i32_289 = arith.constant 12 : i32
    %c48_i32_290 = arith.constant 48 : i32
    %548 = arith.addi %0, %c48_i32_290 : i32
    %549 = arith.addi %548, %c12_i32_289 : i32
    %550 = arith.index_cast %549 : i32 to index
    %551 = memref.load %arg1[%550] : memref<256xi32, #tpu.memory_space<smem>>
    %c0_i32_291 = arith.constant 0 : i32
    %c511_i32_292 = arith.constant 511 : i32
    %552 = arith.maxsi %c0_i32_291, %551 : i32
    %553 = arith.minsi %c511_i32_292, %552 : i32
    %554 = arith.index_cast %553 : i32 to index
    %c0_293 = arith.constant 0 : index
    %555 = vector.load %arg2[%554, %c0_293] : memref<512x128xf32, #tpu.memory_space<vmem>>, vector<1x128xf32>
    %556 = arith.addf %547, %555 : vector<1x128xf32>
    %c13_i32_294 = arith.constant 13 : i32
    %c48_i32_295 = arith.constant 48 : i32
    %557 = arith.addi %0, %c48_i32_295 : i32
    %558 = arith.addi %557, %c13_i32_294 : i32
    %559 = arith.index_cast %558 : i32 to index
    %560 = memref.load %arg1[%559] : memref<256xi32, #tpu.memory_space<smem>>
    %c0_i32_296 = arith.constant 0 : i32
    %c511_i32_297 = arith.constant 511 : i32
    %561 = arith.maxsi %c0_i32_296, %560 : i32
    %562 = arith.minsi %c511_i32_297, %561 : i32
    %563 = arith.index_cast %562 : i32 to index
    %c0_298 = arith.constant 0 : index
    %564 = vector.load %arg2[%563, %c0_298] : memref<512x128xf32, #tpu.memory_space<vmem>>, vector<1x128xf32>
    %565 = arith.addf %556, %564 : vector<1x128xf32>
    %c14_i32_299 = arith.constant 14 : i32
    %c48_i32_300 = arith.constant 48 : i32
    %566 = arith.addi %0, %c48_i32_300 : i32
    %567 = arith.addi %566, %c14_i32_299 : i32
    %568 = arith.index_cast %567 : i32 to index
    %569 = memref.load %arg1[%568] : memref<256xi32, #tpu.memory_space<smem>>
    %c0_i32_301 = arith.constant 0 : i32
    %c511_i32_302 = arith.constant 511 : i32
    %570 = arith.maxsi %c0_i32_301, %569 : i32
    %571 = arith.minsi %c511_i32_302, %570 : i32
    %572 = arith.index_cast %571 : i32 to index
    %c0_303 = arith.constant 0 : index
    %573 = vector.load %arg2[%572, %c0_303] : memref<512x128xf32, #tpu.memory_space<vmem>>, vector<1x128xf32>
    %574 = arith.addf %565, %573 : vector<1x128xf32>
    %c15_i32_304 = arith.constant 15 : i32
    %c48_i32_305 = arith.constant 48 : i32
    %575 = arith.addi %0, %c48_i32_305 : i32
    %576 = arith.addi %575, %c15_i32_304 : i32
    %577 = arith.index_cast %576 : i32 to index
    %578 = memref.load %arg1[%577] : memref<256xi32, #tpu.memory_space<smem>>
    %c0_i32_306 = arith.constant 0 : i32
    %c511_i32_307 = arith.constant 511 : i32
    %579 = arith.maxsi %c0_i32_306, %578 : i32
    %580 = arith.minsi %c511_i32_307, %579 : i32
    %581 = arith.index_cast %580 : i32 to index
    %c0_308 = arith.constant 0 : index
    %582 = vector.load %arg2[%581, %c0_308] : memref<512x128xf32, #tpu.memory_space<vmem>>, vector<1x128xf32>
    %583 = arith.addf %574, %582 : vector<1x128xf32>
    %c16_i32_309 = arith.constant 16 : i32
    %c3 = arith.constant 3 : index
    %c0_310 = arith.constant 0 : index
    %584 = vector.load %arg6[%c3, %c0_310] : memref<8x128xf32, #tpu.memory_space<vmem>>, vector<1x128xf32>
    tpu.vector_store %arg6[%c3, %c0_310], %583 {strides = array<i32>} : memref<8x128xf32, #tpu.memory_space<vmem>>, vector<1x128xf32>,
    %cst_311 = arith.constant 0.000000e+00 : f32
    %585 = vector.broadcast %cst_311 : f32 to vector<1x128xf32>
    %c0_i32_312 = arith.constant 0 : i32
    %c64_i32 = arith.constant 64 : i32
    %586 = arith.addi %0, %c64_i32 : i32
    %587 = arith.addi %586, %c0_i32_312 : i32
    %588 = arith.index_cast %587 : i32 to index
    %589 = memref.load %arg1[%588] : memref<256xi32, #tpu.memory_space<smem>>
    %c0_i32_313 = arith.constant 0 : i32
    %c511_i32_314 = arith.constant 511 : i32
    %590 = arith.maxsi %c0_i32_313, %589 : i32
    %591 = arith.minsi %c511_i32_314, %590 : i32
    %592 = arith.index_cast %591 : i32 to index
    %c0_315 = arith.constant 0 : index
    %593 = vector.load %arg2[%592, %c0_315] : memref<512x128xf32, #tpu.memory_space<vmem>>, vector<1x128xf32>
    %594 = arith.addf %585, %593 : vector<1x128xf32>
    %c1_i32_316 = arith.constant 1 : i32
    %c64_i32_317 = arith.constant 64 : i32
    %595 = arith.addi %0, %c64_i32_317 : i32
    %596 = arith.addi %595, %c1_i32_316 : i32
    %597 = arith.index_cast %596 : i32 to index
    %598 = memref.load %arg1[%597] : memref<256xi32, #tpu.memory_space<smem>>
    %c0_i32_318 = arith.constant 0 : i32
    %c511_i32_319 = arith.constant 511 : i32
    %599 = arith.maxsi %c0_i32_318, %598 : i32
    %600 = arith.minsi %c511_i32_319, %599 : i32
    %601 = arith.index_cast %600 : i32 to index
    %c0_320 = arith.constant 0 : index
    %602 = vector.load %arg2[%601, %c0_320] : memref<512x128xf32, #tpu.memory_space<vmem>>, vector<1x128xf32>
    %603 = arith.addf %594, %602 : vector<1x128xf32>
    %c2_i32_321 = arith.constant 2 : i32
    %c64_i32_322 = arith.constant 64 : i32
    %604 = arith.addi %0, %c64_i32_322 : i32
    %605 = arith.addi %604, %c2_i32_321 : i32
    %606 = arith.index_cast %605 : i32 to index
    %607 = memref.load %arg1[%606] : memref<256xi32, #tpu.memory_space<smem>>
    %c0_i32_323 = arith.constant 0 : i32
    %c511_i32_324 = arith.constant 511 : i32
    %608 = arith.maxsi %c0_i32_323, %607 : i32
    %609 = arith.minsi %c511_i32_324, %608 : i32
    %610 = arith.index_cast %609 : i32 to index
    %c0_325 = arith.constant 0 : index
    %611 = vector.load %arg2[%610, %c0_325] : memref<512x128xf32, #tpu.memory_space<vmem>>, vector<1x128xf32>
    %612 = arith.addf %603, %611 : vector<1x128xf32>
    %c3_i32_326 = arith.constant 3 : i32
    %c64_i32_327 = arith.constant 64 : i32
    %613 = arith.addi %0, %c64_i32_327 : i32
    %614 = arith.addi %613, %c3_i32_326 : i32
    %615 = arith.index_cast %614 : i32 to index
    %616 = memref.load %arg1[%615] : memref<256xi32, #tpu.memory_space<smem>>
    %c0_i32_328 = arith.constant 0 : i32
    %c511_i32_329 = arith.constant 511 : i32
    %617 = arith.maxsi %c0_i32_328, %616 : i32
    %618 = arith.minsi %c511_i32_329, %617 : i32
    %619 = arith.index_cast %618 : i32 to index
    %c0_330 = arith.constant 0 : index
    %620 = vector.load %arg2[%619, %c0_330] : memref<512x128xf32, #tpu.memory_space<vmem>>, vector<1x128xf32>
    %621 = arith.addf %612, %620 : vector<1x128xf32>
    %c4_i32_331 = arith.constant 4 : i32
    %c64_i32_332 = arith.constant 64 : i32
    %622 = arith.addi %0, %c64_i32_332 : i32
    %623 = arith.addi %622, %c4_i32_331 : i32
    %624 = arith.index_cast %623 : i32 to index
    %625 = memref.load %arg1[%624] : memref<256xi32, #tpu.memory_space<smem>>
    %c0_i32_333 = arith.constant 0 : i32
    %c511_i32_334 = arith.constant 511 : i32
    %626 = arith.maxsi %c0_i32_333, %625 : i32
    %627 = arith.minsi %c511_i32_334, %626 : i32
    %628 = arith.index_cast %627 : i32 to index
    %c0_335 = arith.constant 0 : index
    %629 = vector.load %arg2[%628, %c0_335] : memref<512x128xf32, #tpu.memory_space<vmem>>, vector<1x128xf32>
    %630 = arith.addf %621, %629 : vector<1x128xf32>
    %c5_i32_336 = arith.constant 5 : i32
    %c64_i32_337 = arith.constant 64 : i32
    %631 = arith.addi %0, %c64_i32_337 : i32
    %632 = arith.addi %631, %c5_i32_336 : i32
    %633 = arith.index_cast %632 : i32 to index
    %634 = memref.load %arg1[%633] : memref<256xi32, #tpu.memory_space<smem>>
    %c0_i32_338 = arith.constant 0 : i32
    %c511_i32_339 = arith.constant 511 : i32
    %635 = arith.maxsi %c0_i32_338, %634 : i32
    %636 = arith.minsi %c511_i32_339, %635 : i32
    %637 = arith.index_cast %636 : i32 to index
    %c0_340 = arith.constant 0 : index
    %638 = vector.load %arg2[%637, %c0_340] : memref<512x128xf32, #tpu.memory_space<vmem>>, vector<1x128xf32>
    %639 = arith.addf %630, %638 : vector<1x128xf32>
    %c6_i32_341 = arith.constant 6 : i32
    %c64_i32_342 = arith.constant 64 : i32
    %640 = arith.addi %0, %c64_i32_342 : i32
    %641 = arith.addi %640, %c6_i32_341 : i32
    %642 = arith.index_cast %641 : i32 to index
    %643 = memref.load %arg1[%642] : memref<256xi32, #tpu.memory_space<smem>>
    %c0_i32_343 = arith.constant 0 : i32
    %c511_i32_344 = arith.constant 511 : i32
    %644 = arith.maxsi %c0_i32_343, %643 : i32
    %645 = arith.minsi %c511_i32_344, %644 : i32
    %646 = arith.index_cast %645 : i32 to index
    %c0_345 = arith.constant 0 : index
    %647 = vector.load %arg2[%646, %c0_345] : memref<512x128xf32, #tpu.memory_space<vmem>>, vector<1x128xf32>
    %648 = arith.addf %639, %647 : vector<1x128xf32>
    %c7_i32_346 = arith.constant 7 : i32
    %c64_i32_347 = arith.constant 64 : i32
    %649 = arith.addi %0, %c64_i32_347 : i32
    %650 = arith.addi %649, %c7_i32_346 : i32
    %651 = arith.index_cast %650 : i32 to index
    %652 = memref.load %arg1[%651] : memref<256xi32, #tpu.memory_space<smem>>
    %c0_i32_348 = arith.constant 0 : i32
    %c511_i32_349 = arith.constant 511 : i32
    %653 = arith.maxsi %c0_i32_348, %652 : i32
    %654 = arith.minsi %c511_i32_349, %653 : i32
    %655 = arith.index_cast %654 : i32 to index
    %c0_350 = arith.constant 0 : index
    %656 = vector.load %arg2[%655, %c0_350] : memref<512x128xf32, #tpu.memory_space<vmem>>, vector<1x128xf32>
    %657 = arith.addf %648, %656 : vector<1x128xf32>
    %c8_i32_351 = arith.constant 8 : i32
    %c64_i32_352 = arith.constant 64 : i32
    %658 = arith.addi %0, %c64_i32_352 : i32
    %659 = arith.addi %658, %c8_i32_351 : i32
    %660 = arith.index_cast %659 : i32 to index
    %661 = memref.load %arg1[%660] : memref<256xi32, #tpu.memory_space<smem>>
    %c0_i32_353 = arith.constant 0 : i32
    %c511_i32_354 = arith.constant 511 : i32
    %662 = arith.maxsi %c0_i32_353, %661 : i32
    %663 = arith.minsi %c511_i32_354, %662 : i32
    %664 = arith.index_cast %663 : i32 to index
    %c0_355 = arith.constant 0 : index
    %665 = vector.load %arg2[%664, %c0_355] : memref<512x128xf32, #tpu.memory_space<vmem>>, vector<1x128xf32>
    %666 = arith.addf %657, %665 : vector<1x128xf32>
    %c9_i32_356 = arith.constant 9 : i32
    %c64_i32_357 = arith.constant 64 : i32
    %667 = arith.addi %0, %c64_i32_357 : i32
    %668 = arith.addi %667, %c9_i32_356 : i32
    %669 = arith.index_cast %668 : i32 to index
    %670 = memref.load %arg1[%669] : memref<256xi32, #tpu.memory_space<smem>>
    %c0_i32_358 = arith.constant 0 : i32
    %c511_i32_359 = arith.constant 511 : i32
    %671 = arith.maxsi %c0_i32_358, %670 : i32
    %672 = arith.minsi %c511_i32_359, %671 : i32
    %673 = arith.index_cast %672 : i32 to index
    %c0_360 = arith.constant 0 : index
    %674 = vector.load %arg2[%673, %c0_360] : memref<512x128xf32, #tpu.memory_space<vmem>>, vector<1x128xf32>
    %675 = arith.addf %666, %674 : vector<1x128xf32>
    %c10_i32_361 = arith.constant 10 : i32
    %c64_i32_362 = arith.constant 64 : i32
    %676 = arith.addi %0, %c64_i32_362 : i32
    %677 = arith.addi %676, %c10_i32_361 : i32
    %678 = arith.index_cast %677 : i32 to index
    %679 = memref.load %arg1[%678] : memref<256xi32, #tpu.memory_space<smem>>
    %c0_i32_363 = arith.constant 0 : i32
    %c511_i32_364 = arith.constant 511 : i32
    %680 = arith.maxsi %c0_i32_363, %679 : i32
    %681 = arith.minsi %c511_i32_364, %680 : i32
    %682 = arith.index_cast %681 : i32 to index
    %c0_365 = arith.constant 0 : index
    %683 = vector.load %arg2[%682, %c0_365] : memref<512x128xf32, #tpu.memory_space<vmem>>, vector<1x128xf32>
    %684 = arith.addf %675, %683 : vector<1x128xf32>
    %c11_i32_366 = arith.constant 11 : i32
    %c64_i32_367 = arith.constant 64 : i32
    %685 = arith.addi %0, %c64_i32_367 : i32
    %686 = arith.addi %685, %c11_i32_366 : i32
    %687 = arith.index_cast %686 : i32 to index
    %688 = memref.load %arg1[%687] : memref<256xi32, #tpu.memory_space<smem>>
    %c0_i32_368 = arith.constant 0 : i32
    %c511_i32_369 = arith.constant 511 : i32
    %689 = arith.maxsi %c0_i32_368, %688 : i32
    %690 = arith.minsi %c511_i32_369, %689 : i32
    %691 = arith.index_cast %690 : i32 to index
    %c0_370 = arith.constant 0 : index
    %692 = vector.load %arg2[%691, %c0_370] : memref<512x128xf32, #tpu.memory_space<vmem>>, vector<1x128xf32>
    %693 = arith.addf %684, %692 : vector<1x128xf32>
    %c12_i32_371 = arith.constant 12 : i32
    %c64_i32_372 = arith.constant 64 : i32
    %694 = arith.addi %0, %c64_i32_372 : i32
    %695 = arith.addi %694, %c12_i32_371 : i32
    %696 = arith.index_cast %695 : i32 to index
    %697 = memref.load %arg1[%696] : memref<256xi32, #tpu.memory_space<smem>>
    %c0_i32_373 = arith.constant 0 : i32
    %c511_i32_374 = arith.constant 511 : i32
    %698 = arith.maxsi %c0_i32_373, %697 : i32
    %699 = arith.minsi %c511_i32_374, %698 : i32
    %700 = arith.index_cast %699 : i32 to index
    %c0_375 = arith.constant 0 : index
    %701 = vector.load %arg2[%700, %c0_375] : memref<512x128xf32, #tpu.memory_space<vmem>>, vector<1x128xf32>
    %702 = arith.addf %693, %701 : vector<1x128xf32>
    %c13_i32_376 = arith.constant 13 : i32
    %c64_i32_377 = arith.constant 64 : i32
    %703 = arith.addi %0, %c64_i32_377 : i32
    %704 = arith.addi %703, %c13_i32_376 : i32
    %705 = arith.index_cast %704 : i32 to index
    %706 = memref.load %arg1[%705] : memref<256xi32, #tpu.memory_space<smem>>
    %c0_i32_378 = arith.constant 0 : i32
    %c511_i32_379 = arith.constant 511 : i32
    %707 = arith.maxsi %c0_i32_378, %706 : i32
    %708 = arith.minsi %c511_i32_379, %707 : i32
    %709 = arith.index_cast %708 : i32 to index
    %c0_380 = arith.constant 0 : index
    %710 = vector.load %arg2[%709, %c0_380] : memref<512x128xf32, #tpu.memory_space<vmem>>, vector<1x128xf32>
    %711 = arith.addf %702, %710 : vector<1x128xf32>
    %c14_i32_381 = arith.constant 14 : i32
    %c64_i32_382 = arith.constant 64 : i32
    %712 = arith.addi %0, %c64_i32_382 : i32
    %713 = arith.addi %712, %c14_i32_381 : i32
    %714 = arith.index_cast %713 : i32 to index
    %715 = memref.load %arg1[%714] : memref<256xi32, #tpu.memory_space<smem>>
    %c0_i32_383 = arith.constant 0 : i32
    %c511_i32_384 = arith.constant 511 : i32
    %716 = arith.maxsi %c0_i32_383, %715 : i32
    %717 = arith.minsi %c511_i32_384, %716 : i32
    %718 = arith.index_cast %717 : i32 to index
    %c0_385 = arith.constant 0 : index
    %719 = vector.load %arg2[%718, %c0_385] : memref<512x128xf32, #tpu.memory_space<vmem>>, vector<1x128xf32>
    %720 = arith.addf %711, %719 : vector<1x128xf32>
    %c15_i32_386 = arith.constant 15 : i32
    %c64_i32_387 = arith.constant 64 : i32
    %721 = arith.addi %0, %c64_i32_387 : i32
    %722 = arith.addi %721, %c15_i32_386 : i32
    %723 = arith.index_cast %722 : i32 to index
    %724 = memref.load %arg1[%723] : memref<256xi32, #tpu.memory_space<smem>>
    %c0_i32_388 = arith.constant 0 : i32
    %c511_i32_389 = arith.constant 511 : i32
    %725 = arith.maxsi %c0_i32_388, %724 : i32
    %726 = arith.minsi %c511_i32_389, %725 : i32
    %727 = arith.index_cast %726 : i32 to index
    %c0_390 = arith.constant 0 : index
    %728 = vector.load %arg2[%727, %c0_390] : memref<512x128xf32, #tpu.memory_space<vmem>>, vector<1x128xf32>
    %729 = arith.addf %720, %728 : vector<1x128xf32>
    %c16_i32_391 = arith.constant 16 : i32
    %c4 = arith.constant 4 : index
    %c0_392 = arith.constant 0 : index
    %730 = vector.load %arg6[%c4, %c0_392] : memref<8x128xf32, #tpu.memory_space<vmem>>, vector<1x128xf32>
    tpu.vector_store %arg6[%c4, %c0_392], %729 {strides = array<i32>} : memref<8x128xf32, #tpu.memory_space<vmem>>, vector<1x128xf32>,
    %cst_393 = arith.constant 0.000000e+00 : f32
    %731 = vector.broadcast %cst_393 : f32 to vector<1x128xf32>
    %c0_i32_394 = arith.constant 0 : i32
    %c80_i32 = arith.constant 80 : i32
    %732 = arith.addi %0, %c80_i32 : i32
    %733 = arith.addi %732, %c0_i32_394 : i32
    %734 = arith.index_cast %733 : i32 to index
    %735 = memref.load %arg1[%734] : memref<256xi32, #tpu.memory_space<smem>>
    %c0_i32_395 = arith.constant 0 : i32
    %c511_i32_396 = arith.constant 511 : i32
    %736 = arith.maxsi %c0_i32_395, %735 : i32
    %737 = arith.minsi %c511_i32_396, %736 : i32
    %738 = arith.index_cast %737 : i32 to index
    %c0_397 = arith.constant 0 : index
    %739 = vector.load %arg2[%738, %c0_397] : memref<512x128xf32, #tpu.memory_space<vmem>>, vector<1x128xf32>
    %740 = arith.addf %731, %739 : vector<1x128xf32>
    %c1_i32_398 = arith.constant 1 : i32
    %c80_i32_399 = arith.constant 80 : i32
    %741 = arith.addi %0, %c80_i32_399 : i32
    %742 = arith.addi %741, %c1_i32_398 : i32
    %743 = arith.index_cast %742 : i32 to index
    %744 = memref.load %arg1[%743] : memref<256xi32, #tpu.memory_space<smem>>
    %c0_i32_400 = arith.constant 0 : i32
    %c511_i32_401 = arith.constant 511 : i32
    %745 = arith.maxsi %c0_i32_400, %744 : i32
    %746 = arith.minsi %c511_i32_401, %745 : i32
    %747 = arith.index_cast %746 : i32 to index
    %c0_402 = arith.constant 0 : index
    %748 = vector.load %arg2[%747, %c0_402] : memref<512x128xf32, #tpu.memory_space<vmem>>, vector<1x128xf32>
    %749 = arith.addf %740, %748 : vector<1x128xf32>
    %c2_i32_403 = arith.constant 2 : i32
    %c80_i32_404 = arith.constant 80 : i32
    %750 = arith.addi %0, %c80_i32_404 : i32
    %751 = arith.addi %750, %c2_i32_403 : i32
    %752 = arith.index_cast %751 : i32 to index
    %753 = memref.load %arg1[%752] : memref<256xi32, #tpu.memory_space<smem>>
    %c0_i32_405 = arith.constant 0 : i32
    %c511_i32_406 = arith.constant 511 : i32
    %754 = arith.maxsi %c0_i32_405, %753 : i32
    %755 = arith.minsi %c511_i32_406, %754 : i32
    %756 = arith.index_cast %755 : i32 to index
    %c0_407 = arith.constant 0 : index
    %757 = vector.load %arg2[%756, %c0_407] : memref<512x128xf32, #tpu.memory_space<vmem>>, vector<1x128xf32>
    %758 = arith.addf %749, %757 : vector<1x128xf32>
    %c3_i32_408 = arith.constant 3 : i32
    %c80_i32_409 = arith.constant 80 : i32
    %759 = arith.addi %0, %c80_i32_409 : i32
    %760 = arith.addi %759, %c3_i32_408 : i32
    %761 = arith.index_cast %760 : i32 to index
    %762 = memref.load %arg1[%761] : memref<256xi32, #tpu.memory_space<smem>>
    %c0_i32_410 = arith.constant 0 : i32
    %c511_i32_411 = arith.constant 511 : i32
    %763 = arith.maxsi %c0_i32_410, %762 : i32
    %764 = arith.minsi %c511_i32_411, %763 : i32
    %765 = arith.index_cast %764 : i32 to index
    %c0_412 = arith.constant 0 : index
    %766 = vector.load %arg2[%765, %c0_412] : memref<512x128xf32, #tpu.memory_space<vmem>>, vector<1x128xf32>
    %767 = arith.addf %758, %766 : vector<1x128xf32>
    %c4_i32_413 = arith.constant 4 : i32
    %c80_i32_414 = arith.constant 80 : i32
    %768 = arith.addi %0, %c80_i32_414 : i32
    %769 = arith.addi %768, %c4_i32_413 : i32
    %770 = arith.index_cast %769 : i32 to index
    %771 = memref.load %arg1[%770] : memref<256xi32, #tpu.memory_space<smem>>
    %c0_i32_415 = arith.constant 0 : i32
    %c511_i32_416 = arith.constant 511 : i32
    %772 = arith.maxsi %c0_i32_415, %771 : i32
    %773 = arith.minsi %c511_i32_416, %772 : i32
    %774 = arith.index_cast %773 : i32 to index
    %c0_417 = arith.constant 0 : index
    %775 = vector.load %arg2[%774, %c0_417] : memref<512x128xf32, #tpu.memory_space<vmem>>, vector<1x128xf32>
    %776 = arith.addf %767, %775 : vector<1x128xf32>
    %c5_i32_418 = arith.constant 5 : i32
    %c80_i32_419 = arith.constant 80 : i32
    %777 = arith.addi %0, %c80_i32_419 : i32
    %778 = arith.addi %777, %c5_i32_418 : i32
    %779 = arith.index_cast %778 : i32 to index
    %780 = memref.load %arg1[%779] : memref<256xi32, #tpu.memory_space<smem>>
    %c0_i32_420 = arith.constant 0 : i32
    %c511_i32_421 = arith.constant 511 : i32
    %781 = arith.maxsi %c0_i32_420, %780 : i32
    %782 = arith.minsi %c511_i32_421, %781 : i32
    %783 = arith.index_cast %782 : i32 to index
    %c0_422 = arith.constant 0 : index
    %784 = vector.load %arg2[%783, %c0_422] : memref<512x128xf32, #tpu.memory_space<vmem>>, vector<1x128xf32>
    %785 = arith.addf %776, %784 : vector<1x128xf32>
    %c6_i32_423 = arith.constant 6 : i32
    %c80_i32_424 = arith.constant 80 : i32
    %786 = arith.addi %0, %c80_i32_424 : i32
    %787 = arith.addi %786, %c6_i32_423 : i32
    %788 = arith.index_cast %787 : i32 to index
    %789 = memref.load %arg1[%788] : memref<256xi32, #tpu.memory_space<smem>>
    %c0_i32_425 = arith.constant 0 : i32
    %c511_i32_426 = arith.constant 511 : i32
    %790 = arith.maxsi %c0_i32_425, %789 : i32
    %791 = arith.minsi %c511_i32_426, %790 : i32
    %792 = arith.index_cast %791 : i32 to index
    %c0_427 = arith.constant 0 : index
    %793 = vector.load %arg2[%792, %c0_427] : memref<512x128xf32, #tpu.memory_space<vmem>>, vector<1x128xf32>
    %794 = arith.addf %785, %793 : vector<1x128xf32>
    %c7_i32_428 = arith.constant 7 : i32
    %c80_i32_429 = arith.constant 80 : i32
    %795 = arith.addi %0, %c80_i32_429 : i32
    %796 = arith.addi %795, %c7_i32_428 : i32
    %797 = arith.index_cast %796 : i32 to index
    %798 = memref.load %arg1[%797] : memref<256xi32, #tpu.memory_space<smem>>
    %c0_i32_430 = arith.constant 0 : i32
    %c511_i32_431 = arith.constant 511 : i32
    %799 = arith.maxsi %c0_i32_430, %798 : i32
    %800 = arith.minsi %c511_i32_431, %799 : i32
    %801 = arith.index_cast %800 : i32 to index
    %c0_432 = arith.constant 0 : index
    %802 = vector.load %arg2[%801, %c0_432] : memref<512x128xf32, #tpu.memory_space<vmem>>, vector<1x128xf32>
    %803 = arith.addf %794, %802 : vector<1x128xf32>
    %c8_i32_433 = arith.constant 8 : i32
    %c80_i32_434 = arith.constant 80 : i32
    %804 = arith.addi %0, %c80_i32_434 : i32
    %805 = arith.addi %804, %c8_i32_433 : i32
    %806 = arith.index_cast %805 : i32 to index
    %807 = memref.load %arg1[%806] : memref<256xi32, #tpu.memory_space<smem>>
    %c0_i32_435 = arith.constant 0 : i32
    %c511_i32_436 = arith.constant 511 : i32
    %808 = arith.maxsi %c0_i32_435, %807 : i32
    %809 = arith.minsi %c511_i32_436, %808 : i32
    %810 = arith.index_cast %809 : i32 to index
    %c0_437 = arith.constant 0 : index
    %811 = vector.load %arg2[%810, %c0_437] : memref<512x128xf32, #tpu.memory_space<vmem>>, vector<1x128xf32>
    %812 = arith.addf %803, %811 : vector<1x128xf32>
    %c9_i32_438 = arith.constant 9 : i32
    %c80_i32_439 = arith.constant 80 : i32
    %813 = arith.addi %0, %c80_i32_439 : i32
    %814 = arith.addi %813, %c9_i32_438 : i32
    %815 = arith.index_cast %814 : i32 to index
    %816 = memref.load %arg1[%815] : memref<256xi32, #tpu.memory_space<smem>>
    %c0_i32_440 = arith.constant 0 : i32
    %c511_i32_441 = arith.constant 511 : i32
    %817 = arith.maxsi %c0_i32_440, %816 : i32
    %818 = arith.minsi %c511_i32_441, %817 : i32
    %819 = arith.index_cast %818 : i32 to index
    %c0_442 = arith.constant 0 : index
    %820 = vector.load %arg2[%819, %c0_442] : memref<512x128xf32, #tpu.memory_space<vmem>>, vector<1x128xf32>
    %821 = arith.addf %812, %820 : vector<1x128xf32>
    %c10_i32_443 = arith.constant 10 : i32
    %c80_i32_444 = arith.constant 80 : i32
    %822 = arith.addi %0, %c80_i32_444 : i32
    %823 = arith.addi %822, %c10_i32_443 : i32
    %824 = arith.index_cast %823 : i32 to index
    %825 = memref.load %arg1[%824] : memref<256xi32, #tpu.memory_space<smem>>
    %c0_i32_445 = arith.constant 0 : i32
    %c511_i32_446 = arith.constant 511 : i32
    %826 = arith.maxsi %c0_i32_445, %825 : i32
    %827 = arith.minsi %c511_i32_446, %826 : i32
    %828 = arith.index_cast %827 : i32 to index
    %c0_447 = arith.constant 0 : index
    %829 = vector.load %arg2[%828, %c0_447] : memref<512x128xf32, #tpu.memory_space<vmem>>, vector<1x128xf32>
    %830 = arith.addf %821, %829 : vector<1x128xf32>
    %c11_i32_448 = arith.constant 11 : i32
    %c80_i32_449 = arith.constant 80 : i32
    %831 = arith.addi %0, %c80_i32_449 : i32
    %832 = arith.addi %831, %c11_i32_448 : i32
    %833 = arith.index_cast %832 : i32 to index
    %834 = memref.load %arg1[%833] : memref<256xi32, #tpu.memory_space<smem>>
    %c0_i32_450 = arith.constant 0 : i32
    %c511_i32_451 = arith.constant 511 : i32
    %835 = arith.maxsi %c0_i32_450, %834 : i32
    %836 = arith.minsi %c511_i32_451, %835 : i32
    %837 = arith.index_cast %836 : i32 to index
    %c0_452 = arith.constant 0 : index
    %838 = vector.load %arg2[%837, %c0_452] : memref<512x128xf32, #tpu.memory_space<vmem>>, vector<1x128xf32>
    %839 = arith.addf %830, %838 : vector<1x128xf32>
    %c12_i32_453 = arith.constant 12 : i32
    %c80_i32_454 = arith.constant 80 : i32
    %840 = arith.addi %0, %c80_i32_454 : i32
    %841 = arith.addi %840, %c12_i32_453 : i32
    %842 = arith.index_cast %841 : i32 to index
    %843 = memref.load %arg1[%842] : memref<256xi32, #tpu.memory_space<smem>>
    %c0_i32_455 = arith.constant 0 : i32
    %c511_i32_456 = arith.constant 511 : i32
    %844 = arith.maxsi %c0_i32_455, %843 : i32
    %845 = arith.minsi %c511_i32_456, %844 : i32
    %846 = arith.index_cast %845 : i32 to index
    %c0_457 = arith.constant 0 : index
    %847 = vector.load %arg2[%846, %c0_457] : memref<512x128xf32, #tpu.memory_space<vmem>>, vector<1x128xf32>
    %848 = arith.addf %839, %847 : vector<1x128xf32>
    %c13_i32_458 = arith.constant 13 : i32
    %c80_i32_459 = arith.constant 80 : i32
    %849 = arith.addi %0, %c80_i32_459 : i32
    %850 = arith.addi %849, %c13_i32_458 : i32
    %851 = arith.index_cast %850 : i32 to index
    %852 = memref.load %arg1[%851] : memref<256xi32, #tpu.memory_space<smem>>
    %c0_i32_460 = arith.constant 0 : i32
    %c511_i32_461 = arith.constant 511 : i32
    %853 = arith.maxsi %c0_i32_460, %852 : i32
    %854 = arith.minsi %c511_i32_461, %853 : i32
    %855 = arith.index_cast %854 : i32 to index
    %c0_462 = arith.constant 0 : index
    %856 = vector.load %arg2[%855, %c0_462] : memref<512x128xf32, #tpu.memory_space<vmem>>, vector<1x128xf32>
    %857 = arith.addf %848, %856 : vector<1x128xf32>
    %c14_i32_463 = arith.constant 14 : i32
    %c80_i32_464 = arith.constant 80 : i32
    %858 = arith.addi %0, %c80_i32_464 : i32
    %859 = arith.addi %858, %c14_i32_463 : i32
    %860 = arith.index_cast %859 : i32 to index
    %861 = memref.load %arg1[%860] : memref<256xi32, #tpu.memory_space<smem>>
    %c0_i32_465 = arith.constant 0 : i32
    %c511_i32_466 = arith.constant 511 : i32
    %862 = arith.maxsi %c0_i32_465, %861 : i32
    %863 = arith.minsi %c511_i32_466, %862 : i32
    %864 = arith.index_cast %863 : i32 to index
    %c0_467 = arith.constant 0 : index
    %865 = vector.load %arg2[%864, %c0_467] : memref<512x128xf32, #tpu.memory_space<vmem>>, vector<1x128xf32>
    %866 = arith.addf %857, %865 : vector<1x128xf32>
    %c15_i32_468 = arith.constant 15 : i32
    %c80_i32_469 = arith.constant 80 : i32
    %867 = arith.addi %0, %c80_i32_469 : i32
    %868 = arith.addi %867, %c15_i32_468 : i32
    %869 = arith.index_cast %868 : i32 to index
    %870 = memref.load %arg1[%869] : memref<256xi32, #tpu.memory_space<smem>>
    %c0_i32_470 = arith.constant 0 : i32
    %c511_i32_471 = arith.constant 511 : i32
    %871 = arith.maxsi %c0_i32_470, %870 : i32
    %872 = arith.minsi %c511_i32_471, %871 : i32
    %873 = arith.index_cast %872 : i32 to index
    %c0_472 = arith.constant 0 : index
    %874 = vector.load %arg2[%873, %c0_472] : memref<512x128xf32, #tpu.memory_space<vmem>>, vector<1x128xf32>
    %875 = arith.addf %866, %874 : vector<1x128xf32>
    %c16_i32_473 = arith.constant 16 : i32
    %c5 = arith.constant 5 : index
    %c0_474 = arith.constant 0 : index
    %876 = vector.load %arg6[%c5, %c0_474] : memref<8x128xf32, #tpu.memory_space<vmem>>, vector<1x128xf32>
    tpu.vector_store %arg6[%c5, %c0_474], %875 {strides = array<i32>} : memref<8x128xf32, #tpu.memory_space<vmem>>, vector<1x128xf32>,
    %cst_475 = arith.constant 0.000000e+00 : f32
    %877 = vector.broadcast %cst_475 : f32 to vector<1x128xf32>
    %c0_i32_476 = arith.constant 0 : i32
    %c96_i32 = arith.constant 96 : i32
    %878 = arith.addi %0, %c96_i32 : i32
    %879 = arith.addi %878, %c0_i32_476 : i32
    %880 = arith.index_cast %879 : i32 to index
    %881 = memref.load %arg1[%880] : memref<256xi32, #tpu.memory_space<smem>>
    %c0_i32_477 = arith.constant 0 : i32
    %c511_i32_478 = arith.constant 511 : i32
    %882 = arith.maxsi %c0_i32_477, %881 : i32
    %883 = arith.minsi %c511_i32_478, %882 : i32
    %884 = arith.index_cast %883 : i32 to index
    %c0_479 = arith.constant 0 : index
    %885 = vector.load %arg2[%884, %c0_479] : memref<512x128xf32, #tpu.memory_space<vmem>>, vector<1x128xf32>
    %886 = arith.addf %877, %885 : vector<1x128xf32>
    %c1_i32_480 = arith.constant 1 : i32
    %c96_i32_481 = arith.constant 96 : i32
    %887 = arith.addi %0, %c96_i32_481 : i32
    %888 = arith.addi %887, %c1_i32_480 : i32
    %889 = arith.index_cast %888 : i32 to index
    %890 = memref.load %arg1[%889] : memref<256xi32, #tpu.memory_space<smem>>
    %c0_i32_482 = arith.constant 0 : i32
    %c511_i32_483 = arith.constant 511 : i32
    %891 = arith.maxsi %c0_i32_482, %890 : i32
    %892 = arith.minsi %c511_i32_483, %891 : i32
    %893 = arith.index_cast %892 : i32 to index
    %c0_484 = arith.constant 0 : index
    %894 = vector.load %arg2[%893, %c0_484] : memref<512x128xf32, #tpu.memory_space<vmem>>, vector<1x128xf32>
    %895 = arith.addf %886, %894 : vector<1x128xf32>
    %c2_i32_485 = arith.constant 2 : i32
    %c96_i32_486 = arith.constant 96 : i32
    %896 = arith.addi %0, %c96_i32_486 : i32
    %897 = arith.addi %896, %c2_i32_485 : i32
    %898 = arith.index_cast %897 : i32 to index
    %899 = memref.load %arg1[%898] : memref<256xi32, #tpu.memory_space<smem>>
    %c0_i32_487 = arith.constant 0 : i32
    %c511_i32_488 = arith.constant 511 : i32
    %900 = arith.maxsi %c0_i32_487, %899 : i32
    %901 = arith.minsi %c511_i32_488, %900 : i32
    %902 = arith.index_cast %901 : i32 to index
    %c0_489 = arith.constant 0 : index
    %903 = vector.load %arg2[%902, %c0_489] : memref<512x128xf32, #tpu.memory_space<vmem>>, vector<1x128xf32>
    %904 = arith.addf %895, %903 : vector<1x128xf32>
    %c3_i32_490 = arith.constant 3 : i32
    %c96_i32_491 = arith.constant 96 : i32
    %905 = arith.addi %0, %c96_i32_491 : i32
    %906 = arith.addi %905, %c3_i32_490 : i32
    %907 = arith.index_cast %906 : i32 to index
    %908 = memref.load %arg1[%907] : memref<256xi32, #tpu.memory_space<smem>>
    %c0_i32_492 = arith.constant 0 : i32
    %c511_i32_493 = arith.constant 511 : i32
    %909 = arith.maxsi %c0_i32_492, %908 : i32
    %910 = arith.minsi %c511_i32_493, %909 : i32
    %911 = arith.index_cast %910 : i32 to index
    %c0_494 = arith.constant 0 : index
    %912 = vector.load %arg2[%911, %c0_494] : memref<512x128xf32, #tpu.memory_space<vmem>>, vector<1x128xf32>
    %913 = arith.addf %904, %912 : vector<1x128xf32>
    %c4_i32_495 = arith.constant 4 : i32
    %c96_i32_496 = arith.constant 96 : i32
    %914 = arith.addi %0, %c96_i32_496 : i32
    %915 = arith.addi %914, %c4_i32_495 : i32
    %916 = arith.index_cast %915 : i32 to index
    %917 = memref.load %arg1[%916] : memref<256xi32, #tpu.memory_space<smem>>
    %c0_i32_497 = arith.constant 0 : i32
    %c511_i32_498 = arith.constant 511 : i32
    %918 = arith.maxsi %c0_i32_497, %917 : i32
    %919 = arith.minsi %c511_i32_498, %918 : i32
    %920 = arith.index_cast %919 : i32 to index
    %c0_499 = arith.constant 0 : index
    %921 = vector.load %arg2[%920, %c0_499] : memref<512x128xf32, #tpu.memory_space<vmem>>, vector<1x128xf32>
    %922 = arith.addf %913, %921 : vector<1x128xf32>
    %c5_i32_500 = arith.constant 5 : i32
    %c96_i32_501 = arith.constant 96 : i32
    %923 = arith.addi %0, %c96_i32_501 : i32
    %924 = arith.addi %923, %c5_i32_500 : i32
    %925 = arith.index_cast %924 : i32 to index
    %926 = memref.load %arg1[%925] : memref<256xi32, #tpu.memory_space<smem>>
    %c0_i32_502 = arith.constant 0 : i32
    %c511_i32_503 = arith.constant 511 : i32
    %927 = arith.maxsi %c0_i32_502, %926 : i32
    %928 = arith.minsi %c511_i32_503, %927 : i32
    %929 = arith.index_cast %928 : i32 to index
    %c0_504 = arith.constant 0 : index
    %930 = vector.load %arg2[%929, %c0_504] : memref<512x128xf32, #tpu.memory_space<vmem>>, vector<1x128xf32>
    %931 = arith.addf %922, %930 : vector<1x128xf32>
    %c6_i32_505 = arith.constant 6 : i32
    %c96_i32_506 = arith.constant 96 : i32
    %932 = arith.addi %0, %c96_i32_506 : i32
    %933 = arith.addi %932, %c6_i32_505 : i32
    %934 = arith.index_cast %933 : i32 to index
    %935 = memref.load %arg1[%934] : memref<256xi32, #tpu.memory_space<smem>>
    %c0_i32_507 = arith.constant 0 : i32
    %c511_i32_508 = arith.constant 511 : i32
    %936 = arith.maxsi %c0_i32_507, %935 : i32
    %937 = arith.minsi %c511_i32_508, %936 : i32
    %938 = arith.index_cast %937 : i32 to index
    %c0_509 = arith.constant 0 : index
    %939 = vector.load %arg2[%938, %c0_509] : memref<512x128xf32, #tpu.memory_space<vmem>>, vector<1x128xf32>
    %940 = arith.addf %931, %939 : vector<1x128xf32>
    %c7_i32_510 = arith.constant 7 : i32
    %c96_i32_511 = arith.constant 96 : i32
    %941 = arith.addi %0, %c96_i32_511 : i32
    %942 = arith.addi %941, %c7_i32_510 : i32
    %943 = arith.index_cast %942 : i32 to index
    %944 = memref.load %arg1[%943] : memref<256xi32, #tpu.memory_space<smem>>
    %c0_i32_512 = arith.constant 0 : i32
    %c511_i32_513 = arith.constant 511 : i32
    %945 = arith.maxsi %c0_i32_512, %944 : i32
    %946 = arith.minsi %c511_i32_513, %945 : i32
    %947 = arith.index_cast %946 : i32 to index
    %c0_514 = arith.constant 0 : index
    %948 = vector.load %arg2[%947, %c0_514] : memref<512x128xf32, #tpu.memory_space<vmem>>, vector<1x128xf32>
    %949 = arith.addf %940, %948 : vector<1x128xf32>
    %c8_i32_515 = arith.constant 8 : i32
    %c96_i32_516 = arith.constant 96 : i32
    %950 = arith.addi %0, %c96_i32_516 : i32
    %951 = arith.addi %950, %c8_i32_515 : i32
    %952 = arith.index_cast %951 : i32 to index
    %953 = memref.load %arg1[%952] : memref<256xi32, #tpu.memory_space<smem>>
    %c0_i32_517 = arith.constant 0 : i32
    %c511_i32_518 = arith.constant 511 : i32
    %954 = arith.maxsi %c0_i32_517, %953 : i32
    %955 = arith.minsi %c511_i32_518, %954 : i32
    %956 = arith.index_cast %955 : i32 to index
    %c0_519 = arith.constant 0 : index
    %957 = vector.load %arg2[%956, %c0_519] : memref<512x128xf32, #tpu.memory_space<vmem>>, vector<1x128xf32>
    %958 = arith.addf %949, %957 : vector<1x128xf32>
    %c9_i32_520 = arith.constant 9 : i32
    %c96_i32_521 = arith.constant 96 : i32
    %959 = arith.addi %0, %c96_i32_521 : i32
    %960 = arith.addi %959, %c9_i32_520 : i32
    %961 = arith.index_cast %960 : i32 to index
    %962 = memref.load %arg1[%961] : memref<256xi32, #tpu.memory_space<smem>>
    %c0_i32_522 = arith.constant 0 : i32
    %c511_i32_523 = arith.constant 511 : i32
    %963 = arith.maxsi %c0_i32_522, %962 : i32
    %964 = arith.minsi %c511_i32_523, %963 : i32
    %965 = arith.index_cast %964 : i32 to index
    %c0_524 = arith.constant 0 : index
    %966 = vector.load %arg2[%965, %c0_524] : memref<512x128xf32, #tpu.memory_space<vmem>>, vector<1x128xf32>
    %967 = arith.addf %958, %966 : vector<1x128xf32>
    %c10_i32_525 = arith.constant 10 : i32
    %c96_i32_526 = arith.constant 96 : i32
    %968 = arith.addi %0, %c96_i32_526 : i32
    %969 = arith.addi %968, %c10_i32_525 : i32
    %970 = arith.index_cast %969 : i32 to index
    %971 = memref.load %arg1[%970] : memref<256xi32, #tpu.memory_space<smem>>
    %c0_i32_527 = arith.constant 0 : i32
    %c511_i32_528 = arith.constant 511 : i32
    %972 = arith.maxsi %c0_i32_527, %971 : i32
    %973 = arith.minsi %c511_i32_528, %972 : i32
    %974 = arith.index_cast %973 : i32 to index
    %c0_529 = arith.constant 0 : index
    %975 = vector.load %arg2[%974, %c0_529] : memref<512x128xf32, #tpu.memory_space<vmem>>, vector<1x128xf32>
    %976 = arith.addf %967, %975 : vector<1x128xf32>
    %c11_i32_530 = arith.constant 11 : i32
    %c96_i32_531 = arith.constant 96 : i32
    %977 = arith.addi %0, %c96_i32_531 : i32
    %978 = arith.addi %977, %c11_i32_530 : i32
    %979 = arith.index_cast %978 : i32 to index
    %980 = memref.load %arg1[%979] : memref<256xi32, #tpu.memory_space<smem>>
    %c0_i32_532 = arith.constant 0 : i32
    %c511_i32_533 = arith.constant 511 : i32
    %981 = arith.maxsi %c0_i32_532, %980 : i32
    %982 = arith.minsi %c511_i32_533, %981 : i32
    %983 = arith.index_cast %982 : i32 to index
    %c0_534 = arith.constant 0 : index
    %984 = vector.load %arg2[%983, %c0_534] : memref<512x128xf32, #tpu.memory_space<vmem>>, vector<1x128xf32>
    %985 = arith.addf %976, %984 : vector<1x128xf32>
    %c12_i32_535 = arith.constant 12 : i32
    %c96_i32_536 = arith.constant 96 : i32
    %986 = arith.addi %0, %c96_i32_536 : i32
    %987 = arith.addi %986, %c12_i32_535 : i32
    %988 = arith.index_cast %987 : i32 to index
    %989 = memref.load %arg1[%988] : memref<256xi32, #tpu.memory_space<smem>>
    %c0_i32_537 = arith.constant 0 : i32
    %c511_i32_538 = arith.constant 511 : i32
    %990 = arith.maxsi %c0_i32_537, %989 : i32
    %991 = arith.minsi %c511_i32_538, %990 : i32
    %992 = arith.index_cast %991 : i32 to index
    %c0_539 = arith.constant 0 : index
    %993 = vector.load %arg2[%992, %c0_539] : memref<512x128xf32, #tpu.memory_space<vmem>>, vector<1x128xf32>
    %994 = arith.addf %985, %993 : vector<1x128xf32>
    %c13_i32_540 = arith.constant 13 : i32
    %c96_i32_541 = arith.constant 96 : i32
    %995 = arith.addi %0, %c96_i32_541 : i32
    %996 = arith.addi %995, %c13_i32_540 : i32
    %997 = arith.index_cast %996 : i32 to index
    %998 = memref.load %arg1[%997] : memref<256xi32, #tpu.memory_space<smem>>
    %c0_i32_542 = arith.constant 0 : i32
    %c511_i32_543 = arith.constant 511 : i32
    %999 = arith.maxsi %c0_i32_542, %998 : i32
    %1000 = arith.minsi %c511_i32_543, %999 : i32
    %1001 = arith.index_cast %1000 : i32 to index
    %c0_544 = arith.constant 0 : index
    %1002 = vector.load %arg2[%1001, %c0_544] : memref<512x128xf32, #tpu.memory_space<vmem>>, vector<1x128xf32>
    %1003 = arith.addf %994, %1002 : vector<1x128xf32>
    %c14_i32_545 = arith.constant 14 : i32
    %c96_i32_546 = arith.constant 96 : i32
    %1004 = arith.addi %0, %c96_i32_546 : i32
    %1005 = arith.addi %1004, %c14_i32_545 : i32
    %1006 = arith.index_cast %1005 : i32 to index
    %1007 = memref.load %arg1[%1006] : memref<256xi32, #tpu.memory_space<smem>>
    %c0_i32_547 = arith.constant 0 : i32
    %c511_i32_548 = arith.constant 511 : i32
    %1008 = arith.maxsi %c0_i32_547, %1007 : i32
    %1009 = arith.minsi %c511_i32_548, %1008 : i32
    %1010 = arith.index_cast %1009 : i32 to index
    %c0_549 = arith.constant 0 : index
    %1011 = vector.load %arg2[%1010, %c0_549] : memref<512x128xf32, #tpu.memory_space<vmem>>, vector<1x128xf32>
    %1012 = arith.addf %1003, %1011 : vector<1x128xf32>
    %c15_i32_550 = arith.constant 15 : i32
    %c96_i32_551 = arith.constant 96 : i32
    %1013 = arith.addi %0, %c96_i32_551 : i32
    %1014 = arith.addi %1013, %c15_i32_550 : i32
    %1015 = arith.index_cast %1014 : i32 to index
    %1016 = memref.load %arg1[%1015] : memref<256xi32, #tpu.memory_space<smem>>
    %c0_i32_552 = arith.constant 0 : i32
    %c511_i32_553 = arith.constant 511 : i32
    %1017 = arith.maxsi %c0_i32_552, %1016 : i32
    %1018 = arith.minsi %c511_i32_553, %1017 : i32
    %1019 = arith.index_cast %1018 : i32 to index
    %c0_554 = arith.constant 0 : index
    %1020 = vector.load %arg2[%1019, %c0_554] : memref<512x128xf32, #tpu.memory_space<vmem>>, vector<1x128xf32>
    %1021 = arith.addf %1012, %1020 : vector<1x128xf32>
    %c16_i32_555 = arith.constant 16 : i32
    %c6 = arith.constant 6 : index
    %c0_556 = arith.constant 0 : index
    %1022 = vector.load %arg6[%c6, %c0_556] : memref<8x128xf32, #tpu.memory_space<vmem>>, vector<1x128xf32>
    tpu.vector_store %arg6[%c6, %c0_556], %1021 {strides = array<i32>} : memref<8x128xf32, #tpu.memory_space<vmem>>, vector<1x128xf32>,
    %cst_557 = arith.constant 0.000000e+00 : f32
    %1023 = vector.broadcast %cst_557 : f32 to vector<1x128xf32>
    %c0_i32_558 = arith.constant 0 : i32
    %c112_i32 = arith.constant 112 : i32
    %1024 = arith.addi %0, %c112_i32 : i32
    %1025 = arith.addi %1024, %c0_i32_558 : i32
    %1026 = arith.index_cast %1025 : i32 to index
    %1027 = memref.load %arg1[%1026] : memref<256xi32, #tpu.memory_space<smem>>
    %c0_i32_559 = arith.constant 0 : i32
    %c511_i32_560 = arith.constant 511 : i32
    %1028 = arith.maxsi %c0_i32_559, %1027 : i32
    %1029 = arith.minsi %c511_i32_560, %1028 : i32
    %1030 = arith.index_cast %1029 : i32 to index
    %c0_561 = arith.constant 0 : index
    %1031 = vector.load %arg2[%1030, %c0_561] : memref<512x128xf32, #tpu.memory_space<vmem>>, vector<1x128xf32>
    %1032 = arith.addf %1023, %1031 : vector<1x128xf32>
    %c1_i32_562 = arith.constant 1 : i32
    %c112_i32_563 = arith.constant 112 : i32
    %1033 = arith.addi %0, %c112_i32_563 : i32
    %1034 = arith.addi %1033, %c1_i32_562 : i32
    %1035 = arith.index_cast %1034 : i32 to index
    %1036 = memref.load %arg1[%1035] : memref<256xi32, #tpu.memory_space<smem>>
    %c0_i32_564 = arith.constant 0 : i32
    %c511_i32_565 = arith.constant 511 : i32
    %1037 = arith.maxsi %c0_i32_564, %1036 : i32
    %1038 = arith.minsi %c511_i32_565, %1037 : i32
    %1039 = arith.index_cast %1038 : i32 to index
    %c0_566 = arith.constant 0 : index
    %1040 = vector.load %arg2[%1039, %c0_566] : memref<512x128xf32, #tpu.memory_space<vmem>>, vector<1x128xf32>
    %1041 = arith.addf %1032, %1040 : vector<1x128xf32>
    %c2_i32_567 = arith.constant 2 : i32
    %c112_i32_568 = arith.constant 112 : i32
    %1042 = arith.addi %0, %c112_i32_568 : i32
    %1043 = arith.addi %1042, %c2_i32_567 : i32
    %1044 = arith.index_cast %1043 : i32 to index
    %1045 = memref.load %arg1[%1044] : memref<256xi32, #tpu.memory_space<smem>>
    %c0_i32_569 = arith.constant 0 : i32
    %c511_i32_570 = arith.constant 511 : i32
    %1046 = arith.maxsi %c0_i32_569, %1045 : i32
    %1047 = arith.minsi %c511_i32_570, %1046 : i32
    %1048 = arith.index_cast %1047 : i32 to index
    %c0_571 = arith.constant 0 : index
    %1049 = vector.load %arg2[%1048, %c0_571] : memref<512x128xf32, #tpu.memory_space<vmem>>, vector<1x128xf32>
    %1050 = arith.addf %1041, %1049 : vector<1x128xf32>
    %c3_i32_572 = arith.constant 3 : i32
    %c112_i32_573 = arith.constant 112 : i32
    %1051 = arith.addi %0, %c112_i32_573 : i32
    %1052 = arith.addi %1051, %c3_i32_572 : i32
    %1053 = arith.index_cast %1052 : i32 to index
    %1054 = memref.load %arg1[%1053] : memref<256xi32, #tpu.memory_space<smem>>
    %c0_i32_574 = arith.constant 0 : i32
    %c511_i32_575 = arith.constant 511 : i32
    %1055 = arith.maxsi %c0_i32_574, %1054 : i32
    %1056 = arith.minsi %c511_i32_575, %1055 : i32
    %1057 = arith.index_cast %1056 : i32 to index
    %c0_576 = arith.constant 0 : index
    %1058 = vector.load %arg2[%1057, %c0_576] : memref<512x128xf32, #tpu.memory_space<vmem>>, vector<1x128xf32>
    %1059 = arith.addf %1050, %1058 : vector<1x128xf32>
    %c4_i32_577 = arith.constant 4 : i32
    %c112_i32_578 = arith.constant 112 : i32
    %1060 = arith.addi %0, %c112_i32_578 : i32
    %1061 = arith.addi %1060, %c4_i32_577 : i32
    %1062 = arith.index_cast %1061 : i32 to index
    %1063 = memref.load %arg1[%1062] : memref<256xi32, #tpu.memory_space<smem>>
    %c0_i32_579 = arith.constant 0 : i32
    %c511_i32_580 = arith.constant 511 : i32
    %1064 = arith.maxsi %c0_i32_579, %1063 : i32
    %1065 = arith.minsi %c511_i32_580, %1064 : i32
    %1066 = arith.index_cast %1065 : i32 to index
    %c0_581 = arith.constant 0 : index
    %1067 = vector.load %arg2[%1066, %c0_581] : memref<512x128xf32, #tpu.memory_space<vmem>>, vector<1x128xf32>
    %1068 = arith.addf %1059, %1067 : vector<1x128xf32>
    %c5_i32_582 = arith.constant 5 : i32
    %c112_i32_583 = arith.constant 112 : i32
    %1069 = arith.addi %0, %c112_i32_583 : i32
    %1070 = arith.addi %1069, %c5_i32_582 : i32
    %1071 = arith.index_cast %1070 : i32 to index
    %1072 = memref.load %arg1[%1071] : memref<256xi32, #tpu.memory_space<smem>>
    %c0_i32_584 = arith.constant 0 : i32
    %c511_i32_585 = arith.constant 511 : i32
    %1073 = arith.maxsi %c0_i32_584, %1072 : i32
    %1074 = arith.minsi %c511_i32_585, %1073 : i32
    %1075 = arith.index_cast %1074 : i32 to index
    %c0_586 = arith.constant 0 : index
    %1076 = vector.load %arg2[%1075, %c0_586] : memref<512x128xf32, #tpu.memory_space<vmem>>, vector<1x128xf32>
    %1077 = arith.addf %1068, %1076 : vector<1x128xf32>
    %c6_i32_587 = arith.constant 6 : i32
    %c112_i32_588 = arith.constant 112 : i32
    %1078 = arith.addi %0, %c112_i32_588 : i32
    %1079 = arith.addi %1078, %c6_i32_587 : i32
    %1080 = arith.index_cast %1079 : i32 to index
    %1081 = memref.load %arg1[%1080] : memref<256xi32, #tpu.memory_space<smem>>
    %c0_i32_589 = arith.constant 0 : i32
    %c511_i32_590 = arith.constant 511 : i32
    %1082 = arith.maxsi %c0_i32_589, %1081 : i32
    %1083 = arith.minsi %c511_i32_590, %1082 : i32
    %1084 = arith.index_cast %1083 : i32 to index
    %c0_591 = arith.constant 0 : index
    %1085 = vector.load %arg2[%1084, %c0_591] : memref<512x128xf32, #tpu.memory_space<vmem>>, vector<1x128xf32>
    %1086 = arith.addf %1077, %1085 : vector<1x128xf32>
    %c7_i32_592 = arith.constant 7 : i32
    %c112_i32_593 = arith.constant 112 : i32
    %1087 = arith.addi %0, %c112_i32_593 : i32
    %1088 = arith.addi %1087, %c7_i32_592 : i32
    %1089 = arith.index_cast %1088 : i32 to index
    %1090 = memref.load %arg1[%1089] : memref<256xi32, #tpu.memory_space<smem>>
    %c0_i32_594 = arith.constant 0 : i32
    %c511_i32_595 = arith.constant 511 : i32
    %1091 = arith.maxsi %c0_i32_594, %1090 : i32
    %1092 = arith.minsi %c511_i32_595, %1091 : i32
    %1093 = arith.index_cast %1092 : i32 to index
    %c0_596 = arith.constant 0 : index
    %1094 = vector.load %arg2[%1093, %c0_596] : memref<512x128xf32, #tpu.memory_space<vmem>>, vector<1x128xf32>
    %1095 = arith.addf %1086, %1094 : vector<1x128xf32>
    %c8_i32_597 = arith.constant 8 : i32
    %c112_i32_598 = arith.constant 112 : i32
    %1096 = arith.addi %0, %c112_i32_598 : i32
    %1097 = arith.addi %1096, %c8_i32_597 : i32
    %1098 = arith.index_cast %1097 : i32 to index
    %1099 = memref.load %arg1[%1098] : memref<256xi32, #tpu.memory_space<smem>>
    %c0_i32_599 = arith.constant 0 : i32
    %c511_i32_600 = arith.constant 511 : i32
    %1100 = arith.maxsi %c0_i32_599, %1099 : i32
    %1101 = arith.minsi %c511_i32_600, %1100 : i32
    %1102 = arith.index_cast %1101 : i32 to index
    %c0_601 = arith.constant 0 : index
    %1103 = vector.load %arg2[%1102, %c0_601] : memref<512x128xf32, #tpu.memory_space<vmem>>, vector<1x128xf32>
    %1104 = arith.addf %1095, %1103 : vector<1x128xf32>
    %c9_i32_602 = arith.constant 9 : i32
    %c112_i32_603 = arith.constant 112 : i32
    %1105 = arith.addi %0, %c112_i32_603 : i32
    %1106 = arith.addi %1105, %c9_i32_602 : i32
    %1107 = arith.index_cast %1106 : i32 to index
    %1108 = memref.load %arg1[%1107] : memref<256xi32, #tpu.memory_space<smem>>
    %c0_i32_604 = arith.constant 0 : i32
    %c511_i32_605 = arith.constant 511 : i32
    %1109 = arith.maxsi %c0_i32_604, %1108 : i32
    %1110 = arith.minsi %c511_i32_605, %1109 : i32
    %1111 = arith.index_cast %1110 : i32 to index
    %c0_606 = arith.constant 0 : index
    %1112 = vector.load %arg2[%1111, %c0_606] : memref<512x128xf32, #tpu.memory_space<vmem>>, vector<1x128xf32>
    %1113 = arith.addf %1104, %1112 : vector<1x128xf32>
    %c10_i32_607 = arith.constant 10 : i32
    %c112_i32_608 = arith.constant 112 : i32
    %1114 = arith.addi %0, %c112_i32_608 : i32
    %1115 = arith.addi %1114, %c10_i32_607 : i32
    %1116 = arith.index_cast %1115 : i32 to index
    %1117 = memref.load %arg1[%1116] : memref<256xi32, #tpu.memory_space<smem>>
    %c0_i32_609 = arith.constant 0 : i32
    %c511_i32_610 = arith.constant 511 : i32
    %1118 = arith.maxsi %c0_i32_609, %1117 : i32
    %1119 = arith.minsi %c511_i32_610, %1118 : i32
    %1120 = arith.index_cast %1119 : i32 to index
    %c0_611 = arith.constant 0 : index
    %1121 = vector.load %arg2[%1120, %c0_611] : memref<512x128xf32, #tpu.memory_space<vmem>>, vector<1x128xf32>
    %1122 = arith.addf %1113, %1121 : vector<1x128xf32>
    %c11_i32_612 = arith.constant 11 : i32
    %c112_i32_613 = arith.constant 112 : i32
    %1123 = arith.addi %0, %c112_i32_613 : i32
    %1124 = arith.addi %1123, %c11_i32_612 : i32
    %1125 = arith.index_cast %1124 : i32 to index
    %1126 = memref.load %arg1[%1125] : memref<256xi32, #tpu.memory_space<smem>>
    %c0_i32_614 = arith.constant 0 : i32
    %c511_i32_615 = arith.constant 511 : i32
    %1127 = arith.maxsi %c0_i32_614, %1126 : i32
    %1128 = arith.minsi %c511_i32_615, %1127 : i32
    %1129 = arith.index_cast %1128 : i32 to index
    %c0_616 = arith.constant 0 : index
    %1130 = vector.load %arg2[%1129, %c0_616] : memref<512x128xf32, #tpu.memory_space<vmem>>, vector<1x128xf32>
    %1131 = arith.addf %1122, %1130 : vector<1x128xf32>
    %c12_i32_617 = arith.constant 12 : i32
    %c112_i32_618 = arith.constant 112 : i32
    %1132 = arith.addi %0, %c112_i32_618 : i32
    %1133 = arith.addi %1132, %c12_i32_617 : i32
    %1134 = arith.index_cast %1133 : i32 to index
    %1135 = memref.load %arg1[%1134] : memref<256xi32, #tpu.memory_space<smem>>
    %c0_i32_619 = arith.constant 0 : i32
    %c511_i32_620 = arith.constant 511 : i32
    %1136 = arith.maxsi %c0_i32_619, %1135 : i32
    %1137 = arith.minsi %c511_i32_620, %1136 : i32
    %1138 = arith.index_cast %1137 : i32 to index
    %c0_621 = arith.constant 0 : index
    %1139 = vector.load %arg2[%1138, %c0_621] : memref<512x128xf32, #tpu.memory_space<vmem>>, vector<1x128xf32>
    %1140 = arith.addf %1131, %1139 : vector<1x128xf32>
    %c13_i32_622 = arith.constant 13 : i32
    %c112_i32_623 = arith.constant 112 : i32
    %1141 = arith.addi %0, %c112_i32_623 : i32
    %1142 = arith.addi %1141, %c13_i32_622 : i32
    %1143 = arith.index_cast %1142 : i32 to index
    %1144 = memref.load %arg1[%1143] : memref<256xi32, #tpu.memory_space<smem>>
    %c0_i32_624 = arith.constant 0 : i32
    %c511_i32_625 = arith.constant 511 : i32
    %1145 = arith.maxsi %c0_i32_624, %1144 : i32
    %1146 = arith.minsi %c511_i32_625, %1145 : i32
    %1147 = arith.index_cast %1146 : i32 to index
    %c0_626 = arith.constant 0 : index
    %1148 = vector.load %arg2[%1147, %c0_626] : memref<512x128xf32, #tpu.memory_space<vmem>>, vector<1x128xf32>
    %1149 = arith.addf %1140, %1148 : vector<1x128xf32>
    %c14_i32_627 = arith.constant 14 : i32
    %c112_i32_628 = arith.constant 112 : i32
    %1150 = arith.addi %0, %c112_i32_628 : i32
    %1151 = arith.addi %1150, %c14_i32_627 : i32
    %1152 = arith.index_cast %1151 : i32 to index
    %1153 = memref.load %arg1[%1152] : memref<256xi32, #tpu.memory_space<smem>>
    %c0_i32_629 = arith.constant 0 : i32
    %c511_i32_630 = arith.constant 511 : i32
    %1154 = arith.maxsi %c0_i32_629, %1153 : i32
    %1155 = arith.minsi %c511_i32_630, %1154 : i32
    %1156 = arith.index_cast %1155 : i32 to index
    %c0_631 = arith.constant 0 : index
    %1157 = vector.load %arg2[%1156, %c0_631] : memref<512x128xf32, #tpu.memory_space<vmem>>, vector<1x128xf32>
    %1158 = arith.addf %1149, %1157 : vector<1x128xf32>
    %c15_i32_632 = arith.constant 15 : i32
    %c112_i32_633 = arith.constant 112 : i32
    %1159 = arith.addi %0, %c112_i32_633 : i32
    %1160 = arith.addi %1159, %c15_i32_632 : i32
    %1161 = arith.index_cast %1160 : i32 to index
    %1162 = memref.load %arg1[%1161] : memref<256xi32, #tpu.memory_space<smem>>
    %c0_i32_634 = arith.constant 0 : i32
    %c511_i32_635 = arith.constant 511 : i32
    %1163 = arith.maxsi %c0_i32_634, %1162 : i32
    %1164 = arith.minsi %c511_i32_635, %1163 : i32
    %1165 = arith.index_cast %1164 : i32 to index
    %c0_636 = arith.constant 0 : index
    %1166 = vector.load %arg2[%1165, %c0_636] : memref<512x128xf32, #tpu.memory_space<vmem>>, vector<1x128xf32>
    %1167 = arith.addf %1158, %1166 : vector<1x128xf32>
    %c16_i32_637 = arith.constant 16 : i32
    %c7 = arith.constant 7 : index
    %c0_638 = arith.constant 0 : index
    %1168 = vector.load %arg6[%c7, %c0_638] : memref<8x128xf32, #tpu.memory_space<vmem>>, vector<1x128xf32>
    tpu.vector_store %arg6[%c7, %c0_638], %1167 {strides = array<i32>} : memref<8x128xf32, #tpu.memory_space<vmem>>, vector<1x128xf32>,
    %c0_639 = arith.constant 0 : index
    %c0_640 = arith.constant 0 : index
    %1169 = vector.load %arg6[%c0_639, %c0_640] : memref<8x128xf32, #tpu.memory_space<vmem>>, vector<8x128xf32>
    %cst_641 = arith.constant 6.250000e-02 : f32
    %1170 = vector.broadcast %cst_641 : f32 to vector<8x128xf32>
    %1171 = arith.mulf %1169, %1170 : vector<8x128xf32>
    %c0_642 = arith.constant 0 : index
    %c0_643 = arith.constant 0 : index
    %1172 = vector.load %arg3[%c0_642, %c0_643] : memref<128x128xf32, #tpu.memory_space<vmem>>, vector<128x128xf32>
    %cst_644 = arith.constant dense<0.000000e+00> : vector<8x128xf32>
    %1173 = tpu.matmul %1171, %1172, %cst_644 {dimension_numbers = #tpu.dot_dimension_numbers<[1], [0], [0], [1], [0, 0, 1, 1], [], []>} : vector<8x128xf32>, vector<128x128xf32>, vector<8x128xf32> -> vector<8x128xf32>
    %c0_645 = arith.constant 0 : index
    %c0_646 = arith.constant 0 : index
    %1174 = vector.load %arg4[%c0_645, %c0_646] : memref<1x128xf32, #tpu.memory_space<vmem>>, vector<1x128xf32>
    %1175 = vector.broadcast %1174 : vector<1x128xf32> to vector<8x128xf32>
    %1176 = arith.addf %1173, %1175 : vector<8x128xf32>
    %c0_647 = arith.constant 0 : index
    %c0_648 = arith.constant 0 : index
    %1177 = vector.load %arg5[%c0_647, %c0_648] : memref<8x128xf32, #tpu.memory_space<vmem>>, vector<8x128xf32>
    tpu.vector_store %arg5[%c0_647, %c0_648], %1176 {strides = array<i32>} : memref<8x128xf32, #tpu.memory_space<vmem>>, vector<8x128xf32>,
    return
  }
  func.func @transform_0(%arg0: i32, %arg1: memref<256xi32, #tpu.memory_space<smem>>) -> (i32, i32) {
    %c0_i32 = arith.constant 0 : i32
    %c0_i32_0 = arith.constant 0 : i32
    %c0_i32_1 = arith.constant 0 : i32
    return %c0_i32, %c0_i32_0 : i32, i32
  }
  func.func @transform_1(%arg0: i32, %arg1: memref<256xi32, #tpu.memory_space<smem>>) -> (i32, i32) {
    %c0_i32 = arith.constant 0 : i32
    %c0_i32_0 = arith.constant 0 : i32
    %c0_i32_1 = arith.constant 0 : i32
    return %c0_i32, %c0_i32_0 : i32, i32
  }
  func.func @transform_2(%arg0: i32, %arg1: memref<256xi32, #tpu.memory_space<smem>>) -> (i32, i32) {
    %c0_i32 = arith.constant 0 : i32
    %c0_i32_0 = arith.constant 0 : i32
    %c0_i32_1 = arith.constant 0 : i32
    return %c0_i32, %c0_i32_0 : i32, i32
  }
  func.func @transform_3(%arg0: i32, %arg1: memref<256xi32, #tpu.memory_space<smem>>) -> (i32, i32) {
    %c0_i32 = arith.constant 0 : i32
    %c0_i32_0 = arith.constant 0 : i32
    return %arg0, %c0_i32 : i32, i32
  }
}

</mosaic_0001>

<bundles_post_ra>
// kernel: tpu_custom_call.1
= control target key start
LH: loop header
LB: loop body
LE: loop exit
PB: predicated region body
PF: predicated region fallthrough
CT: control target
= control target key end

     0   :  { %s3545_s0 = inlined_call_operand.hbm [shape: s32[256], index: 0, kind: input, shape index: {}]   ;;  %s3546_s1 = inlined_call_operand.hbm [shape: f32[512,128], index: 1, kind: input, shape index: {}]   ;;  %s3547_s2 = inlined_call_operand.hbm [shape: f32[128,128], index: 2, kind: input, shape index: {}]   ;;  %s3548_s3 = inlined_call_operand.vmem [shape: f32[1,128], index: 3, kind: input, shape index: {}]   ;;  %s3549_s4 = inlined_call_operand.hbm [shape: f32[16,128], index: 4, kind: output, shape index: {}]  }
   0x1   :  { %s2703_s17 = scalar_lea.hbm %s3545_s0, 32 }
   0x2   :  { %p2704_p0 = scmp.ne.s32.totalorder %s3545_s0, %s2703_s17  ;;  %p2707_p1 = scmp.lt.u32.totalorder %s2703_s17, %s3545_s0 }
   0x4   :  { %p2709_p2 = pnand %p2707_p1, %p2704_p0 }
   0x6   :  { %2712 = shalt.err (!%p2709_p2)  }
   0x7   :  { %s2843_s22 = smov [#allocation4]  }
   0x8   :  { %10 = dma.hbm_to_smem %s3545_s0, 32, %s2843_s22, [#allocation3] }
   0x9   :  { %2813 = dma.done.wait [#allocation3], 32 }
   0xa   :  { %2814 = vsyncadd [#allocation3], 4294967264 }
   0xb   :  { %12 = sfence }
   0xc   :  { %13 = vsyncpa [#allocation6], 0 }
   0xd   :  { %14 = vsyncpa [#allocation9], 0 }
   0xe   :  { %15 = vsyncpa [#allocation7], 0 }
   0xf   :  { %17 = vsyncpa [#allocation7 + $0x1], 0  ;;  %s2889_s25 = smov 0   ;;  %s2891_s26 = smov 0  }
  0x10   :  { %s2893_s27 = smov 0   ;;  %s2895_s28 = smov 0  }
  0x11 LB: > { %s2910_s0 = sadd.s32 4294967295, %s2841_s28   ;;  %s1651_s29 = sadd.s32 4294967294, %s2841_s28   ;;  %s2841_s28 = sphi %s2895_s28, %s3567_s28   ;;  %s2837_s27 = sphi %s2893_s27, %s3566_s27   ;;  %s2833_s26 = sphi %s2891_s26, %s3565_s26   ;;  %s2829_s25 = sphi %s2889_s25, %s3564_s25  }
  0x12   : > { %s2914_s30 = sadd.s32 1, %s2841_s28   ;;  %s93_s5 = sadd.s32 1, %s2837_s27 }
  0x13   : > { %s90_s6 = ssub.s32 %s2841_s28, %s2914_s30  ;;  %p103_p3 = scmp.ne.s32.totalorder %s2837_s27, %s2833_s26 }
  0x14   : > { %p91_p4 = scmp.eq.s32.totalorder %s90_s6, 0  ;;  %p104_p5 = scmp.eq.s32.totalorder %s2910_s0, 1 }
  0x15   : > { %p109_p6 = scmp.ne.s32.totalorder %s2833_s26, %s2829_s25  ;;  %p110_p7 = scmp.eq.s32.totalorder %s1651_s29, 1 }
  0x16   : > { %s2925_s7 = scalar_select %p91_p4, %s2837_s27, %s93_s5  }
  0x17   : > { %p2927_p8 = por %p104_p5, %p103_p3  ;;  %p2931_p9 = por %p110_p7, %p109_p6 }
  0x18   : > { %p1652_p10 = scmp.ge.s32.totalorder %s2841_s28, 1  ;;  %p117_p11 = scmp.lt.s32.totalorder %s2841_s28, 3 }
  0x19   : > { %s3553_s8 = scalar_select %p2927_p8, 1, 0 }
  0x1a   : > { %s3554_s9 = scalar_select %p2931_p9, 1, 0 }
  0x1b   : > { %p3550_p12 = scmp.eq.s32.totalorder %s2910_s0, 0  ;;  %p2938_p13 = pnand %p1652_p10, %p117_p11 }
  0x1c   : > { %s2844_s11 = smov [#allocation5]   ;;  %s2845_s14 = smov [#allocation8]  }
  0x1d   : > { %s3555_s10 = scalar_select %p2938_p13, 1, 0 }
  0x1e   : > { %s129_s12 = sshll.u32 %s2844_s11, 4  ;;  %p2647_p0 = pneg %p2938_p13  ;;  %s130_s12 = int_to_ptr.vmem [resolvable:$true] %s129_s12 }
  0x1f   : > { %s142_s15 = sshll.u32 %s2845_s14, 4  ;;  %s2713_s18 = scalar_lea.hbm %s3546_s1, 8192  ;;  %s2950_s15 = int_to_ptr.vmem [resolvable:$true] %s142_s15 }
  0x20   : > { %p2946_p1 = pnand %p3550_p12, %p2647_p0  ;;  %p2714_p2 = scmp.ne.s32.totalorder %s3546_s1, %s2713_s18 }
  0x21   : > { %p2720_p6 = scmp.lt.u32.totalorder %s2713_s18, %s3546_s1 }
  0x22   : > { %p2715_p3 = pneg %p2946_p1 }
  0x24   : > { %p2716_p4 = pnand %p2715_p3, %p2714_p2 }
  0x26   : > { %p2717_p5 = pneg %p2716_p4 }
  0x28   : > { %p2722_p7 = pnand %p2720_p6, %p2717_p5 }
  0x2a   : > { %2725 = shalt.err (!%p2722_p7)
}
  0x2b   : > { %s2726_s23 = scalar_lea.vmem %s130_s12, 8192  ;;  %p2734_p12 = scmp.lt.s32.totalorder %s130_s12, %s130_s12 }
  0x2c   : > { %p2727_p10 = scmp.ne.s32.totalorder %s130_s12, %s2726_s23  ;;  %p2735_p9 = scmp.lt.s32.totalorder %s2726_s23, %s2726_s23 }
  0x2e   : > { %p2729_p11 = pnand %p2727_p10, %p2715_p3  ;;  %p2736_p8 = por %p2735_p9, %p2734_p12 }
  0x30   : > { %p2730_p0 = pneg %p2729_p11 }
  0x32   : > { %p2737_p13 = pnand %p2736_p8, %p2730_p0 }
  0x34   : > { %2740 = shalt.err (!%p2737_p13)
}
  0x35   : > { %s2846_s24 = smov 128   ;;  %s2847_s29 = smov 8  }
  0x36   : > { %2650 = dma.hbm_to_vmem [thread:$0]  (!%p2946_p1), %s3546_s1, 8192, %s130_s12, [#allocation6], %s2846_s24, %s2846_s24, %s2847_s29  }
  0x37   : > { %s2741_s16 = scalar_lea.hbm %s3547_s2, 2048 }
  0x38   : > { %p2742_p2 = scmp.ne.s32.totalorder %s3547_s2, %s2741_s16  ;;  %p2748_p12 = scmp.lt.u32.totalorder %s2741_s16, %s3547_s2 }
  0x3a   : > { %p2744_p8 = pnand %p2742_p2, %p2715_p3 }
  0x3c   : > { %p2745_p9 = pneg %p2744_p8 }
  0x3e   : > { %p2750_p13 = pnand %p2748_p12, %p2745_p9 }
  0x40   : > { %2753 = shalt.err (!%p2750_p13)
}
  0x41   : > { %s2754_s12 = scalar_lea.vmem %s2950_s15, 2048  ;;  %p2762_p7 = scmp.lt.s32.totalorder %s2950_s15, %s2950_s15 }
  0x42   : > { %p2755_p4 = scmp.ne.s32.totalorder %s2950_s15, %s2754_s12  ;;  %p2763_p10 = scmp.lt.s32.totalorder %s2754_s12, %s2754_s12 }
  0x44   : > { %p2757_p5 = pnand %p2755_p4, %p2715_p3  ;;  %p2764_p11 = por %p2763_p10, %p2762_p7 }
  0x46   : > { %p2758_p6 = pneg %p2757_p5 }
  0x48   : > { %p2765_p0 = pnand %p2764_p11, %p2758_p6 }
  0x4a   : > { %2768 = shalt.err (!%p2765_p0)
}
  0x4b   : > { %2653 = dma.hbm_to_vmem [thread:$0]  (!%p2946_p1), %s3547_s2, 2048, %s2950_s15, [#allocation9], %s2846_s24, %s2846_s24, %s2847_s29  }
  0x4c   : > { %p3557_p2 = scmp.ne.s32.totalorder %s3555_s10, 0 }
  0x4d   : > { %p3558_p8 = scmp.eq.s32.totalorder (!%p3557_p2), %s2910_s0, 0 }
  0x4e   : > { %161 = sbr.rel (%p3557_p2) target bundleno = 804 (0x324), region = 32 }
  0x55   : > { %2816 = dma.done.wait (%p3558_p8), [#allocation6], 8192   ;;  %p3559_p3 = pmov %p3558_p8 }
  0x57   : > { %2818 = vsyncadd (%p3559_p3), [#allocation6], 4294959104  ;;  %p3560_p9 = pmov %p3559_p3 }
  0x58   : > { %p3561_p12 = pmov %p3559_p3 }
  0x59   : > { %2820 = dma.done.wait (%p3560_p9), [#allocation9], 2048  }
  0x5a   : > { %2822 = vsyncadd (%p3561_p12), [#allocation9], 4294965248  ;;  %s3010_s13 = sshll.u32 %s2910_s0, 7  ;;  %v2848_v0 = vmov 0.0|0.0   ;;  %vm2849_vm0 = vmmov 0   ;;  %v2850_v1 = vmov 0.0  }
  0x5b   : > { %2613 = vmatprep.subr.bf16.mxu0 %v2848_v0  ;;  %2610 = vmatprep.mubr.msk.f32.mxu0 %vm2849_vm0, %v2850_v1  ;;  %s185_s10 = sld [smem:[#allocation4 + %s3010_s13]]  ;;  %s193_s15 = sadd.s32 1, %s3010_s13  ;;  %v1346_v2 = vld [vmem:[#allocation8] sm:$0xff]  ;;  %v1347_v3 = vld [vmem:[#allocation8 + $0x8] sm:$0xff]  ;;  %v1348_v4 = vld [vmem:[#allocation8 + $0x10] sm:$0xff] }
  0x5c   : > { %s194_s23 = sld [smem:[#allocation4 + %s193_s15]]  ;;  %s202_s24 = sadd.s32 2, %s3010_s13  ;;  %v2614_v5 = vpack.c.bf16 %v1347_v3, %v1346_v2  ;;  %v1349_v6 = vld [vmem:[#allocation8 + $0x18] sm:$0xff]  ;;  %v1350_v8 = vld [vmem:[#allocation8 + $0x20] sm:$0xff]  ;;  %v1351_v9 = vld [vmem:[#allocation8 + $0x28] sm:$0xff] }
  0x5d   : > { %s3016_s29 = sld [smem:[#allocation4 + %s202_s24]]  ;;  %s211_s0 = sadd.s32 3, %s3010_s13  ;;  %v2617_v7 = vpack.c.bf16 %v1349_v6, %v1348_v4  ;;  %v2620_v10 = vpack.c.bf16 %v1351_v9, %v1350_v8  ;;  %v1352_v11 = vld [vmem:[#allocation8 + $0x30] sm:$0xff]  ;;  %v1353_v12 = vld [vmem:[#allocation8 + $0x38] sm:$0xff]  ;;  %v1354_v14 = vld [vmem:[#allocation8 + $0x40] sm:$0xff] }
  0x5e   : > { %s3019_s5 = sld [smem:[#allocation4 + %s211_s0]]  ;;  %s220_s6 = sadd.s32 4, %s3010_s13  ;;  %2615 = vmatpush3.bf16.msra.mxu0 %v2614_v5  ;;  %v2623_v13 = vpack.c.bf16 %v1353_v12, %v1352_v11  ;;  %v1355_v15 = vld [vmem:[#allocation8 + $0x48] sm:$0xff]  ;;  %v1356_v19 = vld [vmem:[#allocation8 + $0x50] sm:$0xff]  ;;  %v1357_v20 = vld [vmem:[#allocation8 + $0x58] sm:$0xff] }
  0x5f   : > { %s3022_s11 = sld [smem:[#allocation4 + %s220_s6]]  ;;  %s229_s14 = sadd.s32 5, %s3010_s13  ;;  %2616 = vmatprep.subr.bf16.mxu0 %v2848_v0  ;;  %v2626_v18 = vpack.c.bf16 %v1355_v15, %v1354_v14  ;;  %v2629_v23 = vpack.c.bf16 %v1357_v20, %v1356_v19  ;;  %v1358_v24 = vld [vmem:[#allocation8 + $0x60] sm:$0xff]  ;;  %v1359_v25 = vld [vmem:[#allocation8 + $0x68] sm:$0xff]  ;;  %v1360_v29 = vld [vmem:[#allocation8 + $0x70] sm:$0xff] }
  0x60   : > { %s3025_s16 = sld [smem:[#allocation4 + %s229_s14]]  ;;  %s238_s17 = sadd.s32 6, %s3010_s13  ;;  %v2632_v28 = vpack.c.bf16 %v1359_v25, %v1358_v24  ;;  %v1361_v30 = vld [vmem:[#allocation8 + $0x78] sm:$0xff] }
  0x61   : > { %p186_p1 = scmp.gt.s32.totalorder %s185_s10, 0  ;;  %p1660_p13 = scmp.lt.s32.totalorder %s185_s10, 511  ;;  %v2635_v33 = vpack.c.bf16 %v1361_v30, %v1360_v29 }
  0x62   : > { %p195_p4 = scmp.gt.s32.totalorder %s194_s23, 0  ;;  %p1665_p5 = scmp.lt.s32.totalorder %s194_s23, 511  ;;  %2618 = vmatpush3.bf16.msra.mxu0 %v2617_v7 }
  0x63   : > { %s3569_s10 = smov (!%p186_p1, %s185_s10), 0  ;;  %p204_p6 = scmp.gt.s32.totalorder %s3016_s29, 0  ;;  %2619 = vmatprep.subr.bf16.mxu0 %v2848_v0 }
  0x64   : > { %s3571_s23 = smov (!%p195_p4, %s194_s23), 0  ;;  %s3573_s10 = smov (!%p1660_p13, %s3569_s10), 511 }
  0x65   : > { %s3575_s23 = smov (!%p1665_p5, %s3571_s23), 511  ;;  %p1670_p7 = scmp.lt.s32.totalorder %s3016_s29, 511 }
  0x66   : > { %s3577_s29 = smov (!%p204_p6, %s3016_s29), 0  ;;  %p213_p10 = scmp.gt.s32.totalorder %s3019_s5, 0  ;;  %2621 = vmatpush3.bf16.msra.mxu0 %v2620_v10 }
  0x67   : > { %p1675_p11 = scmp.lt.s32.totalorder %s3019_s5, 511  ;;  %s3579_s29 = smov (!%p1670_p7, %s3577_s29), 511  ;;  %2622 = vmatprep.subr.bf16.mxu0 %v2848_v0 }
  0x68   : > { %s3581_s5 = smov (!%p213_p10, %s3019_s5), 0  ;;  %p222_p0 = scmp.gt.s32.totalorder %s3022_s11, 0 }
  0x69   : > { %s190_s18 = scalar_lea.vmem [#allocation5], %s3573_s10  ;;  %s199_s19 = scalar_lea.vmem [#allocation5], %s3575_s23 }
  0x6a   : > { %v191_v16 = vld [vmem:[%s190_s18] sm:$0x1]  ;;  %s3583_s5 = smov (!%p1675_p11, %s3581_s5), 511  ;;  %2624 = vmatpush3.bf16.msra.mxu0 %v2623_v13  ;;  %p1680_p2 = scmp.lt.s32.totalorder %s3022_s11, 511 }
  0x6b   : > { %v200_v17 = vld [vmem:[%s199_s19] sm:$0x1]  ;;  %s223_s20 = scalar_select %p222_p0, %s3022_s11, 0  ;;  %2625 = vmatprep.subr.bf16.mxu0 %v2848_v0 }
  0x6c   : > { %v201_v21 = vadd.f32 %v200_v17, %v191_v16  ;;  %p231_p8 = scmp.gt.s32.totalorder %s3025_s16, 0  ;;  %p1685_p3 = scmp.lt.s32.totalorder %s3025_s16, 511 }
  0x6d   : > { %s208_s12 = scalar_lea.vmem [#allocation5], %s3579_s29  ;;  %s3585_s20 = smov (!%p1680_p2, %s223_s20), 511 }
  0x6e   : > { %v209_v22 = vld [vmem:[%s208_s12] sm:$0x1]  ;;  %s3587_s16 = smov (!%p231_p8, %s3025_s16), 0  ;;  %2627 = vmatpush3.bf16.msra.mxu0 %v2626_v18  ;;  %s3046_s21 = sld [smem:[#allocation4 + %s238_s17]] }
  0x6f   : > { %2628 = vmatprep.subr.bf16.mxu0 %v2848_v0  ;;  %v210_v26 = vadd.f32 %v209_v22, %v201_v21  ;;  %s3589_s16 = smov (!%p1685_p3, %s3587_s16), 511  ;;  %s217_s22 = scalar_lea.vmem [#allocation5], %s3583_s5 }
  0x70   : > { %v218_v27 = vld [vmem:[%s217_s22] sm:$0x1]  ;;  %s247_s10 = sadd.s32 7, %s3010_s13  ;;  %s256_s15 = sadd.s32 8, %s3010_s13 }
  0x71   : > { %s3053_s23 = sld [smem:[#allocation4 + %s247_s10]]  ;;  %s265_s29 = sadd.s32 9, %s3010_s13  ;;  %v219_v31 = vadd.f32 %v218_v27, %v210_v26 }
  0x72   : > { %2630 = vmatpush3.bf16.msra.mxu0 %v2629_v23  ;;  %s3055_s24 = sld [smem:[#allocation4 + %s256_s15]]  ;;  %s274_s5 = sadd.s32 10, %s3010_s13 }
  0x73   : > { %2631 = vmatprep.subr.bf16.mxu0 %v2848_v0  ;;  %s3059_s0 = sld [smem:[#allocation4 + %s265_s29]]  ;;  %s226_s6 = scalar_lea.vmem [#allocation5], %s3585_s20 }
  0x74   : > { %v227_v32 = vld [vmem:[%s226_s6] sm:$0x1]  ;;  %p240_p9 = scmp.gt.s32.totalorder %s3046_s21, 0  ;;  %p1690_p12 = scmp.lt.s32.totalorder %s3046_s21, 511 }
  0x75   : > { %s3064_s11 = sld [smem:[#allocation4 + %s274_s5]]  ;;  %s283_s14 = sadd.s32 11, %s3010_s13  ;;  %v228_v34 = vadd.f32 %v227_v32, %v219_v31 }
  0x76   : > { %2633 = vmatpush3.bf16.msra.mxu0 %v2632_v28  ;;  %s3591_s21 = smov (!%p240_p9, %s3046_s21), 0  ;;  %s235_s17 = scalar_lea.vmem [#allocation5], %s3589_s16 }
  0x77   : > { %2634 = vmatprep.subr.bf16.mxu0 %v2848_v0  ;;  %p249_p1 = scmp.gt.s32.totalorder %s3053_s23, 0  ;;  %p1695_p13 = scmp.lt.s32.totalorder %s3053_s23, 511  ;;  %v236_v35 = vld [vmem:[%s235_s17] sm:$0x1] }
  0x78   : > { %s3593_s21 = smov (!%p1690_p12, %s3591_s21), 511  ;;  %p258_p4 = scmp.gt.s32.totalorder %s3055_s24, 0  ;;  %v237_v36 = vadd.f32 %v236_v35, %v228_v34 }
  0x79   : > { %s3595_s23 = smov (!%p249_p1, %s3053_s23), 0  ;;  %s244_s18 = scalar_lea.vmem [#allocation5], %s3593_s21 }
  0x7a   : > { %2636 = vmatpush3.bf16.msra.mxu0 %v2635_v33  ;;  %s3597_s23 = smov (!%p1695_p13, %s3595_s23), 511  ;;  %v245_v37 = vld [vmem:[%s244_s18] sm:$0x1]  ;;  %p1700_p5 = scmp.lt.s32.totalorder %s3055_s24, 511 }
  0x7b   : > { %s259_s19 = scalar_select %p258_p4, %s3055_s24, 0  ;;  %v246_v38 = vadd.f32 %v245_v37, %v237_v36 }
  0x7c   : > { %p267_p6 = scmp.gt.s32.totalorder %s3059_s0, 0  ;;  %p1705_p7 = scmp.lt.s32.totalorder %s3059_s0, 511 }
  0x7d   : > { %s3599_s19 = smov (!%p1700_p5, %s259_s19), 511  ;;  %s253_s16 = scalar_lea.vmem [#allocation5], %s3597_s23 }
  0x7e   : > { %v254_v39 = vld [vmem:[%s253_s16] sm:$0x1]  ;;  %s3601_s0 = smov (!%p267_p6, %s3059_s0), 0  ;;  %p276_p10 = scmp.gt.s32.totalorder %s3064_s11, 0 }
  0x7f   : > { %s3603_s0 = smov (!%p1705_p7, %s3601_s0), 511  ;;  %v255_v40 = vadd.f32 %v254_v39, %v246_v38  ;;  %s262_s12 = scalar_lea.vmem [#allocation5], %s3599_s19 }
  0x80   : > { %s277_s20 = scalar_select %p276_p10, %s3064_s11, 0  ;;  %v263_v41 = vld [vmem:[%s262_s12] sm:$0x1] }
  0x81   : > { %p1710_p11 = scmp.lt.s32.totalorder %s3064_s11, 511  ;;  %s284_s21 = sld [smem:[#allocation4 + %s283_s14]]  ;;  %v264_v42 = vadd.f32 %v263_v41, %v255_v40 }
  0x82   : > { %s292_s22 = sadd.s32 12, %s3010_s13  ;;  %s301_s15 = sadd.s32 13, %s3010_s13 }
  0x83   : > { %s3605_s20 = smov (!%p1710_p11, %s277_s20), 511  ;;  %s293_s10 = sld [smem:[#allocation4 + %s292_s22]] }
  0x84   : > { %s271_s23 = scalar_lea.vmem [#allocation5], %s3603_s0  ;;  %s3086_s24 = sld [smem:[#allocation4 + %s301_s15]] }
  0x85   : > { %v272_v43 = vld [vmem:[%s271_s23] sm:$0x1]  ;;  %s310_s29 = sadd.s32 14, %s3010_s13  ;;  %s319_s5 = sadd.s32 15, %s3010_s13 }
  0x86   : > { %s3090_s6 = sld [smem:[#allocation4 + %s310_s29]]  ;;  %v273_v44 = vadd.f32 %v272_v43, %v264_v42  ;;  %s280_s11 = scalar_lea.vmem [#allocation5], %s3605_s20 }
  0x87   : > { %s3092_s17 = sld [smem:[#allocation4 + %s319_s5]]  ;;  %p285_p0 = scmp.gt.s32.totalorder %s284_s21, 0  ;;  %v281_v45 = vld [vmem:[%s280_s11] sm:$0x1] }
  0x88   : > { %p1715_p2 = scmp.lt.s32.totalorder %s284_s21, 511  ;;  %s329_s14 = sadd.s32 16, %s3010_s13  ;;  %v282_v46 = vadd.f32 %v281_v45, %v273_v44 }
  0x89   : > { %s338_s18 = sadd.s32 17, %s3010_s13  ;;  %s3607_s21 = smov (!%p285_p0, %s284_s21), 0 }
  0x8a   : > { %p294_p8 = scmp.gt.s32.totalorder %s293_s10, 0  ;;  %p1720_p3 = scmp.lt.s32.totalorder %s293_s10, 511 }
  0x8b   : > { %s3609_s21 = smov (!%p1715_p2, %s3607_s21), 511  ;;  %p303_p9 = scmp.gt.s32.totalorder %s3086_s24, 0 }
  0x8c   : > { %s3611_s10 = smov (!%p294_p8, %s293_s10), 0  ;;  %s289_s0 = scalar_lea.vmem [#allocation5], %s3609_s21 }
  0x8d   : > { %v290_v47 = vld [vmem:[%s289_s0] sm:$0x1]  ;;  %s3613_s10 = smov (!%p1720_p3, %s3611_s10), 511  ;;  %p1725_p12 = scmp.lt.s32.totalorder %s3086_s24, 511 }
  0x8e   : > { %v291_v48 = vadd.f32 %v290_v47, %v282_v46  ;;  %s304_s19 = scalar_select %p303_p9, %s3086_s24, 0 }
  0x8f   : > { %s298_s16 = scalar_lea.vmem [#allocation5], %s3613_s10  ;;  %p312_p1 = scmp.gt.s32.totalorder %s3090_s6, 0 }
  0x90   : > { %v299_v49 = vld [vmem:[%s298_s16] sm:$0x1]  ;;  %p1730_p13 = scmp.lt.s32.totalorder %s3090_s6, 511  ;;  %s3615_s19 = smov (!%p1725_p12, %s304_s19), 511 }
  0x91   : > { %v300_v50 = vadd.f32 %v299_v49, %v291_v48  ;;  %s3617_s6 = smov (!%p312_p1, %s3090_s6), 0  ;;  %p321_p4 = scmp.gt.s32.totalorder %s3092_s17, 0 }
  0x92   : > { %s307_s20 = scalar_lea.vmem [#allocation5], %s3615_s19  ;;  %s3619_s6 = smov (!%p1730_p13, %s3617_s6), 511 }
  0x93   : > { %v308_v51 = vld [vmem:[%s307_s20] sm:$0x1]  ;;  %s322_s12 = scalar_select %p321_p4, %s3092_s17, 0 }
  0x94   : > { %v309_v52 = vadd.f32 %v308_v51, %v300_v50  ;;  %p1735_p5 = scmp.lt.s32.totalorder %s3092_s17, 511  ;;  %s316_s21 = scalar_lea.vmem [#allocation5], %s3619_s6 }
  0x95   : > { %v317_v53 = vld [vmem:[%s316_s21] sm:$0x1]  ;;  %s330_s22 = sld [smem:[#allocation4 + %s329_s14]]  ;;  %s347_s15 = sadd.s32 18, %s3010_s13 }
  0x96   : > { %s339_s10 = sld [smem:[#allocation4 + %s338_s18]]  ;;  %v318_v54 = vadd.f32 %v317_v53, %v309_v52  ;;  %s3621_s12 = smov (!%p1735_p5, %s322_s12), 511 }
  0x97   : > { %s356_s23 = sadd.s32 19, %s3010_s13  ;;  %s348_s24 = sld [smem:[#allocation4 + %s347_s15]] }
  0x98   : > { %s325_s29 = scalar_lea.vmem [#allocation5], %s3621_s12  ;;  %s357_s5 = sld [smem:[#allocation4 + %s356_s23]] }
  0x99   : > { %v326_v55 = vld [vmem:[%s325_s29] sm:$0x1]  ;;  %s365_s11 = sadd.s32 20, %s3010_s13  ;;  %s374_s19 = sadd.s32 21, %s3010_s13 }
  0x9a   : > { %v327_v56 = vadd.f32 %v326_v55, %v318_v54  ;;  %s366_s0 = sld [smem:[#allocation4 + %s365_s11]]  ;;  %s383_s16 = sadd.s32 22, %s3010_s13 }
  0x9b   : > { %p331_p6 = scmp.gt.s32.totalorder %s330_s22, 0  ;;  %p1740_p7 = scmp.lt.s32.totalorder %s330_s22, 511 }
  0x9c   : > { %328 = vst [vmem:[#allocation2] sm:$0x1] %v327_v56  ;;  %p340_p10 = scmp.gt.s32.totalorder %s339_s10, 0  ;;  %p1745_p11 = scmp.lt.s32.totalorder %s339_s10, 511 }
  0x9d   : > { %s3623_s22 = smov (!%p331_p6, %s330_s22), 0  ;;  %p349_p0 = scmp.gt.s32.totalorder %s348_s24, 0 }
  0x9e   : > { %s3625_s10 = smov (!%p340_p10, %s339_s10), 0  ;;  %s3627_s22 = smov (!%p1740_p7, %s3623_s22), 511 }
  0x9f   : > { %s3629_s10 = smov (!%p1745_p11, %s3625_s10), 511  ;;  %p1750_p2 = scmp.lt.s32.totalorder %s348_s24, 511 }
  0xa0   : > { %s3631_s24 = smov (!%p349_p0, %s348_s24), 0  ;;  %p358_p8 = scmp.gt.s32.totalorder %s357_s5, 0 }
  0xa1   : > { %p1755_p3 = scmp.lt.s32.totalorder %s357_s5, 511  ;;  %s3633_s24 = smov (!%p1750_p2, %s3631_s24), 511 }
  0xa2   : > { %s3635_s5 = smov (!%p358_p8, %s357_s5), 0  ;;  %p367_p9 = scmp.gt.s32.totalorder %s366_s0, 0 }
  0xa3   : > { %s3637_s5 = smov (!%p1755_p3, %s3635_s5), 511  ;;  %p1760_p12 = scmp.lt.s32.totalorder %s366_s0, 511 }
  0xa4   : > { %s368_s6 = scalar_select %p367_p9, %s366_s0, 0 }
  0xa5   : > { %s335_s17 = scalar_lea.vmem [#allocation5], %s3627_s22  ;;  %s344_s14 = scalar_lea.vmem [#allocation5], %s3629_s10 }
  0xa6   : > { %v336_v57 = vld [vmem:[%s335_s17] sm:$0x1]  ;;  %s375_s18 = sld [smem:[#allocation4 + %s374_s19]]  ;;  %s3639_s6 = smov (!%p1760_p12, %s368_s6), 511 }
  0xa7   : > { %v345_v58 = vld [vmem:[%s344_s14] sm:$0x1]  ;;  %s384_s20 = sld [smem:[#allocation4 + %s383_s16]]  ;;  %s392_s12 = sadd.s32 23, %s3010_s13 }
  0xa8   : > { %v346_v59 = vadd.f32 %v345_v58, %v336_v57  ;;  %s3115_s21 = sld [smem:[#allocation4 + %s392_s12]]  ;;  %s353_s15 = scalar_lea.vmem [#allocation5], %s3633_s24 }
  0xa9   : > { %v354_v60 = vld [vmem:[%s353_s15] sm:$0x1]  ;;  %s401_s23 = sadd.s32 24, %s3010_s13  ;;  %s410_s29 = sadd.s32 25, %s3010_s13 }
  0xaa   : > { %s3119_s11 = sld [smem:[#allocation4 + %s401_s23]]  ;;  %v355_v61 = vadd.f32 %v354_v60, %v346_v59  ;;  %s419_s10 = sadd.s32 26, %s3010_s13 }
  0xab   : > { %s3121_s22 = sld [smem:[#allocation4 + %s410_s29]]  ;;  %s428_s0 = sadd.s32 27, %s3010_s13 }
  0xac   : > { %p376_p1 = scmp.gt.s32.totalorder %s375_s18, 0  ;;  %p1765_p13 = scmp.lt.s32.totalorder %s375_s18, 511 }
  0xad   : > { %s362_s19 = scalar_lea.vmem [#allocation5], %s3637_s5  ;;  %p385_p4 = scmp.gt.s32.totalorder %s384_s20, 0 }
  0xae   : > { %v363_v62 = vld [vmem:[%s362_s19] sm:$0x1]  ;;  %s3641_s18 = smov (!%p376_p1, %s375_s18), 0  ;;  %p1770_p5 = scmp.lt.s32.totalorder %s384_s20, 511 }
  0xaf   : > { %s3643_s18 = smov (!%p1765_p13, %s3641_s18), 511  ;;  %v364_v63 = vadd.f32 %v363_v62, %v355_v61  ;;  %s3645_s20 = smov (!%p385_p4, %s384_s20), 0 }
  0xb0   : > { %s371_s24 = scalar_lea.vmem [#allocation5], %s3639_s6  ;;  %p394_p6 = scmp.gt.s32.totalorder %s3115_s21, 0 }
  0xb1   : > { %v372_v0 = vld [vmem:[%s371_s24] sm:$0x1]  ;;  %s3647_s20 = smov (!%p1770_p5, %s3645_s20), 511  ;;  %p1775_p7 = scmp.lt.s32.totalorder %s3115_s21, 511 }
  0xb2   : > { %s395_s17 = scalar_select %p394_p6, %s3115_s21, 0  ;;  %v373_v1 = vadd.f32 %v372_v0, %v364_v63 }
  0xb3   : > { %s380_s5 = scalar_lea.vmem [#allocation5], %s3643_s18  ;;  %p403_p10 = scmp.gt.s32.totalorder %s3119_s11, 0 }
  0xb4   : > { %v381_v2 = vld [vmem:[%s380_s5] sm:$0x1]  ;;  %p1780_p11 = scmp.lt.s32.totalorder %s3119_s11, 511  ;;  %s3649_s17 = smov (!%p1775_p7, %s395_s17), 511 }
  0xb5   : > { %s3651_s11 = smov (!%p403_p10, %s3119_s11), 0  ;;  %v382_v3 = vadd.f32 %v381_v2, %v373_v1  ;;  %p412_p0 = scmp.gt.s32.totalorder %s3121_s22, 0 }
  0xb6   : > { %s389_s6 = scalar_lea.vmem [#allocation5], %s3647_s20  ;;  %s3653_s11 = smov (!%p1780_p11, %s3651_s11), 511 }
  0xb7   : > { %v390_v4 = vld [vmem:[%s389_s6] sm:$0x1]  ;;  %s413_s14 = scalar_select %p412_p0, %s3121_s22, 0 }
  0xb8   : > { %p1785_p2 = scmp.lt.s32.totalorder %s3121_s22, 511  ;;  %v391_v5 = vadd.f32 %v390_v4, %v382_v3  ;;  %s420_s16 = sld [smem:[#allocation4 + %s419_s10]] }
  0xb9   : > { %s429_s18 = sld [smem:[#allocation4 + %s428_s0]]  ;;  %s398_s12 = scalar_lea.vmem [#allocation5], %s3649_s17 }
  0xba   : > { %v399_v6 = vld [vmem:[%s398_s12] sm:$0x1]  ;;  %s3655_s14 = smov (!%p1785_p2, %s413_s14), 511  ;;  %s437_s21 = sadd.s32 28, %s3010_s13 }
  0xbb   : > { %s446_s15 = sadd.s32 29, %s3010_s13  ;;  %s438_s23 = sld [smem:[#allocation4 + %s437_s21]]  ;;  %v400_v7 = vadd.f32 %v399_v6, %v391_v5 }
  0xbc   : > { %s3140_s29 = sld [smem:[#allocation4 + %s446_s15]]  ;;  %s455_s20 = sadd.s32 30, %s3010_s13 }
  0xbd   : > { %s407_s19 = scalar_lea.vmem [#allocation5], %s3653_s11  ;;  %s3143_s24 = sld [smem:[#allocation4 + %s455_s20]] }
  0xbe   : > { %v408_v8 = vld [vmem:[%s407_s19] sm:$0x1]  ;;  %s464_s22 = sadd.s32 31, %s3010_s13  ;;  %p421_p8 = scmp.gt.s32.totalorder %s420_s16, 0 }
  0xbf   : > { %p1790_p3 = scmp.lt.s32.totalorder %s420_s16, 511  ;;  %p430_p9 = scmp.gt.s32.totalorder %s429_s18, 0  ;;  %v409_v9 = vadd.f32 %v408_v8, %v400_v7 }
  0xc0   : > { %p1795_p12 = scmp.lt.s32.totalorder %s429_s18, 511  ;;  %s3657_s16 = smov (!%p421_p8, %s420_s16), 0 }
  0xc1   : > { %s416_s10 = scalar_lea.vmem [#allocation5], %s3655_s14  ;;  %s3659_s18 = smov (!%p430_p9, %s429_s18), 0 }
  0xc2   : > { %v417_v10 = vld [vmem:[%s416_s10] sm:$0x1]  ;;  %s3661_s16 = smov (!%p1790_p3, %s3657_s16), 511  ;;  %s3663_s18 = smov (!%p1795_p12, %s3659_s18), 511 }
  0xc3   : > { %v418_v11 = vadd.f32 %v417_v10, %v409_v9  ;;  %p439_p1 = scmp.gt.s32.totalorder %s438_s23, 0  ;;  %s425_s11 = scalar_lea.vmem [#allocation5], %s3661_s16 }
  0xc4   : > { %v426_v12 = vld [vmem:[%s425_s11] sm:$0x1]  ;;  %p1800_p13 = scmp.lt.s32.totalorder %s438_s23, 511  ;;  %p448_p4 = scmp.gt.s32.totalorder %s3140_s29, 0 }
  0xc5   : > { %s3665_s23 = smov (!%p439_p1, %s438_s23), 0  ;;  %p1805_p5 = scmp.lt.s32.totalorder %s3140_s29, 511  ;;  %v427_v13 = vadd.f32 %v426_v12, %v418_v11 }
  0xc6   : > { %s3667_s23 = smov (!%p1800_p13, %s3665_s23), 511  ;;  %s434_s0 = scalar_lea.vmem [#allocation5], %s3663_s18 }
  0xc7   : > { %v435_v14 = vld [vmem:[%s434_s0] sm:$0x1]  ;;  %s3669_s29 = smov (!%p448_p4, %s3140_s29), 0  ;;  %p457_p6 = scmp.gt.s32.totalorder %s3143_s24, 0 }
  0xc8   : > { %s3671_s29 = smov (!%p1805_p5, %s3669_s29), 511  ;;  %v436_v15 = vadd.f32 %v435_v14, %v427_v13  ;;  %s443_s5 = scalar_lea.vmem [#allocation5], %s3667_s23 }
  0xc9   : > { %s458_s17 = scalar_select %p457_p6, %s3143_s24, 0  ;;  %v444_v16 = vld [vmem:[%s443_s5] sm:$0x1] }
  0xca   : > { %p1810_p7 = scmp.lt.s32.totalorder %s3143_s24, 511  ;;  %s465_s6 = sld [smem:[#allocation4 + %s464_s22]]  ;;  %v445_v17 = vadd.f32 %v444_v16, %v436_v15 }
  0xcb   : > { %s474_s14 = sadd.s32 32, %s3010_s13  ;;  %s483_s18 = sadd.s32 33, %s3010_s13 }
  0xcc   : > { %s3673_s17 = smov (!%p1810_p7, %s458_s17), 511  ;;  %s475_s16 = sld [smem:[#allocation4 + %s474_s14]] }
  0xcd   : > { %s452_s12 = scalar_lea.vmem [#allocation5], %s3671_s29  ;;  %s484_s21 = sld [smem:[#allocation4 + %s483_s18]] }
  0xce   : > { %v453_v18 = vld [vmem:[%s452_s12] sm:$0x1]  ;;  %s492_s15 = sadd.s32 34, %s3010_s13  ;;  %s501_s20 = sadd.s32 35, %s3010_s13 }
  0xcf   : > { %s493_s19 = sld [smem:[#allocation4 + %s492_s15]]  ;;  %v454_v19 = vadd.f32 %v453_v18, %v445_v17  ;;  %s461_s23 = scalar_lea.vmem [#allocation5], %s3673_s17 }
  0xd0   : > { %s3158_s10 = sld [smem:[#allocation4 + %s501_s20]]  ;;  %p466_p10 = scmp.gt.s32.totalorder %s465_s6, 0  ;;  %v462_v20 = vld [vmem:[%s461_s23] sm:$0x1] }
  0xd1   : > { %p1815_p11 = scmp.lt.s32.totalorder %s465_s6, 511  ;;  %s510_s24 = sadd.s32 36, %s3010_s13  ;;  %v463_v21 = vadd.f32 %v462_v20, %v454_v19 }
  0xd2   : > { %s519_s22 = sadd.s32 37, %s3010_s13  ;;  %s3675_s6 = smov (!%p466_p10, %s465_s6), 0 }
  0xd3   : > { %p476_p0 = scmp.gt.s32.totalorder %s475_s16, 0  ;;  %p1820_p2 = scmp.lt.s32.totalorder %s475_s16, 511 }
  0xd4   : > { %s3677_s6 = smov (!%p1815_p11, %s3675_s6), 511  ;;  %p485_p8 = scmp.gt.s32.totalorder %s484_s21, 0 }
  0xd5   : > { %s3679_s16 = smov (!%p476_p0, %s475_s16), 0  ;;  %s470_s29 = scalar_lea.vmem [#allocation5], %s3677_s6 }
  0xd6   : > { %v471_v22 = vld [vmem:[%s470_s29] sm:$0x1]  ;;  %s3681_s16 = smov (!%p1820_p2, %s3679_s16), 511  ;;  %p1825_p3 = scmp.lt.s32.totalorder %s484_s21, 511 }
  0xd7   : > { %v472_v23 = vadd.f32 %v471_v22, %v463_v21  ;;  %s486_s11 = scalar_select %p485_p8, %s484_s21, 0 }
  0xd8   : > { %p494_p9 = scmp.gt.s32.totalorder %s493_s19, 0  ;;  %p1830_p12 = scmp.lt.s32.totalorder %s493_s19, 511 }
  0xd9   : > { %473 = vst [vmem:[#allocation2 + $0x1] sm:$0x1] %v472_v23  ;;  %s3683_s11 = smov (!%p1825_p3, %s486_s11), 511  ;;  %p503_p1 = scmp.gt.s32.totalorder %s3158_s10, 0 }
  0xda   : > { %s3685_s19 = smov (!%p494_p9, %s493_s19), 0  ;;  %p1835_p13 = scmp.lt.s32.totalorder %s3158_s10, 511 }
  0xdb   : > { %s3687_s19 = smov (!%p1830_p12, %s3685_s19), 511  ;;  %s511_s17 = sld [smem:[#allocation4 + %s510_s24]] }
  0xdc   : > { %s504_s0 = scalar_select %p503_p1, %s3158_s10, 0 }
  0xdd   : > { %s520_s5 = sld [smem:[#allocation4 + %s519_s22]]  ;;  %s528_s6 = sadd.s32 38, %s3010_s13 }
  0xde   : > { %s3689_s0 = smov (!%p1835_p13, %s504_s0), 511  ;;  %s537_s14 = sadd.s32 39, %s3010_s13 }
  0xdf   : > { %s3167_s18 = sld [smem:[#allocation4 + %s528_s6]]  ;;  %s480_s12 = scalar_lea.vmem [#allocation5], %s3681_s16 }
  0xe0   : > { %v481_v24 = vld [vmem:[%s480_s12] sm:$0x1]  ;;  %s489_s21 = scalar_lea.vmem [#allocation5], %s3683_s11  ;;  %s3169_s15 = sld [smem:[#allocation4 + %s537_s14]] }
  0xe1   : > { %v490_v25 = vld [vmem:[%s489_s21] sm:$0x1]  ;;  %s546_s20 = sadd.s32 40, %s3010_s13  ;;  %s555_s29 = sadd.s32 41, %s3010_s13 }
  0xe2   : > { %s3172_s23 = sld [smem:[#allocation4 + %s546_s20]]  ;;  %p512_p4 = scmp.gt.s32.totalorder %s511_s17, 0  ;;  %v491_v26 = vadd.f32 %v490_v25, %v481_v24 }
  0xe3   : > { %p1840_p5 = scmp.lt.s32.totalorder %s511_s17, 511  ;;  %p521_p6 = scmp.gt.s32.totalorder %s520_s5, 0 }
  0xe4   : > { %p1845_p7 = scmp.lt.s32.totalorder %s520_s5, 511  ;;  %s498_s16 = scalar_lea.vmem [#allocation5], %s3687_s19 }
  0xe5   : > { %v499_v27 = vld [vmem:[%s498_s16] sm:$0x1]  ;;  %s3691_s17 = smov (!%p512_p4, %s511_s17), 0  ;;  %s3693_s5 = smov (!%p521_p6, %s520_s5), 0 }
  0xe6   : > { %s3695_s17 = smov (!%p1840_p5, %s3691_s17), 511  ;;  %v500_v28 = vadd.f32 %v499_v27, %v491_v26  ;;  %s3697_s5 = smov (!%p1845_p7, %s3693_s5), 511 }
  0xe7   : > { %s507_s10 = scalar_lea.vmem [#allocation5], %s3689_s0  ;;  %p530_p10 = scmp.gt.s32.totalorder %s3167_s18, 0 }
  0xe8   : > { %v508_v29 = vld [vmem:[%s507_s10] sm:$0x1]  ;;  %p1850_p11 = scmp.lt.s32.totalorder %s3167_s18, 511  ;;  %p539_p0 = scmp.gt.s32.totalorder %s3169_s15, 0 }
  0xe9   : > { %s3699_s18 = smov (!%p530_p10, %s3167_s18), 0  ;;  %v509_v30 = vadd.f32 %v508_v29, %v500_v28  ;;  %p1855_p2 = scmp.lt.s32.totalorder %s3169_s15, 511 }
  0xea   : > { %s516_s19 = scalar_lea.vmem [#allocation5], %s3695_s17  ;;  %s3701_s18 = smov (!%p1850_p11, %s3699_s18), 511 }
  0xeb   : > { %v517_v31 = vld [vmem:[%s516_s19] sm:$0x1]  ;;  %s3703_s15 = smov (!%p539_p0, %s3169_s15), 0  ;;  %p548_p8 = scmp.gt.s32.totalorder %s3172_s23, 0 }
  0xec   : > { %v518_v32 = vadd.f32 %v517_v31, %v509_v30  ;;  %s3705_s15 = smov (!%p1855_p2, %s3703_s15), 511  ;;  %s525_s24 = scalar_lea.vmem [#allocation5], %s3697_s5 }
  0xed   : > { %v526_v33 = vld [vmem:[%s525_s24] sm:$0x1]  ;;  %s549_s22 = scalar_select %p548_p8, %s3172_s23, 0 }
  0xee   : > { %p1860_p3 = scmp.lt.s32.totalorder %s3172_s23, 511  ;;  %s556_s11 = sld [smem:[#allocation4 + %s555_s29]]  ;;  %v527_v34 = vadd.f32 %v526_v33, %v518_v32 }
  0xef   : > { %s564_s0 = sadd.s32 42, %s3010_s13  ;;  %s534_s17 = scalar_lea.vmem [#allocation5], %s3701_s18 }
  0xf0   : > { %s3707_s22 = smov (!%p1860_p3, %s549_s22), 511  ;;  %v535_v35 = vld [vmem:[%s534_s17] sm:$0x1]  ;;  %s565_s6 = sld [smem:[#allocation4 + %s564_s0]] }
  0xf1   : > { %s573_s14 = sadd.s32 43, %s3010_s13  ;;  %s582_s21 = sadd.s32 44, %s3010_s13  ;;  %v536_v36 = vadd.f32 %v535_v35, %v527_v34 }
  0xf2   : > { %s3188_s12 = sld [smem:[#allocation4 + %s573_s14]]  ;;  %s591_s20 = sadd.s32 45, %s3010_s13 }
  0xf3   : > { %s3192_s5 = sld [smem:[#allocation4 + %s582_s21]]  ;;  %s543_s29 = scalar_lea.vmem [#allocation5], %s3705_s15 }
  0xf4   : > { %s3194_s23 = sld [smem:[#allocation4 + %s591_s20]]  ;;  %v544_v37 = vld [vmem:[%s543_s29] sm:$0x1]  ;;  %p557_p9 = scmp.gt.s32.totalorder %s556_s11, 0 }
  0xf5   : > { %p1865_p12 = scmp.lt.s32.totalorder %s556_s11, 511  ;;  %s600_s16 = sadd.s32 46, %s3010_s13  ;;  %v545_v38 = vadd.f32 %v544_v37, %v536_v36 }
  0xf6   : > { %s609_s18 = sadd.s32 47, %s3010_s13  ;;  %s3709_s11 = smov (!%p557_p9, %s556_s11), 0 }
  0xf7   : > { %p566_p1 = scmp.gt.s32.totalorder %s565_s6, 0  ;;  %p1870_p13 = scmp.lt.s32.totalorder %s565_s6, 511 }
  0xf8   : > { %s552_s10 = scalar_lea.vmem [#allocation5], %s3707_s22  ;;  %s3711_s11 = smov (!%p1865_p12, %s3709_s11), 511 }
  0xf9   : > { %v553_v39 = vld [vmem:[%s552_s10] sm:$0x1]  ;;  %s3713_s6 = smov (!%p566_p1, %s565_s6), 0  ;;  %p575_p4 = scmp.gt.s32.totalorder %s3188_s12, 0 }
  0xfa   : > { %v554_v40 = vadd.f32 %v553_v39, %v545_v38  ;;  %s3715_s6 = smov (!%p1870_p13, %s3713_s6), 511  ;;  %s561_s15 = scalar_lea.vmem [#allocation5], %s3711_s11 }
  0xfb   : > { %v562_v41 = vld [vmem:[%s561_s15] sm:$0x1]  ;;  %s576_s19 = scalar_select %p575_p4, %s3188_s12, 0 }
  0xfc   : > { %p1875_p5 = scmp.lt.s32.totalorder %s3188_s12, 511  ;;  %p584_p6 = scmp.gt.s32.totalorder %s3192_s5, 0  ;;  %v563_v42 = vadd.f32 %v562_v41, %v554_v40 }
  0xfd   : > { %p1880_p7 = scmp.lt.s32.totalorder %s3192_s5, 511  ;;  %s570_s24 = scalar_lea.vmem [#allocation5], %s3715_s6 }
  0xfe   : > { %s3717_s19 = smov (!%p1875_p5, %s576_s19), 511  ;;  %v571_v43 = vld [vmem:[%s570_s24] sm:$0x1]  ;;  %s3719_s5 = smov (!%p584_p6, %s3192_s5), 0 }
  0xff   : > { %p593_p10 = scmp.gt.s32.totalorder %s3194_s23, 0  ;;  %s3721_s5 = smov (!%p1880_p7, %s3719_s5), 511  ;;  %v572_v44 = vadd.f32 %v571_v43, %v563_v42 }
 0x100   : > { %s579_s11 = scalar_lea.vmem [#allocation5], %s3717_s19  ;;  %p1885_p11 = scmp.lt.s32.totalorder %s3194_s23, 511 }
 0x101   : > { %s594_s22 = scalar_select %p593_p10, %s3194_s23, 0  ;;  %v580_v45 = vld [vmem:[%s579_s11] sm:$0x1] }
 0x102   : > { %s601_s0 = sld [smem:[#allocation4 + %s600_s16]]  ;;  %v581_v46 = vadd.f32 %v580_v45, %v572_v44  ;;  %s619_s14 = sadd.s32 48, %s3010_s13 }
 0x103   : > { %s610_s17 = sld [smem:[#allocation4 + %s609_s18]]  ;;  %s3723_s22 = smov (!%p1885_p11, %s594_s22), 511 }
 0x104   : > { %s628_s12 = sadd.s32 49, %s3010_s13  ;;  %s588_s6 = scalar_lea.vmem [#allocation5], %s3721_s5 }
 0x105   : > { %v589_v47 = vld [vmem:[%s588_s6] sm:$0x1]  ;;  %s620_s21 = sld [smem:[#allocation4 + %s619_s14]]  ;;  %s637_s29 = sadd.s32 50, %s3010_s13 }
 0x106   : > { %s3213_s20 = sld [smem:[#allocation4 + %s628_s12]]  ;;  %s646_s15 = sadd.s32 51, %s3010_s13  ;;  %v590_v48 = vadd.f32 %v589_v47, %v581_v46 }
 0x107   : > { %s3216_s10 = sld [smem:[#allocation4 + %s637_s29]]  ;;  %s597_s23 = scalar_lea.vmem [#allocation5], %s3723_s22 }
 0x108   : > { %p602_p0 = scmp.gt.s32.totalorder %s601_s0, 0  ;;  %p1890_p2 = scmp.lt.s32.totalorder %s601_s0, 511  ;;  %v598_v49 = vld [vmem:[%s597_s23] sm:$0x1] }
 0x109   : > { %p611_p8 = scmp.gt.s32.totalorder %s610_s17, 0  ;;  %p1895_p3 = scmp.lt.s32.totalorder %s610_s17, 511  ;;  %v599_v50 = vadd.f32 %v598_v49, %v590_v48 }
 0x10a   : > { %s3725_s0 = smov (!%p602_p0, %s601_s0), 0  ;;  %s647_s19 = sld [smem:[#allocation4 + %s646_s15]] }
 0x10b   : > { %s3727_s17 = smov (!%p611_p8, %s610_s17), 0  ;;  %s3729_s0 = smov (!%p1890_p2, %s3725_s0), 511 }
 0x10c   : > { %s3731_s17 = smov (!%p1895_p3, %s3727_s17), 511  ;;  %p621_p9 = scmp.gt.s32.totalorder %s620_s21, 0 }
 0x10d   : > { %s606_s5 = scalar_lea.vmem [#allocation5], %s3729_s0  ;;  %p1900_p12 = scmp.lt.s32.totalorder %s620_s21, 511 }
 0x10e   : > { %v607_v51 = vld [vmem:[%s606_s5] sm:$0x1]  ;;  %s615_s16 = scalar_lea.vmem [#allocation5], %s3731_s17  ;;  %s3733_s21 = smov (!%p621_p9, %s620_s21), 0 }
 0x10f   : > { %v608_v52 = vadd.f32 %v607_v51, %v599_v50  ;;  %v616_v53 = vld [vmem:[%s615_s16] sm:$0x1]  ;;  %p630_p1 = scmp.gt.s32.totalorder %s3213_s20, 0  ;;  %p1905_p13 = scmp.lt.s32.totalorder %s3213_s20, 511 }
 0x110   : > { %s3735_s21 = smov (!%p1900_p12, %s3733_s21), 511  ;;  %p639_p4 = scmp.gt.s32.totalorder %s3216_s10, 0 }
 0x111   : > { %v617_v54 = vadd.f32 %v616_v53, %v608_v52  ;;  %s3737_s20 = smov (!%p630_p1, %s3213_s20), 0  ;;  %p1910_p5 = scmp.lt.s32.totalorder %s3216_s10, 511 }
 0x112   : > { %s3739_s20 = smov (!%p1905_p13, %s3737_s20), 511  ;;  %s655_s24 = sadd.s32 52, %s3010_s13 }
 0x113   : > { %618 = vst [vmem:[#allocation2 + $0x2] sm:$0x1] %v617_v54  ;;  %s640_s18 = scalar_select %p639_p4, %s3216_s10, 0 }
 0x114   : > { %s656_s22 = sld [smem:[#allocation4 + %s655_s24]]  ;;  %s664_s11 = sadd.s32 53, %s3010_s13 }
 0x115   : > { %s3741_s18 = smov (!%p1910_p5, %s640_s18), 511  ;;  %s3229_s0 = sld [smem:[#allocation4 + %s664_s11]] }
 0x116   : > { %s673_s17 = sadd.s32 54, %s3010_s13  ;;  %s682_s14 = sadd.s32 55, %s3010_s13 }
 0x117   : > { %s3233_s12 = sld [smem:[#allocation4 + %s673_s17]]  ;;  %p648_p6 = scmp.gt.s32.totalorder %s647_s19, 0 }
 0x118   : > { %s3235_s6 = sld [smem:[#allocation4 + %s682_s14]]  ;;  %p1915_p7 = scmp.lt.s32.totalorder %s647_s19, 511 }
 0x119   : > { %s691_s29 = sadd.s32 56, %s3010_s13  ;;  %s700_s10 = sadd.s32 57, %s3010_s13 }
 0x11a   : > { %s625_s23 = scalar_lea.vmem [#allocation5], %s3735_s21  ;;  %s634_s15 = scalar_lea.vmem [#allocation5], %s3739_s20 }
 0x11b   : > { %v626_v55 = vld [vmem:[%s625_s23] sm:$0x1]  ;;  %s3743_s19 = smov (!%p648_p6, %s647_s19), 0  ;;  %p657_p10 = scmp.gt.s32.totalorder %s656_s22, 0 }
 0x11c   : > { %v635_v56 = vld [vmem:[%s634_s15] sm:$0x1]  ;;  %p1920_p11 = scmp.lt.s32.totalorder %s656_s22, 511  ;;  %s3745_s19 = smov (!%p1915_p7, %s3743_s19), 511 }
 0x11d   : > { %v636_v57 = vadd.f32 %v635_v56, %v626_v55  ;;  %s3747_s22 = smov (!%p657_p10, %s656_s22), 0  ;;  %s643_s5 = scalar_lea.vmem [#allocation5], %s3741_s18 }
 0x11e   : > { %v644_v58 = vld [vmem:[%s643_s5] sm:$0x1]  ;;  %p666_p0 = scmp.gt.s32.totalorder %s3229_s0, 0  ;;  %s3749_s22 = smov (!%p1920_p11, %s3747_s22), 511 }
 0x11f   : > { %v645_v59 = vadd.f32 %v644_v58, %v636_v57  ;;  %p1925_p2 = scmp.lt.s32.totalorder %s3229_s0, 511  ;;  %s652_s20 = scalar_lea.vmem [#allocation5], %s3745_s19 }
 0x120   : > { %s667_s21 = scalar_select %p666_p0, %s3229_s0, 0  ;;  %v653_v60 = vld [vmem:[%s652_s20] sm:$0x1] }
 0x121   : > { %p675_p8 = scmp.gt.s32.totalorder %s3233_s12, 0  ;;  %p1930_p3 = scmp.lt.s32.totalorder %s3233_s12, 511  ;;  %v654_v61 = vadd.f32 %v653_v60, %v645_v59 }
 0x122   : > { %s3751_s21 = smov (!%p1925_p2, %s667_s21), 511  ;;  %p684_p9 = scmp.gt.s32.totalorder %s3235_s6, 0 }
 0x123   : > { %s3753_s12 = smov (!%p675_p8, %s3233_s12), 0  ;;  %s661_s16 = scalar_lea.vmem [#allocation5], %s3749_s22 }
 0x124   : > { %v662_v62 = vld [vmem:[%s661_s16] sm:$0x1]  ;;  %s3755_s12 = smov (!%p1930_p3, %s3753_s12), 511  ;;  %p1935_p12 = scmp.lt.s32.totalorder %s3235_s6, 511 }
 0x125   : > { %s685_s18 = scalar_select %p684_p9, %s3235_s6, 0  ;;  %v663_v63 = vadd.f32 %v662_v62, %v654_v61 }
 0x126   : > { %s692_s24 = sld [smem:[#allocation4 + %s691_s29]]  ;;  %s670_s11 = scalar_lea.vmem [#allocation5], %s3751_s21 }
 0x127   : > { %s701_s19 = sld [smem:[#allocation4 + %s700_s10]]  ;;  %v671_v0 = vld [vmem:[%s670_s11] sm:$0x1]  ;;  %s3757_s18 = smov (!%p1935_p12, %s685_s18), 511 }
 0x128   : > { %s709_s0 = sadd.s32 58, %s3010_s13  ;;  %s718_s17 = sadd.s32 59, %s3010_s13  ;;  %v672_v1 = vadd.f32 %v671_v0, %v663_v63 }
 0x129   : > { %s710_s14 = sld [smem:[#allocation4 + %s709_s0]]  ;;  %s727_s22 = sadd.s32 60, %s3010_s13 }
 0x12a   : > { %s3254_s23 = sld [smem:[#allocation4 + %s718_s17]]  ;;  %s679_s15 = scalar_lea.vmem [#allocation5], %s3755_s12 }
 0x12b   : > { %v680_v2 = vld [vmem:[%s679_s15] sm:$0x1]  ;;  %s3257_s5 = sld [smem:[#allocation4 + %s727_s22]]  ;;  %s736_s6 = sadd.s32 61, %s3010_s13 }
 0x12c   : > { %p693_p1 = scmp.gt.s32.totalorder %s692_s24, 0  ;;  %p1940_p13 = scmp.lt.s32.totalorder %s692_s24, 511  ;;  %v681_v3 = vadd.f32 %v680_v2, %v672_v1 }
 0x12d   : > { %p702_p4 = scmp.gt.s32.totalorder %s701_s19, 0  ;;  %p1945_p5 = scmp.lt.s32.totalorder %s701_s19, 511 }
 0x12e   : > { %s3759_s24 = smov (!%p693_p1, %s692_s24), 0  ;;  %s688_s29 = scalar_lea.vmem [#allocation5], %s3757_s18 }
 0x12f   : > { %v689_v4 = vld [vmem:[%s688_s29] sm:$0x1]  ;;  %s3761_s19 = smov (!%p702_p4, %s701_s19), 0  ;;  %s3763_s24 = smov (!%p1940_p13, %s3759_s24), 511 }
 0x130   : > { %s3765_s19 = smov (!%p1945_p5, %s3761_s19), 511  ;;  %v690_v5 = vadd.f32 %v689_v4, %v681_v3  ;;  %p711_p6 = scmp.gt.s32.totalorder %s710_s14, 0 }
 0x131   : > { %s697_s12 = scalar_lea.vmem [#allocation5], %s3763_s24  ;;  %p1950_p7 = scmp.lt.s32.totalorder %s710_s14, 511 }
 0x132   : > { %v698_v6 = vld [vmem:[%s697_s12] sm:$0x1]  ;;  %s3767_s14 = smov (!%p711_p6, %s710_s14), 0  ;;  %p720_p10 = scmp.gt.s32.totalorder %s3254_s23, 0 }
 0x133   : > { %p1955_p11 = scmp.lt.s32.totalorder %s3254_s23, 511  ;;  %v699_v7 = vadd.f32 %v698_v6, %v690_v5  ;;  %s3769_s14 = smov (!%p1950_p7, %s3767_s14), 511 }
 0x134   : > { %s706_s10 = scalar_lea.vmem [#allocation5], %s3765_s19  ;;  %s3771_s23 = smov (!%p720_p10, %s3254_s23), 0 }
 0x135   : > { %v707_v8 = vld [vmem:[%s706_s10] sm:$0x1]  ;;  %p729_p0 = scmp.gt.s32.totalorder %s3257_s5, 0  ;;  %s3773_s23 = smov (!%p1955_p11, %s3771_s23), 511 }
 0x136   : > { %v708_v9 = vadd.f32 %v707_v8, %v699_v7  ;;  %s715_s20 = scalar_lea.vmem [#allocation5], %s3769_s14  ;;  %p1960_p2 = scmp.lt.s32.totalorder %s3257_s5, 511 }
 0x137   : > { %s730_s21 = scalar_select %p729_p0, %s3257_s5, 0  ;;  %v716_v10 = vld [vmem:[%s715_s20] sm:$0x1] }
 0x138   : > { %s737_s16 = sld [smem:[#allocation4 + %s736_s6]]  ;;  %s745_s18 = sadd.s32 62, %s3010_s13  ;;  %v717_v11 = vadd.f32 %v716_v10, %v708_v9 }
 0x139   : > { %s3775_s21 = smov (!%p1960_p2, %s730_s21), 511  ;;  %s746_s24 = sld [smem:[#allocation4 + %s745_s18]] }
 0x13a   : > { %s754_s19 = sadd.s32 63, %s3010_s13  ;;  %s724_s11 = scalar_lea.vmem [#allocation5], %s3773_s23 }
 0x13b   : > { %v725_v12 = vld [vmem:[%s724_s11] sm:$0x1]  ;;  %s3270_s0 = sld [smem:[#allocation4 + %s754_s19]]  ;;  %s764_s17 = sadd.s32 64, %s3010_s13 }
 0x13c   : > { %s773_s22 = sadd.s32 65, %s3010_s13  ;;  %s3274_s15 = sld [smem:[#allocation4 + %s764_s17]]  ;;  %v726_v13 = vadd.f32 %v725_v12, %v717_v11 }
 0x13d   : > { %s3276_s14 = sld [smem:[#allocation4 + %s773_s22]]  ;;  %s733_s5 = scalar_lea.vmem [#allocation5], %s3775_s21 }
 0x13e   : > { %p738_p8 = scmp.gt.s32.totalorder %s737_s16, 0  ;;  %p1965_p3 = scmp.lt.s32.totalorder %s737_s16, 511  ;;  %v734_v14 = vld [vmem:[%s733_s5] sm:$0x1] }
 0x13f   : > { %s782_s6 = sadd.s32 66, %s3010_s13  ;;  %s791_s29 = sadd.s32 67, %s3010_s13  ;;  %v735_v15 = vadd.f32 %v734_v14, %v726_v13 }
 0x140   : > { %s3777_s16 = smov (!%p738_p8, %s737_s16), 0  ;;  %p747_p9 = scmp.gt.s32.totalorder %s746_s24, 0 }
 0x141   : > { %p1970_p12 = scmp.lt.s32.totalorder %s746_s24, 511  ;;  %s3779_s16 = smov (!%p1965_p3, %s3777_s16), 511 }
 0x142   : > { %s3781_s24 = smov (!%p747_p9, %s746_s24), 0  ;;  %p756_p1 = scmp.gt.s32.totalorder %s3270_s0, 0 }
 0x143   : > { %s742_s23 = scalar_lea.vmem [#allocation5], %s3779_s16  ;;  %s3783_s24 = smov (!%p1970_p12, %s3781_s24), 511 }
 0x144   : > { %v743_v16 = vld [vmem:[%s742_s23] sm:$0x1]  ;;  %s757_s12 = scalar_select %p756_p1, %s3270_s0, 0 }
 0x145   : > { %v744_v17 = vadd.f32 %v743_v16, %v735_v15  ;;  %p1975_p13 = scmp.lt.s32.totalorder %s3270_s0, 511  ;;  %s751_s10 = scalar_lea.vmem [#allocation5], %s3783_s24 }
 0x146   : > { %v752_v18 = vld [vmem:[%s751_s10] sm:$0x1]  ;;  %p766_p4 = scmp.gt.s32.totalorder %s3274_s15, 0  ;;  %p1980_p5 = scmp.lt.s32.totalorder %s3274_s15, 511 }
 0x147   : > { %v753_v19 = vadd.f32 %v752_v18, %v744_v17  ;;  %s3785_s12 = smov (!%p1975_p13, %s757_s12), 511  ;;  %p775_p6 = scmp.gt.s32.totalorder %s3276_s14, 0 }
 0x148   : > { %s3787_s15 = smov (!%p766_p4, %s3274_s15), 0  ;;  %s760_s21 = scalar_lea.vmem [#allocation5], %s3785_s12 }
 0x149   : > { %v761_v20 = vld [vmem:[%s760_s21] sm:$0x1]  ;;  %s3789_s15 = smov (!%p1980_p5, %s3787_s15), 511  ;;  %p1985_p7 = scmp.lt.s32.totalorder %s3276_s14, 511 }
 0x14a   : > { %v762_v21 = vadd.f32 %v761_v20, %v753_v19  ;;  %s776_s20 = scalar_select %p775_p6, %s3276_s14, 0 }
 0x14b   : > { %s783_s16 = sld [smem:[#allocation4 + %s782_s6]]  ;;  %s800_s24 = sadd.s32 68, %s3010_s13 }
 0x14c   : > { %763 = vst [vmem:[#allocation2 + $0x3] sm:$0x1] %v762_v21  ;;  %s792_s18 = sld [smem:[#allocation4 + %s791_s29]]  ;;  %s3791_s20 = smov (!%p1985_p7, %s776_s20), 511 }
 0x14d   : > { %s809_s19 = sadd.s32 69, %s3010_s13  ;;  %s801_s11 = sld [smem:[#allocation4 + %s800_s24]] }
 0x14e   : > { %s810_s0 = sld [smem:[#allocation4 + %s809_s19]]  ;;  %s818_s17 = sadd.s32 70, %s3010_s13 }
 0x14f   : > { %s3292_s22 = sld [smem:[#allocation4 + %s818_s17]]  ;;  %s827_s5 = sadd.s32 71, %s3010_s13 }
 0x150   : > { %s770_s14 = scalar_lea.vmem [#allocation5], %s3789_s15  ;;  %s779_s6 = scalar_lea.vmem [#allocation5], %s3791_s20 }
 0x151   : > { %p784_p10 = scmp.gt.s32.totalorder %s783_s16, 0  ;;  %p1990_p11 = scmp.lt.s32.totalorder %s783_s16, 511  ;;  %v771_v22 = vld [vmem:[%s770_s14] sm:$0x1] }
 0x152   : > { %p793_p0 = scmp.gt.s32.totalorder %s792_s18, 0  ;;  %p1995_p2 = scmp.lt.s32.totalorder %s792_s18, 511  ;;  %v780_v23 = vld [vmem:[%s779_s6] sm:$0x1] }
 0x153   : > { %s3793_s16 = smov (!%p784_p10, %s783_s16), 0  ;;  %p802_p8 = scmp.gt.s32.totalorder %s801_s11, 0  ;;  %v781_v24 = vadd.f32 %v780_v23, %v771_v22 }
 0x154   : > { %s3795_s18 = smov (!%p793_p0, %s792_s18), 0  ;;  %s3797_s16 = smov (!%p1990_p11, %s3793_s16), 511 }
 0x155   : > { %s3799_s18 = smov (!%p1995_p2, %s3795_s18), 511  ;;  %p2000_p3 = scmp.lt.s32.totalorder %s801_s11, 511 }
 0x156   : > { %s3801_s11 = smov (!%p802_p8, %s801_s11), 0  ;;  %p811_p9 = scmp.gt.s32.totalorder %s810_s0, 0 }
 0x157   : > { %p2005_p12 = scmp.lt.s32.totalorder %s810_s0, 511  ;;  %s788_s29 = scalar_lea.vmem [#allocation5], %s3797_s16 }
 0x158   : > { %v789_v25 = vld [vmem:[%s788_s29] sm:$0x1]  ;;  %s3803_s11 = smov (!%p2000_p3, %s3801_s11), 511  ;;  %s3805_s0 = smov (!%p811_p9, %s810_s0), 0 }
 0x159   : > { %p820_p1 = scmp.gt.s32.totalorder %s3292_s22, 0  ;;  %v790_v26 = vadd.f32 %v789_v25, %v781_v24  ;;  %s3807_s0 = smov (!%p2005_p12, %s3805_s0), 511 }
 0x15a   : > { %s797_s15 = scalar_lea.vmem [#allocation5], %s3799_s18  ;;  %p2010_p13 = scmp.lt.s32.totalorder %s3292_s22, 511 }
 0x15b   : > { %v798_v27 = vld [vmem:[%s797_s15] sm:$0x1]  ;;  %s821_s23 = scalar_select %p820_p1, %s3292_s22, 0 }
 0x15c   : > { %s828_s12 = sld [smem:[#allocation4 + %s827_s5]]  ;;  %s836_s10 = sadd.s32 72, %s3010_s13  ;;  %v799_v28 = vadd.f32 %v798_v27, %v790_v26 }
 0x15d   : > { %s3809_s23 = smov (!%p2010_p13, %s821_s23), 511  ;;  %s806_s21 = scalar_lea.vmem [#allocation5], %s3803_s11 }
 0x15e   : > { %v807_v29 = vld [vmem:[%s806_s21] sm:$0x1]  ;;  %s837_s20 = sld [smem:[#allocation4 + %s836_s10]]  ;;  %s845_s16 = sadd.s32 73, %s3010_s13 }
 0x15f   : > { %s3302_s24 = sld [smem:[#allocation4 + %s845_s16]]  ;;  %s854_s19 = sadd.s32 74, %s3010_s13  ;;  %v808_v30 = vadd.f32 %v807_v29, %v799_v28 }
 0x160   : > { %s863_s17 = sadd.s32 75, %s3010_s13  ;;  %s3306_s18 = sld [smem:[#allocation4 + %s854_s19]] }
 0x161   : > { %s3308_s22 = sld [smem:[#allocation4 + %s863_s17]]  ;;  %s815_s5 = scalar_lea.vmem [#allocation5], %s3807_s0 }
 0x162   : > { %v816_v31 = vld [vmem:[%s815_s5] sm:$0x1]  ;;  %p829_p4 = scmp.gt.s32.totalorder %s828_s12, 0  ;;  %p2015_p5 = scmp.lt.s32.totalorder %s828_s12, 511 }
 0x163   : > { %s872_s14 = sadd.s32 76, %s3010_s13  ;;  %s881_s11 = sadd.s32 77, %s3010_s13  ;;  %v817_v32 = vadd.f32 %v816_v31, %v808_v30 }
 0x164   : > { %s3811_s12 = smov (!%p829_p4, %s828_s12), 0  ;;  %p838_p6 = scmp.gt.s32.totalorder %s837_s20, 0 }
 0x165   : > { %p2020_p7 = scmp.lt.s32.totalorder %s837_s20, 511  ;;  %s824_s6 = scalar_lea.vmem [#allocation5], %s3809_s23 }
 0x166   : > { %v825_v33 = vld [vmem:[%s824_s6] sm:$0x1]  ;;  %s3813_s12 = smov (!%p2015_p5, %s3811_s12), 511  ;;  %s3815_s20 = smov (!%p838_p6, %s837_s20), 0 }
 0x167   : > { %p847_p10 = scmp.gt.s32.totalorder %s3302_s24, 0  ;;  %v826_v34 = vadd.f32 %v825_v33, %v817_v32  ;;  %s3817_s20 = smov (!%p2020_p7, %s3815_s20), 511 }
 0x168   : > { %s833_s0 = scalar_lea.vmem [#allocation5], %s3813_s12  ;;  %p2025_p11 = scmp.lt.s32.totalorder %s3302_s24, 511 }
 0x169   : > { %v834_v35 = vld [vmem:[%s833_s0] sm:$0x1]  ;;  %s848_s29 = scalar_select %p847_p10, %s3302_s24, 0 }
 0x16a   : > { %p856_p0 = scmp.gt.s32.totalorder %s3306_s18, 0  ;;  %p2030_p2 = scmp.lt.s32.totalorder %s3306_s18, 511  ;;  %v835_v36 = vadd.f32 %v834_v35, %v826_v34 }
 0x16b   : > { %s3819_s29 = smov (!%p2025_p11, %s848_s29), 511  ;;  %s842_s15 = scalar_lea.vmem [#allocation5], %s3817_s20 }
 0x16c   : > { %v843_v37 = vld [vmem:[%s842_s15] sm:$0x1]  ;;  %s3821_s18 = smov (!%p856_p0, %s3306_s18), 0  ;;  %p865_p8 = scmp.gt.s32.totalorder %s3308_s22, 0 }
 0x16d   : > { %s3823_s18 = smov (!%p2030_p2, %s3821_s18), 511  ;;  %v844_v38 = vadd.f32 %v843_v37, %v835_v36  ;;  %s851_s12 = scalar_lea.vmem [#allocation5], %s3819_s29 }
 0x16e   : > { %s866_s23 = scalar_select %p865_p8, %s3308_s22, 0  ;;  %v852_v39 = vld [vmem:[%s851_s12] sm:$0x1] }
 0x16f   : > { %p2035_p3 = scmp.lt.s32.totalorder %s3308_s22, 511  ;;  %s873_s10 = sld [smem:[#allocation4 + %s872_s14]]  ;;  %v853_v40 = vadd.f32 %v852_v39, %v844_v38 }
 0x170   : > { %s882_s21 = sld [smem:[#allocation4 + %s881_s11]]  ;;  %s890_s16 = sadd.s32 78, %s3010_s13 }
 0x171   : > { %s3825_s23 = smov (!%p2035_p3, %s866_s23), 511  ;;  %s899_s24 = sadd.s32 79, %s3010_s13 }
 0x172   : > { %s860_s20 = scalar_lea.vmem [#allocation5], %s3823_s18  ;;  %s891_s19 = sld [smem:[#allocation4 + %s890_s16]] }
 0x173   : > { %v861_v41 = vld [vmem:[%s860_s20] sm:$0x1]  ;;  %s3327_s17 = sld [smem:[#allocation4 + %s899_s24]]  ;;  %s909_s5 = sadd.s32 80, %s3010_s13 }
 0x174   : > { %s3330_s6 = sld [smem:[#allocation4 + %s909_s5]]  ;;  %s918_s0 = sadd.s32 81, %s3010_s13  ;;  %v862_v42 = vadd.f32 %v861_v41, %v853_v40 }
 0x175   : > { %p874_p9 = scmp.gt.s32.totalorder %s873_s10, 0  ;;  %p2040_p12 = scmp.lt.s32.totalorder %s873_s10, 511 }
 0x176   : > { %s869_s22 = scalar_lea.vmem [#allocation5], %s3825_s23  ;;  %p883_p1 = scmp.gt.s32.totalorder %s882_s21, 0 }
 0x177   : > { %v870_v43 = vld [vmem:[%s869_s22] sm:$0x1]  ;;  %p2045_p13 = scmp.lt.s32.totalorder %s882_s21, 511  ;;  %s3827_s10 = smov (!%p874_p9, %s873_s10), 0 }
 0x178   : > { %s3829_s21 = smov (!%p883_p1, %s882_s21), 0  ;;  %v871_v44 = vadd.f32 %v870_v43, %v862_v42  ;;  %s3831_s10 = smov (!%p2040_p12, %s3827_s10), 511 }
 0x179   : > { %s3833_s21 = smov (!%p2045_p13, %s3829_s21), 511  ;;  %p892_p4 = scmp.gt.s32.totalorder %s891_s19, 0 }
 0x17a   : > { %s878_s18 = scalar_lea.vmem [#allocation5], %s3831_s10  ;;  %p2050_p5 = scmp.lt.s32.totalorder %s891_s19, 511 }
 0x17b   : > { %v879_v45 = vld [vmem:[%s878_s18] sm:$0x1]  ;;  %s887_s14 = scalar_lea.vmem [#allocation5], %s3833_s21  ;;  %s3835_s19 = smov (!%p892_p4, %s891_s19), 0 }
 0x17c   : > { %v880_v46 = vadd.f32 %v879_v45, %v871_v44  ;;  %v888_v47 = vld [vmem:[%s887_s14] sm:$0x1]  ;;  %p901_p6 = scmp.gt.s32.totalorder %s3327_s17, 0  ;;  %p2055_p7 = scmp.lt.s32.totalorder %s3327_s17, 511 }
 0x17d   : > { %s3837_s19 = smov (!%p2050_p5, %s3835_s19), 511  ;;  %p911_p10 = scmp.gt.s32.totalorder %s3330_s6, 0 }
 0x17e   : > { %v889_v48 = vadd.f32 %v888_v47, %v880_v46  ;;  %s3839_s17 = smov (!%p901_p6, %s3327_s17), 0  ;;  %s896_s11 = scalar_lea.vmem [#allocation5], %s3837_s19 }
 0x17f   : > { %v897_v49 = vld [vmem:[%s896_s11] sm:$0x1]  ;;  %s3841_s17 = smov (!%p2055_p7, %s3839_s17), 511  ;;  %p2060_p11 = scmp.lt.s32.totalorder %s3330_s6, 511 }
 0x180   : > { %v898_v50 = vadd.f32 %v897_v49, %v889_v48  ;;  %s912_s29 = scalar_select %p911_p10, %s3330_s6, 0 }
 0x181   : > { %s905_s15 = scalar_lea.vmem [#allocation5], %s3841_s17  ;;  %s919_s23 = sld [smem:[#allocation4 + %s918_s0]] }
 0x182   : > { %v906_v51 = vld [vmem:[%s905_s15] sm:$0x1]  ;;  %s927_s12 = sadd.s32 82, %s3010_s13  ;;  %s3843_s29 = smov (!%p2060_p11, %s912_s29), 511 }
 0x183   : > { %v907_v52 = vadd.f32 %v906_v51, %v898_v50  ;;  %s928_s10 = sld [smem:[#allocation4 + %s927_s12]]  ;;  %s936_s21 = sadd.s32 83, %s3010_s13 }
 0x184   : > { %s937_s16 = sld [smem:[#allocation4 + %s936_s21]]  ;;  %s945_s24 = sadd.s32 84, %s3010_s13 }
 0x185   : > { %908 = vst [vmem:[#allocation2 + $0x4] sm:$0x1] %v907_v52  ;;  %s954_s20 = sadd.s32 85, %s3010_s13  ;;  %s946_s19 = sld [smem:[#allocation4 + %s945_s24]] }
 0x186   : > { %s3345_s5 = sld [smem:[#allocation4 + %s954_s20]]  ;;  %s963_s17 = sadd.s32 86, %s3010_s13 }
 0x187   : > { %p920_p0 = scmp.gt.s32.totalorder %s919_s23, 0  ;;  %p2065_p2 = scmp.lt.s32.totalorder %s919_s23, 511 }
 0x188   : > { %s972_s6 = sadd.s32 87, %s3010_s13  ;;  %s915_s22 = scalar_lea.vmem [#allocation5], %s3843_s29 }
 0x189   : > { %s3845_s23 = smov (!%p920_p0, %s919_s23), 0  ;;  %p929_p8 = scmp.gt.s32.totalorder %s928_s10, 0  ;;  %v916_v53 = vld [vmem:[%s915_s22] sm:$0x1] }
 0x18a   : > { %p2070_p3 = scmp.lt.s32.totalorder %s928_s10, 511  ;;  %s3847_s23 = smov (!%p2065_p2, %s3845_s23), 511 }
 0x18b   : > { %s3849_s10 = smov (!%p929_p8, %s928_s10), 0  ;;  %p938_p9 = scmp.gt.s32.totalorder %s937_s16, 0 }
 0x18c   : > { %s3851_s10 = smov (!%p2070_p3, %s3849_s10), 511  ;;  %p2075_p12 = scmp.lt.s32.totalorder %s937_s16, 511 }
 0x18d   : > { %s939_s0 = scalar_select %p938_p9, %s937_s16, 0 }
 0x18e   : > { %s924_s18 = scalar_lea.vmem [#allocation5], %s3847_s23  ;;  %p947_p1 = scmp.gt.s32.totalorder %s946_s19, 0 }
 0x18f   : > { %v925_v54 = vld [vmem:[%s924_s18] sm:$0x1]  ;;  %p2080_p13 = scmp.lt.s32.totalorder %s946_s19, 511  ;;  %s3853_s0 = smov (!%p2075_p12, %s939_s0), 511 }
 0x190   : > { %s3855_s19 = smov (!%p947_p1, %s946_s19), 0  ;;  %v926_v55 = vadd.f32 %v925_v54, %v916_v53  ;;  %p956_p4 = scmp.gt.s32.totalorder %s3345_s5, 0 }
 0x191   : > { %s933_s14 = scalar_lea.vmem [#allocation5], %s3851_s10  ;;  %s3857_s19 = smov (!%p2080_p13, %s3855_s19), 511 }
 0x192   : > { %v934_v56 = vld [vmem:[%s933_s14] sm:$0x1]  ;;  %s957_s11 = scalar_select %p956_p4, %s3345_s5, 0 }
 0x193   : > { %p2085_p5 = scmp.lt.s32.totalorder %s3345_s5, 511  ;;  %v935_v57 = vadd.f32 %v934_v56, %v926_v55  ;;  %s964_s29 = sld [smem:[#allocation4 + %s963_s17]] }
 0x194   : > { %s973_s15 = sld [smem:[#allocation4 + %s972_s6]]  ;;  %s942_s23 = scalar_lea.vmem [#allocation5], %s3853_s0 }
 0x195   : > { %v943_v58 = vld [vmem:[%s942_s23] sm:$0x1]  ;;  %s3859_s11 = smov (!%p2085_p5, %s957_s11), 511  ;;  %s981_s12 = sadd.s32 88, %s3010_s13 }
 0x196   : > { %s990_s21 = sadd.s32 89, %s3010_s13  ;;  %s982_s16 = sld [smem:[#allocation4 + %s981_s12]]  ;;  %v944_v59 = vadd.f32 %v943_v58, %v935_v57 }
 0x197   : > { %s3354_s24 = sld [smem:[#allocation4 + %s990_s21]]  ;;  %s999_s20 = sadd.s32 90, %s3010_s13 }
 0x198   : > { %s951_s10 = scalar_lea.vmem [#allocation5], %s3857_s19  ;;  %s3357_s22 = sld [smem:[#allocation4 + %s999_s20]] }
 0x199   : > { %v952_v60 = vld [vmem:[%s951_s10] sm:$0x1]  ;;  %s1008_s18 = sadd.s32 91, %s3010_s13  ;;  %p965_p6 = scmp.gt.s32.totalorder %s964_s29, 0 }
 0x19a   : > { %p2090_p7 = scmp.lt.s32.totalorder %s964_s29, 511  ;;  %p974_p10 = scmp.gt.s32.totalorder %s973_s15, 0  ;;  %v953_v61 = vadd.f32 %v952_v60, %v944_v59 }
 0x19b   : > { %p2095_p11 = scmp.lt.s32.totalorder %s973_s15, 511  ;;  %s3861_s29 = smov (!%p965_p6, %s964_s29), 0 }
 0x19c   : > { %s960_s5 = scalar_lea.vmem [#allocation5], %s3859_s11  ;;  %s3863_s15 = smov (!%p974_p10, %s973_s15), 0 }
 0x19d   : > { %v961_v62 = vld [vmem:[%s960_s5] sm:$0x1]  ;;  %s3865_s29 = smov (!%p2090_p7, %s3861_s29), 511  ;;  %s3867_s15 = smov (!%p2095_p11, %s3863_s15), 511 }
 0x19e   : > { %v962_v63 = vadd.f32 %v961_v62, %v953_v61  ;;  %p983_p0 = scmp.gt.s32.totalorder %s982_s16, 0  ;;  %s969_s19 = scalar_lea.vmem [#allocation5], %s3865_s29 }
 0x19f   : > { %v970_v0 = vld [vmem:[%s969_s19] sm:$0x1]  ;;  %p2100_p2 = scmp.lt.s32.totalorder %s982_s16, 511  ;;  %p992_p8 = scmp.gt.s32.totalorder %s3354_s24, 0 }
 0x1a0   : > { %s3869_s16 = smov (!%p983_p0, %s982_s16), 0  ;;  %p2105_p3 = scmp.lt.s32.totalorder %s3354_s24, 511  ;;  %v971_v1 = vadd.f32 %v970_v0, %v962_v63 }
 0x1a1   : > { %s3871_s16 = smov (!%p2100_p2, %s3869_s16), 511  ;;  %s978_s17 = scalar_lea.vmem [#allocation5], %s3867_s15 }
 0x1a2   : > { %v979_v2 = vld [vmem:[%s978_s17] sm:$0x1]  ;;  %s3873_s24 = smov (!%p992_p8, %s3354_s24), 0  ;;  %p1001_p9 = scmp.gt.s32.totalorder %s3357_s22, 0 }
 0x1a3   : > { %s3875_s24 = smov (!%p2105_p3, %s3873_s24), 511  ;;  %v980_v3 = vadd.f32 %v979_v2, %v971_v1  ;;  %s987_s0 = scalar_lea.vmem [#allocation5], %s3871_s16 }
 0x1a4   : > { %s1002_s6 = scalar_select %p1001_p9, %s3357_s22, 0  ;;  %v988_v4 = vld [vmem:[%s987_s0] sm:$0x1] }
 0x1a5   : > { %p2110_p12 = scmp.lt.s32.totalorder %s3357_s22, 511  ;;  %s1009_s14 = sld [smem:[#allocation4 + %s1008_s18]]  ;;  %v989_v5 = vadd.f32 %v988_v4, %v980_v3 }
 0x1a6   : > { %s1017_s11 = sadd.s32 92, %s3010_s13  ;;  %s1026_s15 = sadd.s32 93, %s3010_s13 }
 0x1a7   : > { %s3877_s6 = smov (!%p2110_p12, %s1002_s6), 511  ;;  %s1018_s29 = sld [smem:[#allocation4 + %s1017_s11]] }
 0x1a8   : > { %s996_s23 = scalar_lea.vmem [#allocation5], %s3875_s24  ;;  %s3370_s12 = sld [smem:[#allocation4 + %s1026_s15]] }
 0x1a9   : > { %v997_v6 = vld [vmem:[%s996_s23] sm:$0x1]  ;;  %s1035_s21 = sadd.s32 94, %s3010_s13  ;;  %s1044_s20 = sadd.s32 95, %s3010_s13 }
 0x1aa   : > { %s3374_s10 = sld [smem:[#allocation4 + %s1035_s21]]  ;;  %v998_v7 = vadd.f32 %v997_v6, %v989_v5  ;;  %s1005_s22 = scalar_lea.vmem [#allocation5], %s3877_s6 }
 0x1ab   : > { %s3376_s16 = sld [smem:[#allocation4 + %s1044_s20]]  ;;  %p1010_p1 = scmp.gt.s32.totalorder %s1009_s14, 0  ;;  %v1006_v8 = vld [vmem:[%s1005_s22] sm:$0x1] }
 0x1ac   : > { %p2115_p13 = scmp.lt.s32.totalorder %s1009_s14, 511  ;;  %s1054_s18 = sadd.s32 96, %s3010_s13  ;;  %v1007_v9 = vadd.f32 %v1006_v8, %v998_v7 }
 0x1ad   : > { %s1063_s5 = sadd.s32 97, %s3010_s13  ;;  %s3879_s14 = smov (!%p1010_p1, %s1009_s14), 0 }
 0x1ae   : > { %p1019_p4 = scmp.gt.s32.totalorder %s1018_s29, 0  ;;  %p2120_p5 = scmp.lt.s32.totalorder %s1018_s29, 511 }
 0x1af   : > { %s3881_s14 = smov (!%p2115_p13, %s3879_s14), 511  ;;  %p1028_p6 = scmp.gt.s32.totalorder %s3370_s12, 0 }
 0x1b0   : > { %s3883_s29 = smov (!%p1019_p4, %s1018_s29), 0  ;;  %s1014_s24 = scalar_lea.vmem [#allocation5], %s3881_s14 }
 0x1b1   : > { %v1015_v10 = vld [vmem:[%s1014_s24] sm:$0x1]  ;;  %s3885_s29 = smov (!%p2120_p5, %s3883_s29), 511  ;;  %p2125_p7 = scmp.lt.s32.totalorder %s3370_s12, 511 }
 0x1b2   : > { %v1016_v11 = vadd.f32 %v1015_v10, %v1007_v9  ;;  %s1029_s19 = scalar_select %p1028_p6, %s3370_s12, 0 }
 0x1b3   : > { %s1023_s17 = scalar_lea.vmem [#allocation5], %s3885_s29  ;;  %p1037_p10 = scmp.gt.s32.totalorder %s3374_s10, 0 }
 0x1b4   : > { %v1024_v12 = vld [vmem:[%s1023_s17] sm:$0x1]  ;;  %p2130_p11 = scmp.lt.s32.totalorder %s3374_s10, 511  ;;  %s3887_s19 = smov (!%p2125_p7, %s1029_s19), 511 }
 0x1b5   : > { %v1025_v13 = vadd.f32 %v1024_v12, %v1016_v11  ;;  %s3889_s10 = smov (!%p1037_p10, %s3374_s10), 0  ;;  %p1046_p0 = scmp.gt.s32.totalorder %s3376_s16, 0 }
 0x1b6   : > { %s1032_s6 = scalar_lea.vmem [#allocation5], %s3887_s19  ;;  %s3891_s10 = smov (!%p2130_p11, %s3889_s10), 511 }
 0x1b7   : > { %v1033_v14 = vld [vmem:[%s1032_s6] sm:$0x1]  ;;  %s1047_s0 = scalar_select %p1046_p0, %s3376_s16, 0 }
 0x1b8   : > { %v1034_v15 = vadd.f32 %v1033_v14, %v1025_v13  ;;  %p2135_p2 = scmp.lt.s32.totalorder %s3376_s16, 511  ;;  %s1041_s14 = scalar_lea.vmem [#allocation5], %s3891_s10 }
 0x1b9   : > { %v1042_v16 = vld [vmem:[%s1041_s14] sm:$0x1]  ;;  %s1055_s11 = sld [smem:[#allocation4 + %s1054_s18]]  ;;  %s1072_s15 = sadd.s32 98, %s3010_s13 }
 0x1ba   : > { %s1064_s29 = sld [smem:[#allocation4 + %s1063_s5]]  ;;  %v1043_v17 = vadd.f32 %v1042_v16, %v1034_v15  ;;  %s3893_s0 = smov (!%p2135_p2, %s1047_s0), 511 }
 0x1bb   : > { %s1081_s23 = sadd.s32 99, %s3010_s13  ;;  %s1073_s12 = sld [smem:[#allocation4 + %s1072_s15]] }
 0x1bc   : > { %s1050_s21 = scalar_lea.vmem [#allocation5], %s3893_s0  ;;  %s1082_s20 = sld [smem:[#allocation4 + %s1081_s23]] }
 0x1bd   : > { %v1051_v18 = vld [vmem:[%s1050_s21] sm:$0x1]  ;;  %s1090_s22 = sadd.s32 100, %s3010_s13  ;;  %s1099_s19 = sadd.s32 101, %s3010_s13 }
 0x1be   : > { %v1052_v19 = vadd.f32 %v1051_v18, %v1043_v17  ;;  %s1091_s24 = sld [smem:[#allocation4 + %s1090_s22]]  ;;  %s1108_s17 = sadd.s32 102, %s3010_s13 }
 0x1bf   : > { %p1056_p8 = scmp.gt.s32.totalorder %s1055_s11, 0  ;;  %p2140_p3 = scmp.lt.s32.totalorder %s1055_s11, 511 }
 0x1c0   : > { %1053 = vst [vmem:[#allocation2 + $0x5] sm:$0x1] %v1052_v19  ;;  %p1065_p9 = scmp.gt.s32.totalorder %s1064_s29, 0  ;;  %p2145_p12 = scmp.lt.s32.totalorder %s1064_s29, 511 }
 0x1c1   : > { %s3895_s11 = smov (!%p1056_p8, %s1055_s11), 0  ;;  %p1074_p1 = scmp.gt.s32.totalorder %s1073_s12, 0 }
 0x1c2   : > { %s3897_s29 = smov (!%p1065_p9, %s1064_s29), 0  ;;  %s3899_s11 = smov (!%p2140_p3, %s3895_s11), 511 }
 0x1c3   : > { %s3901_s29 = smov (!%p2145_p12, %s3897_s29), 511  ;;  %p2150_p13 = scmp.lt.s32.totalorder %s1073_s12, 511 }
 0x1c4   : > { %s3903_s12 = smov (!%p1074_p1, %s1073_s12), 0  ;;  %p1083_p4 = scmp.gt.s32.totalorder %s1082_s20, 0 }
 0x1c5   : > { %p2155_p5 = scmp.lt.s32.totalorder %s1082_s20, 511  ;;  %s3905_s12 = smov (!%p2150_p13, %s3903_s12), 511 }
 0x1c6   : > { %s3907_s20 = smov (!%p1083_p4, %s1082_s20), 0  ;;  %p1092_p6 = scmp.gt.s32.totalorder %s1091_s24, 0 }
 0x1c7   : > { %s3909_s20 = smov (!%p2155_p5, %s3907_s20), 511  ;;  %p2160_p7 = scmp.lt.s32.totalorder %s1091_s24, 511 }
 0x1c8   : > { %s1093_s10 = scalar_select %p1092_p6, %s1091_s24, 0 }
 0x1c9   : > { %s1060_s16 = scalar_lea.vmem [#allocation5], %s3899_s11  ;;  %s1069_s18 = scalar_lea.vmem [#allocation5], %s3901_s29 }
 0x1ca   : > { %v1061_v20 = vld [vmem:[%s1060_s16] sm:$0x1]  ;;  %s1100_s5 = sld [smem:[#allocation4 + %s1099_s19]]  ;;  %s3911_s10 = smov (!%p2160_p7, %s1093_s10), 511 }
 0x1cb   : > { %v1070_v21 = vld [vmem:[%s1069_s18] sm:$0x1]  ;;  %s1109_s6 = sld [smem:[#allocation4 + %s1108_s17]]  ;;  %s1117_s0 = sadd.s32 103, %s3010_s13 }
 0x1cc   : > { %v1071_v22 = vadd.f32 %v1070_v21, %v1061_v20  ;;  %s3399_s14 = sld [smem:[#allocation4 + %s1117_s0]]  ;;  %s1078_s15 = scalar_lea.vmem [#allocation5], %s3905_s12  ;;  %v2300_v20 = vld [vmem:[%s3548_s3] ss:$0 sm:$0xff] }
 0x1cd   : > { %v1079_v23 = vld [vmem:[%s1078_s15] sm:$0x1]  ;;  %s1126_s23 = sadd.s32 104, %s3010_s13  ;;  %s1135_s21 = sadd.s32 105, %s3010_s13 }
 0x1ce   : > { %s3403_s22 = sld [smem:[#allocation4 + %s1126_s23]]  ;;  %v1080_v24 = vadd.f32 %v1079_v23, %v1071_v22  ;;  %s1144_s29 = sadd.s32 106, %s3010_s13 }
 0x1cf   : > { %s3405_s11 = sld [smem:[#allocation4 + %s1135_s21]]  ;;  %s1153_s24 = sadd.s32 107, %s3010_s13 }
 0x1d0   : > { %p1101_p10 = scmp.gt.s32.totalorder %s1100_s5, 0  ;;  %p2165_p11 = scmp.lt.s32.totalorder %s1100_s5, 511 }
 0x1d1   : > { %s1087_s19 = scalar_lea.vmem [#allocation5], %s3909_s20  ;;  %p1110_p0 = scmp.gt.s32.totalorder %s1109_s6, 0 }
 0x1d2   : > { %v1088_v25 = vld [vmem:[%s1087_s19] sm:$0x1]  ;;  %s3913_s5 = smov (!%p1101_p10, %s1100_s5), 0  ;;  %p2170_p2 = scmp.lt.s32.totalorder %s1109_s6, 511 }
 0x1d3   : > { %s3915_s5 = smov (!%p2165_p11, %s3913_s5), 511  ;;  %v1089_v26 = vadd.f32 %v1088_v25, %v1080_v24  ;;  %s3917_s6 = smov (!%p1110_p0, %s1109_s6), 0 }
 0x1d4   : > { %s1096_s12 = scalar_lea.vmem [#allocation5], %s3911_s10  ;;  %p1119_p8 = scmp.gt.s32.totalorder %s3399_s14, 0 }
 0x1d5   : > { %v1097_v27 = vld [vmem:[%s1096_s12] sm:$0x1]  ;;  %s3919_s6 = smov (!%p2170_p2, %s3917_s6), 511  ;;  %p2175_p3 = scmp.lt.s32.totalorder %s3399_s14, 511 }
 0x1d6   : > { %s1120_s16 = scalar_select %p1119_p8, %s3399_s14, 0  ;;  %v1098_v28 = vadd.f32 %v1097_v27, %v1089_v26 }
 0x1d7   : > { %s1105_s20 = scalar_lea.vmem [#allocation5], %s3915_s5  ;;  %p1128_p9 = scmp.gt.s32.totalorder %s3403_s22, 0 }
 0x1d8   : > { %v1106_v29 = vld [vmem:[%s1105_s20] sm:$0x1]  ;;  %p2180_p12 = scmp.lt.s32.totalorder %s3403_s22, 511  ;;  %s3921_s16 = smov (!%p2175_p3, %s1120_s16), 511 }
 0x1d9   : > { %s3923_s22 = smov (!%p1128_p9, %s3403_s22), 0  ;;  %v1107_v30 = vadd.f32 %v1106_v29, %v1098_v28  ;;  %p1137_p1 = scmp.gt.s32.totalorder %s3405_s11, 0 }
 0x1da   : > { %s1114_s10 = scalar_lea.vmem [#allocation5], %s3919_s6  ;;  %s3925_s22 = smov (!%p2180_p12, %s3923_s22), 511 }
 0x1db   : > { %v1115_v31 = vld [vmem:[%s1114_s10] sm:$0x1]  ;;  %s1138_s18 = scalar_select %p1137_p1, %s3405_s11, 0 }
 0x1dc   : > { %p2185_p13 = scmp.lt.s32.totalorder %s3405_s11, 511  ;;  %v1116_v32 = vadd.f32 %v1115_v31, %v1107_v30  ;;  %s1145_s17 = sld [smem:[#allocation4 + %s1144_s29]] }
 0x1dd   : > { %s1154_s5 = sld [smem:[#allocation4 + %s1153_s24]]  ;;  %s1123_s0 = scalar_lea.vmem [#allocation5], %s3921_s16 }
 0x1de   : > { %v1124_v33 = vld [vmem:[%s1123_s0] sm:$0x1]  ;;  %s3927_s18 = smov (!%p2185_p13, %s1138_s18), 511  ;;  %s1162_s14 = sadd.s32 108, %s3010_s13 }
 0x1df   : > { %s1171_s15 = sadd.s32 109, %s3010_s13  ;;  %s1163_s23 = sld [smem:[#allocation4 + %s1162_s14]]  ;;  %v1125_v34 = vadd.f32 %v1124_v33, %v1116_v32 }
 0x1e0   : > { %s3424_s21 = sld [smem:[#allocation4 + %s1171_s15]]  ;;  %s1180_s6 = sadd.s32 110, %s3010_s13 }
 0x1e1   : > { %s1132_s19 = scalar_lea.vmem [#allocation5], %s3925_s22  ;;  %s3427_s12 = sld [smem:[#allocation4 + %s1180_s6]] }
 0x1e2   : > { %v1133_v35 = vld [vmem:[%s1132_s19] sm:$0x1]  ;;  %s1189_s11 = sadd.s32 111, %s3010_s13  ;;  %p1146_p4 = scmp.gt.s32.totalorder %s1145_s17, 0 }
 0x1e3   : > { %p2190_p5 = scmp.lt.s32.totalorder %s1145_s17, 511  ;;  %p1155_p6 = scmp.gt.s32.totalorder %s1154_s5, 0  ;;  %v1134_v36 = vadd.f32 %v1133_v35, %v1125_v34 }
 0x1e4   : > { %p2195_p7 = scmp.lt.s32.totalorder %s1154_s5, 511  ;;  %s3929_s17 = smov (!%p1146_p4, %s1145_s17), 0 }
 0x1e5   : > { %s1141_s29 = scalar_lea.vmem [#allocation5], %s3927_s18  ;;  %s3931_s5 = smov (!%p1155_p6, %s1154_s5), 0 }
 0x1e6   : > { %v1142_v37 = vld [vmem:[%s1141_s29] sm:$0x1]  ;;  %s3933_s17 = smov (!%p2190_p5, %s3929_s17), 511  ;;  %s3935_s5 = smov (!%p2195_p7, %s3931_s5), 511 }
 0x1e7   : > { %v1143_v38 = vadd.f32 %v1142_v37, %v1134_v36  ;;  %p1164_p10 = scmp.gt.s32.totalorder %s1163_s23, 0  ;;  %s1150_s22 = scalar_lea.vmem [#allocation5], %s3933_s17 }
 0x1e8   : > { %v1151_v39 = vld [vmem:[%s1150_s22] sm:$0x1]  ;;  %p2200_p11 = scmp.lt.s32.totalorder %s1163_s23, 511  ;;  %p1173_p0 = scmp.gt.s32.totalorder %s3424_s21, 0 }
 0x1e9   : > { %s3937_s23 = smov (!%p1164_p10, %s1163_s23), 0  ;;  %p2205_p2 = scmp.lt.s32.totalorder %s3424_s21, 511  ;;  %v1152_v40 = vadd.f32 %v1151_v39, %v1143_v38 }
 0x1ea   : > { %s3939_s23 = smov (!%p2200_p11, %s3937_s23), 511  ;;  %s1159_s24 = scalar_lea.vmem [#allocation5], %s3935_s5 }
 0x1eb   : > { %v1160_v41 = vld [vmem:[%s1159_s24] sm:$0x1]  ;;  %s3941_s21 = smov (!%p1173_p0, %s3424_s21), 0  ;;  %p1182_p8 = scmp.gt.s32.totalorder %s3427_s12, 0 }
 0x1ec   : > { %s3943_s21 = smov (!%p2205_p2, %s3941_s21), 511  ;;  %v1161_v42 = vadd.f32 %v1160_v41, %v1152_v40  ;;  %s1168_s20 = scalar_lea.vmem [#allocation5], %s3939_s23 }
 0x1ed   : > { %s1183_s16 = scalar_select %p1182_p8, %s3427_s12, 0  ;;  %v1169_v43 = vld [vmem:[%s1168_s20] sm:$0x1] }
 0x1ee   : > { %p2210_p3 = scmp.lt.s32.totalorder %s3427_s12, 511  ;;  %s1190_s10 = sld [smem:[#allocation4 + %s1189_s11]]  ;;  %v1170_v44 = vadd.f32 %v1169_v43, %v1161_v42 }
 0x1ef   : > { %s1199_s18 = sadd.s32 112, %s3010_s13  ;;  %s1208_s5 = sadd.s32 113, %s3010_s13 }
 0x1f0   : > { %s3945_s16 = smov (!%p2210_p3, %s1183_s16), 511  ;;  %s1200_s17 = sld [smem:[#allocation4 + %s1199_s18]] }
 0x1f1   : > { %s1177_s0 = scalar_lea.vmem [#allocation5], %s3943_s21  ;;  %s1209_s14 = sld [smem:[#allocation4 + %s1208_s5]] }
 0x1f2   : > { %v1178_v45 = vld [vmem:[%s1177_s0] sm:$0x1]  ;;  %s1217_s15 = sadd.s32 114, %s3010_s13  ;;  %s1226_s6 = sadd.s32 115, %s3010_s13 }
 0x1f3   : > { %s1218_s19 = sld [smem:[#allocation4 + %s1217_s15]]  ;;  %v1179_v46 = vadd.f32 %v1178_v45, %v1170_v44  ;;  %s1186_s23 = scalar_lea.vmem [#allocation5], %s3945_s16 }
 0x1f4   : > { %s3442_s29 = sld [smem:[#allocation4 + %s1226_s6]]  ;;  %p1191_p9 = scmp.gt.s32.totalorder %s1190_s10, 0  ;;  %v1187_v47 = vld [vmem:[%s1186_s23] sm:$0x1] }
 0x1f5   : > { %p2215_p12 = scmp.lt.s32.totalorder %s1190_s10, 511  ;;  %s1235_s12 = sadd.s32 116, %s3010_s13  ;;  %v1188_v48 = vadd.f32 %v1187_v47, %v1179_v46 }
 0x1f6   : > { %s1244_s11 = sadd.s32 117, %s3010_s13  ;;  %s3947_s10 = smov (!%p1191_p9, %s1190_s10), 0 }
 0x1f7   : > { %p1201_p1 = scmp.gt.s32.totalorder %s1200_s17, 0  ;;  %p2220_p13 = scmp.lt.s32.totalorder %s1200_s17, 511 }
 0x1f8   : > { %s3949_s10 = smov (!%p2215_p12, %s3947_s10), 511  ;;  %p1210_p4 = scmp.gt.s32.totalorder %s1209_s14, 0 }
 0x1f9   : > { %s3951_s17 = smov (!%p1201_p1, %s1200_s17), 0  ;;  %s1195_s21 = scalar_lea.vmem [#allocation5], %s3949_s10 }
 0x1fa   : > { %v1196_v49 = vld [vmem:[%s1195_s21] sm:$0x1]  ;;  %s3953_s17 = smov (!%p2220_p13, %s3951_s17), 511  ;;  %p2225_p5 = scmp.lt.s32.totalorder %s1209_s14, 511 }
 0x1fb   : > { %v1197_v50 = vadd.f32 %v1196_v49, %v1188_v48  ;;  %s1211_s22 = scalar_select %p1210_p4, %s1209_s14, 0 }
 0x1fc   : > { %p1219_p6 = scmp.gt.s32.totalorder %s1218_s19, 0  ;;  %p2230_p7 = scmp.lt.s32.totalorder %s1218_s19, 511 }
 0x1fd   : > { %1198 = vst [vmem:[#allocation2 + $0x6] sm:$0x1] %v1197_v50  ;;  %s3955_s22 = smov (!%p2225_p5, %s1211_s22), 511  ;;  %p1228_p10 = scmp.gt.s32.totalorder %s3442_s29, 0 }
 0x1fe   : > { %s3957_s19 = smov (!%p1219_p6, %s1218_s19), 0  ;;  %p2235_p11 = scmp.lt.s32.totalorder %s3442_s29, 511 }
 0x1ff   : > { %s3959_s19 = smov (!%p2230_p7, %s3957_s19), 511  ;;  %s1236_s16 = sld [smem:[#allocation4 + %s1235_s12]] }
 0x200   : > { %s1229_s24 = scalar_select %p1228_p10, %s3442_s29, 0 }
 0x201   : > { %s1245_s20 = sld [smem:[#allocation4 + %s1244_s11]]  ;;  %s1253_s10 = sadd.s32 118, %s3010_s13 }
 0x202   : > { %s3961_s24 = smov (!%p2235_p11, %s1229_s24), 511  ;;  %s1262_s18 = sadd.s32 119, %s3010_s13 }
 0x203   : > { %s3451_s5 = sld [smem:[#allocation4 + %s1253_s10]]  ;;  %s1205_s0 = scalar_lea.vmem [#allocation5], %s3953_s17 }
 0x204   : > { %v1206_v51 = vld [vmem:[%s1205_s0] sm:$0x1]  ;;  %s1214_s14 = scalar_lea.vmem [#allocation5], %s3955_s22  ;;  %s3453_s15 = sld [smem:[#allocation4 + %s1262_s18]] }
 0x205   : > { %v1215_v52 = vld [vmem:[%s1214_s14] sm:$0x1]  ;;  %s1271_s6 = sadd.s32 120, %s3010_s13  ;;  %s1280_s21 = sadd.s32 121, %s3010_s13 }
 0x206   : > { %s3456_s23 = sld [smem:[#allocation4 + %s1271_s6]]  ;;  %p1237_p0 = scmp.gt.s32.totalorder %s1236_s16, 0  ;;  %v1216_v53 = vadd.f32 %v1215_v52, %v1206_v51 }
 0x207   : > { %p2240_p2 = scmp.lt.s32.totalorder %s1236_s16, 511  ;;  %p1246_p8 = scmp.gt.s32.totalorder %s1245_s20, 0 }
 0x208   : > { %p2245_p3 = scmp.lt.s32.totalorder %s1245_s20, 511  ;;  %s1223_s17 = scalar_lea.vmem [#allocation5], %s3959_s19 }
 0x209   : > { %v1224_v54 = vld [vmem:[%s1223_s17] sm:$0x1]  ;;  %s3963_s16 = smov (!%p1237_p0, %s1236_s16), 0  ;;  %s3965_s20 = smov (!%p1246_p8, %s1245_s20), 0 }
 0x20a   : > { %s3967_s16 = smov (!%p2240_p2, %s3963_s16), 511  ;;  %v1225_v55 = vadd.f32 %v1224_v54, %v1216_v53  ;;  %s3969_s20 = smov (!%p2245_p3, %s3965_s20), 511 }
 0x20b   : > { %s1232_s29 = scalar_lea.vmem [#allocation5], %s3961_s24  ;;  %p1255_p9 = scmp.gt.s32.totalorder %s3451_s5, 0 }
 0x20c   : > { %v1233_v56 = vld [vmem:[%s1232_s29] sm:$0x1]  ;;  %p2250_p12 = scmp.lt.s32.totalorder %s3451_s5, 511  ;;  %p1264_p1 = scmp.gt.s32.totalorder %s3453_s15, 0 }
 0x20d   : > { %s3971_s5 = smov (!%p1255_p9, %s3451_s5), 0  ;;  %v1234_v57 = vadd.f32 %v1233_v56, %v1225_v55  ;;  %p2255_p13 = scmp.lt.s32.totalorder %s3453_s15, 511 }
 0x20e   : > { %s1241_s19 = scalar_lea.vmem [#allocation5], %s3967_s16  ;;  %s3973_s5 = smov (!%p2250_p12, %s3971_s5), 511 }
 0x20f   : > { %v1242_v58 = vld [vmem:[%s1241_s19] sm:$0x1]  ;;  %s3975_s15 = smov (!%p1264_p1, %s3453_s15), 0  ;;  %p1273_p4 = scmp.gt.s32.totalorder %s3456_s23, 0 }
 0x210   : > { %v1243_v59 = vadd.f32 %v1242_v58, %v1234_v57  ;;  %s3977_s15 = smov (!%p2255_p13, %s3975_s15), 511  ;;  %s1250_s12 = scalar_lea.vmem [#allocation5], %s3969_s20 }
 0x211   : > { %v1251_v60 = vld [vmem:[%s1250_s12] sm:$0x1]  ;;  %s1274_s11 = scalar_select %p1273_p4, %s3456_s23, 0 }
 0x212   : > { %p2260_p5 = scmp.lt.s32.totalorder %s3456_s23, 511  ;;  %s1281_s22 = sld [smem:[#allocation4 + %s1280_s21]]  ;;  %v1252_v61 = vadd.f32 %v1251_v60, %v1243_v59 }
 0x213   : > { %s1289_s24 = sadd.s32 122, %s3010_s13  ;;  %s1259_s16 = scalar_lea.vmem [#allocation5], %s3973_s5 }
 0x214   : > { %s3979_s11 = smov (!%p2260_p5, %s1274_s11), 511  ;;  %v1260_v62 = vld [vmem:[%s1259_s16] sm:$0x1]  ;;  %s1290_s10 = sld [smem:[#allocation4 + %s1289_s24]] }
 0x215   : > { %s1298_s18 = sadd.s32 123, %s3010_s13  ;;  %s1307_s14 = sadd.s32 124, %s3010_s13  ;;  %v1261_v63 = vadd.f32 %v1260_v62, %v1252_v61 }
 0x216   : > { %s3472_s0 = sld [smem:[#allocation4 + %s1298_s18]]  ;;  %s1316_s6 = sadd.s32 125, %s3010_s13 }
 0x217   : > { %s3476_s20 = sld [smem:[#allocation4 + %s1307_s14]]  ;;  %s1268_s21 = scalar_lea.vmem [#allocation5], %s3977_s15 }
 0x218   : > { %s3478_s23 = sld [smem:[#allocation4 + %s1316_s6]]  ;;  %v1269_v0 = vld [vmem:[%s1268_s21] sm:$0x1]  ;;  %p1282_p6 = scmp.gt.s32.totalorder %s1281_s22, 0 }
 0x219   : > { %p2265_p7 = scmp.lt.s32.totalorder %s1281_s22, 511  ;;  %s1325_s17 = sadd.s32 126, %s3010_s13  ;;  %v1270_v1 = vadd.f32 %v1269_v0, %v1261_v63 }
 0x21a   : > { %s1334_s5 = sadd.s32 127, %s3010_s13  ;;  %s3981_s22 = smov (!%p1282_p6, %s1281_s22), 0 }
 0x21b   : > { %p1291_p10 = scmp.gt.s32.totalorder %s1290_s10, 0  ;;  %p2270_p11 = scmp.lt.s32.totalorder %s1290_s10, 511 }
 0x21c   : > { %s1277_s29 = scalar_lea.vmem [#allocation5], %s3979_s11  ;;  %s3983_s22 = smov (!%p2265_p7, %s3981_s22), 511 }
 0x21d   : > { %v1278_v2 = vld [vmem:[%s1277_s29] sm:$0x1]  ;;  %s3985_s10 = smov (!%p1291_p10, %s1290_s10), 0  ;;  %p1300_p0 = scmp.gt.s32.totalorder %s3472_s0, 0 }
 0x21e   : > { %v1279_v3 = vadd.f32 %v1278_v2, %v1270_v1  ;;  %s3987_s10 = smov (!%p2270_p11, %s3985_s10), 511  ;;  %s1286_s15 = scalar_lea.vmem [#allocation5], %s3983_s22 }
 0x21f   : > { %v1287_v4 = vld [vmem:[%s1286_s15] sm:$0x1]  ;;  %s1301_s19 = scalar_select %p1300_p0, %s3472_s0, 0 }
 0x220   : > { %p2275_p2 = scmp.lt.s32.totalorder %s3472_s0, 511  ;;  %p1309_p8 = scmp.gt.s32.totalorder %s3476_s20, 0  ;;  %v1288_v5 = vadd.f32 %v1287_v4, %v1279_v3 }
 0x221   : > { %p2280_p3 = scmp.lt.s32.totalorder %s3476_s20, 511  ;;  %s1295_s12 = scalar_lea.vmem [#allocation5], %s3987_s10 }
 0x222   : > { %s3989_s19 = smov (!%p2275_p2, %s1301_s19), 511  ;;  %v1296_v6 = vld [vmem:[%s1295_s12] sm:$0x1]  ;;  %s3991_s20 = smov (!%p1309_p8, %s3476_s20), 0 }
 0x223   : > { %p1318_p9 = scmp.gt.s32.totalorder %s3478_s23, 0  ;;  %s3993_s20 = smov (!%p2280_p3, %s3991_s20), 511  ;;  %v1297_v7 = vadd.f32 %v1296_v6, %v1288_v5 }
 0x224   : > { %s1304_s24 = scalar_lea.vmem [#allocation5], %s3989_s19  ;;  %p2285_p12 = scmp.lt.s32.totalorder %s3478_s23, 511 }
 0x225   : > { %s1319_s11 = scalar_select %p1318_p9, %s3478_s23, 0  ;;  %v1305_v8 = vld [vmem:[%s1304_s24] sm:$0x1] }
 0x226   : > { %s1326_s22 = sld [smem:[#allocation4 + %s1325_s17]]  ;;  %v1306_v9 = vadd.f32 %v1305_v8, %v1297_v7  ;;  %s1313_s18 = scalar_lea.vmem [#allocation5], %s3993_s20 }
 0x227   : > { %s1335_s16 = sld [smem:[#allocation4 + %s1334_s5]]  ;;  %s3995_s11 = smov (!%p2285_p12, %s1319_s11), 511  ;;  %v1314_v10 = vld [vmem:[%s1313_s18] sm:$0x1] }
 0x228   : > { %v1315_v11 = vadd.f32 %v1314_v10, %v1306_v9  ;;  %s1322_s10 = scalar_lea.vmem [#allocation5], %s3995_s11  ;;  %s181_s6 = sand.u32 1, %s2833_s26  }
 0x229   : > { %v1323_v12 = vld [vmem:[%s1322_s10] sm:$0x1]  ;;  %s1658_s20 = sshll.u32 %s181_s6, 3  ;;  %s3503_s19 = scalar_lea.hbm %s3549_s4, %s3010_s13 }
 0x22a   : > { %v1324_v13 = vadd.f32 %v1323_v12, %v1315_v11  ;;  %s183_s17 = scalar_lea.vmem [#allocation10], %s1658_s20  ;;  %s1441_s12 = scalar_lea.sflag [#allocation7], %s181_s6 }
 0x22b   : > { %s1454_s5 = sshll.u32 %s183_s17, 4  ;;  %p3562_p7 = scmp.ne.s32.totalorder %s3553_s8, 0  ;;  %s3505_s5 = int_to_ptr.vmem [resolvable:$true] %s1454_s5 }
 0x22c   : > { %p1327_p1 = scmp.gt.s32.totalorder %s1326_s22, 0  ;;  %p2290_p13 = scmp.lt.s32.totalorder %s1326_s22, 511 }
 0x22d   : > { %p1336_p4 = scmp.gt.s32.totalorder %s1335_s16, 0  ;;  %p2295_p5 = scmp.lt.s32.totalorder %s1335_s16, 511 }
 0x22e   : > { %s3997_s22 = smov (!%p1327_p1, %s1326_s22), 0  ;;  %s2769_s11 = scalar_lea.vmem %s3505_s5, 128 }
 0x22f   : > { %s3999_s16 = smov (!%p1336_p4, %s1335_s16), 0  ;;  %s4001_s22 = smov (!%p2290_p13, %s3997_s22), 511 }
 0x230   : > { %s4003_s16 = smov (!%p2295_p5, %s3999_s16), 511  ;;  %s1331_s0 = scalar_lea.vmem [#allocation5], %s4001_s22 }
 0x231   : > { %v1332_v14 = vld [vmem:[%s1331_s0] sm:$0x1]  ;;  %s1340_s14 = scalar_lea.vmem [#allocation5], %s4003_s16  ;;  %p2770_p6 = scmp.ne.s32.totalorder %s3505_s5, %s2769_s11 }
 0x232   : > { %v1333_v15 = vadd.f32 %v1332_v14, %v1324_v13  ;;  %v1341_v16 = vld [vmem:[%s1340_s14] sm:$0x1]  ;;  %s2851_s24 = smov [#allocation10]  }
 0x233   : > { %p2771_p10 = pnand %p2770_p6, %p3562_p7  ;;  %s2773_s22 = sshll.u32 %s2851_s24, 4  ;;  %s2774_s22 = int_to_ptr.vmem [resolvable:$false] %s2773_s22 }
 0x234   : > { %v1342_v17 = vadd.f32 %v1341_v16, %v1333_v15  ;;  %s2775_s16 = scalar_lea.vmem %s2774_s22, 256  ;;  %p2776_p0 = scmp.lt.s32.totalorder %s3505_s5, %s2774_s22 }
 0x235   : > { %p2772_p11 = pneg %p2771_p10  ;;  %p2777_p2 = scmp.lt.s32.totalorder %s2775_s16, %s2769_s11 }
 0x236   : > { %1343 = vst [vmem:[#allocation2 + $0x7] sm:$0x1] %v1342_v17 }
 0x237   : > { %p2778_p8 = por %p2777_p2, %p2776_p0 }
 0x239   : > { %p2779_p3 = pnand %p2778_p8, %p2772_p11 }
 0x23d   : > { %v1344_v18 = vld [vmem:[#allocation2] sm:$0xff] }
 0x23e   : > { %v1345_v19 = vmul.f32 0.0625, %v1344_v18 }
 0x240   : > { %2611 = vmatmul.mubr.f32.vlgmr.msra.gmra.mrb[0].mxu0 %v1345_v19 }
 0x313   : > { %v1435_v21 = vpop.f32.mrb[0].mxu0 }
 0x314   : > { %v1436_v22 = vadd.f32 %v2300_v20, %v1435_v21  ;;  %v2612_v23 = vpop.f32.mrb[1].mxu0 }
 0x316   : > { %1439 = vst [vmem:[%s183_s17] sm:$0xff] %v1436_v22 }
 0x317   : > { %2782 = shalt.err (!%p2779_p3)
}
 0x318   : > { %s2783_s13 = scalar_lea.hbm %s3503_s19, 128  ;;  %s2787_s0 = scalar_lea.hbm %s3549_s4, 256 }
 0x319   : > { %p2784_p9 = scmp.ne.s32.totalorder %s3503_s19, %s2783_s13  ;;  %p2788_p13 = scmp.lt.u32.totalorder %s3503_s19, %s3549_s4 }
 0x31a   : > { %p2789_p4 = scmp.lt.u32.totalorder %s2787_s0, %s2783_s13  ;;  %p2791_p6 = scmp.lt.u32.totalorder %s2783_s13, %s3503_s19 }
 0x31b   : > { %p2785_p12 = pnand %p2784_p9, %p3562_p7 }
 0x31c   : > { %p2790_p5 = por %p2789_p4, %p2788_p13 }
 0x31d   : > { %p2786_p1 = pneg %p2785_p12 }
 0x31e   : > { %p2792_p10 = por %p2791_p6, %p2790_p5 }
 0x320   : > { %p2793_p11 = pnand %p2792_p10, %p2786_p1 }
 0x322   : > { %2796 = shalt.err (!%p2793_p11)
}
 0x323   : > { %2645 = dma.vmem_to_hbm [thread:$0]  (%p3562_p7), %s3505_s5, 128, %s3503_s19, %s1441_s12  }
 0x324 PF: > { %p2662_p0 = scmp.ge.s32.totalorder %s2841_s28, 2  ;;  %s1466_s20 = sand.u32 1, %s2829_s25  }
 0x325   : > { %p3563_p2 = scmp.ne.s32.totalorder %s3554_s9, 0  ;;  %s1467_s23 = scalar_lea.sflag [#allocation7], %s1466_s20 }
 0x327   : > { %p2655_p8 = pnand %p2662_p0, %p3563_p2 }
 0x329   : > { %2824 = dma.done.wait (!%p2655_p8), %s1467_s23, 128  }
 0x32a   : > { %2826 = vsyncadd (!%p2655_p8), %s1467_s23, 4294967168  ;;  %p20_p3 = scmp.ge.s32.totalorder %s2914_s30, 4   ;;  %s3564_s25 = smov %s2833_s26 }
 0x32b   : > { %s3565_s26 = smov %s2837_s27  ;;  %s3566_s27 = smov %s2925_s7 }
 0x32c   : > { %s3567_s28 = smov %s2914_s30  ;;  %22 = sbr.rel (!%p20_p3) target bundleno = 17 (0x11), region = 201 }
 0x333   :  { %1472 = vsyncpa [#allocation6], 1 }
 0x334   :  { %1474 = vsyncpa [#allocation6 + $0x1], 1 }
 0x335   :  { %1475 = vsyncpa [#allocation9], 1 }
 0x336   :  { %1476 = vsyncpa [#allocation7], 1 }
 0x337   :  { %1478 = vsyncpa [#allocation7 + $0x1], 1 }

</bundles_post_ra>
